<compile_context>
chip_gen: v5e
topology: v5e:2x2
jax: 0.10.0
libtpu: 0.0.40
codegen_flags: <defaults>
</compile_context>

<pallas_src>
import functools

import jax
import jax.numpy as jnp
from jax.experimental import pallas as pl
from jax.experimental.pallas import tpu as pltpu

EPS = 1e-5      # nn.LayerNorm default
_PAD_L = 8      # left pad along W (sublane axis) so interior scratch stores are aligned


def _row_tile(m, cap=512):
    """Largest multiple-of-8 divisor of m <= cap, preferring >=2 grid steps."""
    if m <= 8:
        return m
    best = None
    t = 8
    while t <= min(cap, m):
        if m % t == 0 and (m // t) >= 2:
            best = t
        t += 8
    return best if best is not None else min(cap, m)


def _head_mask(C, num_heads):
    """(C, C) block-diagonal 0/1 mask: mask[c1, c2] = 1 iff same head."""
    hd = C // num_heads
    idx = jnp.arange(C) // hd
    return (idx[:, None] == idx[None, :]).astype(jnp.bfloat16)


# ----------------------------------------------------------------------------
# Kernel 1: fused LayerNorm + q/k/v projections (qkv_bias=False), row-tiled.
# ----------------------------------------------------------------------------
def _ln_qkv_kernel(x_ref, g_ref, b_ref, wq_ref, wk_ref, wv_ref,
                   q_ref, k_ref, v_ref):
    x = x_ref[...]                                          # (tm, C) f32
    mu = jnp.mean(x, axis=-1, keepdims=True)
    var = jnp.mean((x - mu) ** 2, axis=-1, keepdims=True)
    xn = ((x - mu) * jax.lax.rsqrt(var + EPS)) * g_ref[...] + b_ref[...]
    xb = xn.astype(jnp.bfloat16)
    q_ref[...] = jnp.dot(xb, wq_ref[...], preferred_element_type=jnp.float32)
    k_ref[...] = jnp.dot(xb, wk_ref[...], preferred_element_type=jnp.float32)
    v_ref[...] = jnp.dot(xb, wv_ref[...], preferred_element_type=jnp.float32)


def ln_qkv(x2d, gamma, beta, wq, wk, wv, tm):
    M, C = x2d.shape
    row = lambda i: (i, 0)
    const = lambda i: (0, 0)
    return pl.pallas_call(
        _ln_qkv_kernel,
        out_shape=(jax.ShapeDtypeStruct((M, C), jnp.float32),) * 3,
        grid=(pl.cdiv(M, tm),),
        in_specs=[
            pl.BlockSpec((tm, C), row),
            pl.BlockSpec((1, C), const),
            pl.BlockSpec((1, C), const),
            pl.BlockSpec((C, C), const),
            pl.BlockSpec((C, C), const),
            pl.BlockSpec((C, C), const),
        ],
        out_specs=(pl.BlockSpec((tm, C), row),) * 3,
        compiler_params=pltpu.CompilerParams(dimension_semantics=("parallel",)),
    )(x2d, gamma.reshape(1, C), beta.reshape(1, C), wq, wk, wv)


# ----------------------------------------------------------------------------
# Kernel 2: Linear + bias + residual add (attention proj), row-tiled.
# ----------------------------------------------------------------------------
def _linear_res_kernel(a_ref, w_ref, bias_ref, res_ref, o_ref):
    o_ref[...] = (jnp.dot(a_ref[...].astype(jnp.bfloat16), w_ref[...],
                          preferred_element_type=jnp.float32)
                  + bias_ref[...] + res_ref[...])


def linear_residual(a, w, bias, res, tm):
    M, Din = a.shape
    D = w.shape[1]
    return pl.pallas_call(
        _linear_res_kernel,
        out_shape=jax.ShapeDtypeStruct((M, D), jnp.float32),
        grid=(pl.cdiv(M, tm),),
        in_specs=[
            pl.BlockSpec((tm, Din), lambda i: (i, 0)),
            pl.BlockSpec((Din, D), lambda i: (0, 0)),
            pl.BlockSpec((1, D), lambda i: (0, 0)),
            pl.BlockSpec((tm, D), lambda i: (i, 0)),
        ],
        out_specs=pl.BlockSpec((tm, D), lambda i: (i, 0)),
        compiler_params=pltpu.CompilerParams(dimension_semantics=("parallel",)),
    )(a, w, bias.reshape(1, D), res)


# ----------------------------------------------------------------------------
# Kernel 3: CenterAttention core (per-batch, lane axis = C = num_heads*hd).
# k/v are zero-padded into VMEM scratch inside the kernel; per-head logits come
# from a block-diagonal 0/1 matmul; softmax over the 9 taps is elementwise.
# ----------------------------------------------------------------------------
def _center_attn_kernel(q_ref, k_ref, v_ref, m_ref, o_ref, kp_ref, vp_ref,
                        *, H, W, C, scale):
    LW = _PAD_L
    # zero-padded copies of k, v (interior store is sublane-aligned at offset LW)
    kp_ref[...] = jnp.zeros_like(kp_ref)
    vp_ref[...] = jnp.zeros_like(vp_ref)
    kp_ref[1:H + 1, LW:LW + W, :] = k_ref[...]
    vp_ref[1:H + 1, LW:LW + W, :] = v_ref[...]

    q = q_ref[...].reshape(H * W, C) * scale                # (HW, C)
    mask = m_ref[...]                                       # (C, C) bf16 block-diag

    # per-tap logits, already broadcast across each head's channels
    logits = []
    for dy in (-1, 0, 1):
        for dx in (-1, 0, 1):
            kt = kp_ref[1 + dy:1 + dy + H, LW + dx:LW + dx + W, :].reshape(H * W, C)
            logits.append(jnp.dot((q * kt).astype(jnp.bfloat16), mask,
                                  preferred_element_type=jnp.float32))

    m = logits[0]
    for lg in logits[1:]:
        m = jnp.maximum(m, lg)

    s = jnp.zeros((H * W, C), jnp.float32)
    acc = jnp.zeros((H * W, C), jnp.float32)
    i = 0
    for dy in (-1, 0, 1):
        for dx in (-1, 0, 1):
            e = jnp.exp(logits[i] - m)
            s = s + e
            vt = vp_ref[1 + dy:1 + dy + H, LW + dx:LW + dx + W, :].reshape(H * W, C)
            acc = acc + e * vt
            i += 1

    o_ref[...] = (acc * pl.reciprocal(s, approx=True)).reshape(H, W, C)


def center_attention(q, k, v, mask, scale):
    B, H, W, C = q.shape
    kern = functools.partial(_center_attn_kernel, H=H, W=W, C=C, scale=scale)
    pad_shape = (H + 2, W + _PAD_L + 1, C)
    blk = pl.BlockSpec((None, H, W, C), lambda b: (b, 0, 0, 0))
    return pl.pallas_call(
        kern,
        out_shape=jax.ShapeDtypeStruct((B, H, W, C), jnp.float32),
        grid=(B,),
        in_specs=[blk, blk, blk, pl.BlockSpec((C, C), lambda b: (0, 0))],
        out_specs=pl.BlockSpec((None, H, W, C), lambda b: (b, 0, 0, 0)),
        scratch_shapes=[pltpu.VMEM(pad_shape, jnp.float32),
                        pltpu.VMEM(pad_shape, jnp.float32)],
        compiler_params=pltpu.CompilerParams(dimension_semantics=("parallel",)),
    )(q, k, v, mask)


# ----------------------------------------------------------------------------
# Kernel 4: fused MLP branch (per-batch):
#   out = x + fc2(gelu(dwconv3x3(fc1(LN2(x))))) ; hidden tensor stays in VMEM.
# ----------------------------------------------------------------------------
def _mlp_kernel(x_ref, g_ref, b_ref, w1_ref, b1_ref, wdw_ref, bdw_ref,
                w2_ref, b2_ref, o_ref, hp_ref, *, H, W, C, hid):
    LW = _PAD_L
    x2 = x_ref[...].reshape(H * W, C)                       # (HW, C)
    mu = jnp.mean(x2, axis=-1, keepdims=True)
    var = jnp.mean((x2 - mu) ** 2, axis=-1, keepdims=True)
    xn = ((x2 - mu) * jax.lax.rsqrt(var + EPS)) * g_ref[...] + b_ref[...]
    h = (jnp.dot(xn.astype(jnp.bfloat16), w1_ref[...],
                 preferred_element_type=jnp.float32) + b1_ref[...])      # (HW, hid)

    # zero-padded hidden map for the 3x3 depthwise conv
    hp_ref[...] = jnp.zeros_like(hp_ref)
    hp_ref[1:H + 1, LW:LW + W, :] = h.reshape(H, W, hid)

    acc = jnp.broadcast_to(bdw_ref[...].reshape(1, 1, hid), (H, W, hid))
    for dy in (-1, 0, 1):
        for dx in (-1, 0, 1):
            wk = wdw_ref[(dy + 1) * 3 + (dx + 1), :].reshape(1, 1, hid)
            acc = acc + hp_ref[1 + dy:1 + dy + H, LW + dx:LW + dx + W, :] * wk

    # exact (erf-based) GELU — matches torch nn.GELU default
    act = 0.5 * acc * (1.0 + jax.lax.erf(acc * (2.0 ** -0.5)))

    out = (jnp.dot(act.reshape(H * W, hid).astype(jnp.bfloat16), w2_ref[...],
                   preferred_element_type=jnp.float32)
           + b2_ref[...] + x2)
    o_ref[...] = out.reshape(H, W, C)


def mlp_fused(x, gamma, beta, w1, b1, w_dw, b_dw, w2, b2):
    B, H, W, C = x.shape
    hid = w1.shape[1]
    kern = functools.partial(_mlp_kernel, H=H, W=W, C=C, hid=hid)
    const = lambda b: (0, 0)
    return pl.pallas_call(
        kern,
        out_shape=jax.ShapeDtypeStruct((B, H, W, C), jnp.float32),
        grid=(B,),
        in_specs=[
            pl.BlockSpec((None, H, W, C), lambda b: (b, 0, 0, 0)),
            pl.BlockSpec((1, C), const),
            pl.BlockSpec((1, C), const),
            pl.BlockSpec((C, hid), const),
            pl.BlockSpec((1, hid), const),
            pl.BlockSpec((9, hid), const),
            pl.BlockSpec((1, hid), const),
            pl.BlockSpec((hid, C), const),
            pl.BlockSpec((1, C), const),
        ],
        out_specs=pl.BlockSpec((None, H, W, C), lambda b: (b, 0, 0, 0)),
        scratch_shapes=[pltpu.VMEM((H + 2, W + _PAD_L + 1, hid), jnp.float32)],
        compiler_params=pltpu.CompilerParams(dimension_semantics=("parallel",)),
    )(x, gamma.reshape(1, C), beta.reshape(1, C), w1, b1.reshape(1, hid),
      w_dw, b_dw.reshape(1, hid), w2, b2.reshape(1, C))


# ----------------------------------------------------------------------------
# Block forward (glue is metadata-only reshapes + weight dtype casts)
# ----------------------------------------------------------------------------
def block_pallas(x, p, H, W, num_heads):
    B, N, C = x.shape
    hd = C // num_heads
    scale = hd ** (-0.5)
    M = B * N
    tm = _row_tile(M)
    x2d = x.reshape(M, C).astype(jnp.float32)

    # ---- attention branch:  x + proj(center_attn(norm1(x))) ----
    wq = p["Wq"].astype(jnp.bfloat16)
    wk = p["Wkv"][:, :C].astype(jnp.bfloat16)
    wv = p["Wkv"][:, C:].astype(jnp.bfloat16)
    q, k, v = ln_qkv(x2d, p["ln1_g"], p["ln1_b"], wq, wk, wv, tm)   # (M, C) each
    mask = _head_mask(C, num_heads)
    attn = center_attention(q.reshape(B, H, W, C), k.reshape(B, H, W, C),
                            v.reshape(B, H, W, C), mask, scale)      # (B,H,W,C)
    x1 = linear_residual(attn.reshape(M, C), p["Wp"].astype(jnp.bfloat16),
                         p["bp"], x2d, tm)                           # (M, C)

    # ---- MLP branch:  x + fc2(gelu(dwconv(fc1(norm2(x))))), fully fused ----
    out = mlp_fused(x1.reshape(B, H, W, C), p["ln2_g"], p["ln2_b"],
                    p["W1"].astype(jnp.bfloat16), p["b1"],
                    p["w_dw"], p["b_dw"],
                    p["W2"].astype(jnp.bfloat16), p["b2"])           # (B,H,W,C)
    return out.reshape(B, N, C)


# ----------------------------------------------------------------------------
# Pure-JAX reference (f32, same math, no Pallas) for a numerical sanity check
# ----------------------------------------------------------------------------
def block_reference(x, p, H, W, num_heads):
    B, N, C = x.shape
    hd = C // num_heads
    scale = hd ** (-0.5)

    def ln(t, g, b):
        mu = t.mean(-1, keepdims=True)
        var = ((t - mu) ** 2).mean(-1, keepdims=True)
        return (t - mu) / jnp.sqrt(var + EPS) * g + b

    xn = ln(x, p["ln1_g"], p["ln1_b"])
    q = (xn @ p["Wq"]).reshape(B, H, W, num_heads, hd) * scale
    kv = (xn @ p["Wkv"]).reshape(B, H, W, 2, num_heads, hd)
    k, v = kv[:, :, :, 0], kv[:, :, :, 1]
    kp = jnp.pad(k, ((0, 0), (1, 1), (1, 1), (0, 0), (0, 0)))
    vp = jnp.pad(v, ((0, 0), (1, 1), (1, 1), (0, 0), (0, 0)))
    offs = [(ky, kx) for ky in range(3) for kx in range(3)]
    logits = jnp.stack(
        [jnp.einsum("bhwnd,bhwnd->bhwn", q, kp[:, ky:ky + H, kx:kx + W])
         for ky, kx in offs], axis=-1)
    pa = jax.nn.softmax(logits, axis=-1)
    out = sum(pa[..., i:i + 1] * vp[:, ky:ky + H, kx:kx + W]
              for i, (ky, kx) in enumerate(offs))
    out = out.reshape(B, N, C)
    x1 = x + out @ p["Wp"] + p["bp"]

    xn2 = ln(x1, p["ln2_g"], p["ln2_b"])
    h = xn2 @ p["W1"] + p["b1"]
    hid = h.shape[-1]
    hp = jnp.pad(h.reshape(B, H, W, hid), ((0, 0), (1, 1), (1, 1), (0, 0)))
    conv = p["b_dw"].reshape(1, 1, 1, hid) + sum(
        hp[:, ky:ky + H, kx:kx + W, :] * p["w_dw"][ky * 3 + kx].reshape(1, 1, 1, hid)
        for ky, kx in offs)
    g = jax.nn.gelu(conv, approximate=False).reshape(B, N, hid)
    return x1 + g @ p["W2"] + p["b2"]


if __name__ == "__main__":
    B, H, W = 2, 8, 8
    C, num_heads = 32, 4
    mlp_ratio = 4.0
    hidden = int(C * mlp_ratio)
    N = H * W

    key = jax.random.PRNGKey(0)
    ks = jax.random.split(key, 16)
    f32 = jnp.float32
    params = {
        "ln1_g": 1.0 + 0.05 * jax.random.normal(ks[0], (C,), f32),
        "ln1_b": 0.05 * jax.random.normal(ks[1], (C,), f32),
        "Wq": 0.02 * jax.random.normal(ks[2], (C, C), f32),
        "Wkv": 0.02 * jax.random.normal(ks[3], (C, 2 * C), f32),
        "Wp": 0.02 * jax.random.normal(ks[4], (C, C), f32),
        "bp": 0.01 * jax.random.normal(ks[5], (C,), f32),
        "ln2_g": 1.0 + 0.05 * jax.random.normal(ks[6], (C,), f32),
        "ln2_b": 0.05 * jax.random.normal(ks[7], (C,), f32),
        "W1": 0.02 * jax.random.normal(ks[8], (C, hidden), f32),
        "b1": 0.01 * jax.random.normal(ks[9], (hidden,), f32),
        "w_dw": (2.0 / 9.0) ** 0.5 * jax.random.normal(ks[10], (9, hidden), f32),
        "b_dw": 0.01 * jax.random.normal(ks[11], (hidden,), f32),
        "W2": 0.02 * jax.random.normal(ks[12], (hidden, C), f32),
        "b2": 0.01 * jax.random.normal(ks[13], (C,), f32),
    }
    x = jax.random.normal(ks[14], (B, N, C), f32)

    fwd = jax.jit(functools.partial(block_pallas, H=H, W=W, num_heads=num_heads))
    out = jax.block_until_ready(fwd(x, params))

    ref = block_reference(x, params, H, W, num_heads)
    assert out.shape == (B, N, C)
    assert bool(jnp.allclose(out, ref, atol=1e-2, rtol=1e-2)), "mismatch vs reference"

    print("KERNEL_OK")
</pallas_src>

<mosaic_0001>
module attributes {stable_mosaic.version = 11 : i64} {
  func.func @_ln_qkv_kernel(%arg0: i32, %arg1: memref<64x32xf32, #tpu.memory_space<vmem>>, %arg2: memref<1x32xf32, #tpu.memory_space<vmem>>, %arg3: memref<1x32xf32, #tpu.memory_space<vmem>>, %arg4: memref<32x32xbf16, #tpu.memory_space<vmem>>, %arg5: memref<32x32xbf16, #tpu.memory_space<vmem>>, %arg6: memref<32x32xbf16, #tpu.memory_space<vmem>>, %arg7: memref<64x32xf32, #tpu.memory_space<vmem>>, %arg8: memref<64x32xf32, #tpu.memory_space<vmem>>, %arg9: memref<64x32xf32, #tpu.memory_space<vmem>>) attributes {dimension_semantics = [#tpu.dimension_semantics<parallel>], iteration_bounds = array<i64: 2>, scalar_prefetch = 0 : i64, scratch_operands = 0 : i64, tpu.core_type = #tpu.core_type<tc>, window_params = [{transform_indices = @transform_0, window_bounds = array<i64: 64, 32>}, {pipeline_mode = #tpu.pipeline_mode<synchronous>, transform_indices = @transform_1, window_bounds = array<i64: 1, 32>}, {pipeline_mode = #tpu.pipeline_mode<synchronous>, transform_indices = @transform_2, window_bounds = array<i64: 1, 32>}, {pipeline_mode = #tpu.pipeline_mode<synchronous>, transform_indices = @transform_3, window_bounds = array<i64: 32, 32>}, {pipeline_mode = #tpu.pipeline_mode<synchronous>, transform_indices = @transform_4, window_bounds = array<i64: 32, 32>}, {pipeline_mode = #tpu.pipeline_mode<synchronous>, transform_indices = @transform_5, window_bounds = array<i64: 32, 32>}, {transform_indices = @transform_6, window_bounds = array<i64: 64, 32>}, {transform_indices = @transform_7, window_bounds = array<i64: 64, 32>}, {transform_indices = @transform_8, window_bounds = array<i64: 64, 32>}]} {
    %c0 = arith.constant 0 : index
    %c0_0 = arith.constant 0 : index
    %0 = vector.load %arg1[%c0, %c0_0] : memref<64x32xf32, #tpu.memory_space<vmem>>, vector<64x32xf32>
    %cst = arith.constant dense<0.000000e+00> : vector<64xf32>
    %1 = vector.multi_reduction <add>, %0, %cst [1] : vector<64x32xf32> to vector<64xf32>
    %2 = vector.shape_cast %1 : vector<64xf32> to vector<64x1xf32>
    %cst_1 = arith.constant 3.200000e+01 : f32
    %3 = vector.broadcast %cst_1 : f32 to vector<64x1xf32>
    %4 = arith.divf %2, %3 : vector<64x1xf32>
    %5 = vector.broadcast %4 : vector<64x1xf32> to vector<64x32xf32>
    %6 = arith.subf %0, %5 : vector<64x32xf32>
    %7 = arith.mulf %6, %6 : vector<64x32xf32>
    %cst_2 = arith.constant dense<0.000000e+00> : vector<64xf32>
    %8 = vector.multi_reduction <add>, %7, %cst_2 [1] : vector<64x32xf32> to vector<64xf32>
    %9 = vector.shape_cast %8 : vector<64xf32> to vector<64x1xf32>
    %cst_3 = arith.constant 3.200000e+01 : f32
    %10 = vector.broadcast %cst_3 : f32 to vector<64x1xf32>
    %11 = arith.divf %9, %10 : vector<64x1xf32>
    %12 = vector.broadcast %4 : vector<64x1xf32> to vector<64x32xf32>
    %13 = arith.subf %0, %12 : vector<64x32xf32>
    %cst_4 = arith.constant 9.99999974E-6 : f32
    %14 = vector.broadcast %cst_4 : f32 to vector<64x1xf32>
    %15 = arith.addf %11, %14 : vector<64x1xf32>
    %16 = math.rsqrt %15 : vector<64x1xf32>
    %17 = vector.broadcast %16 : vector<64x1xf32> to vector<64x32xf32>
    %18 = arith.mulf %13, %17 : vector<64x32xf32>
    %c0_5 = arith.constant 0 : index
    %c0_6 = arith.constant 0 : index
    %19 = vector.load %arg2[%c0_5, %c0_6] : memref<1x32xf32, #tpu.memory_space<vmem>>, vector<1x32xf32>
    %20 = vector.broadcast %19 : vector<1x32xf32> to vector<64x32xf32>
    %21 = arith.mulf %18, %20 : vector<64x32xf32>
    %c0_7 = arith.constant 0 : index
    %c0_8 = arith.constant 0 : index
    %22 = vector.load %arg3[%c0_7, %c0_8] : memref<1x32xf32, #tpu.memory_space<vmem>>, vector<1x32xf32>
    %23 = vector.broadcast %22 : vector<1x32xf32> to vector<64x32xf32>
    %24 = arith.addf %21, %23 : vector<64x32xf32>
    %25 = arith.truncf %24 : vector<64x32xf32> to vector<64x32xbf16>
    %c0_9 = arith.constant 0 : index
    %c0_10 = arith.constant 0 : index
    %26 = vector.load %arg4[%c0_9, %c0_10] : memref<32x32xbf16, #tpu.memory_space<vmem>>, vector<32x32xbf16>
    %cst_11 = arith.constant dense<0.000000e+00> : vector<64x32xf32>
    %27 = tpu.matmul %25, %26, %cst_11 {dimension_numbers = #tpu.dot_dimension_numbers<[1], [0], [0], [1], [0, 0, 1, 1], [], []>} : vector<64x32xbf16>, vector<32x32xbf16>, vector<64x32xf32> -> vector<64x32xf32>
    %c0_12 = arith.constant 0 : index
    %c0_13 = arith.constant 0 : index
    %28 = vector.load %arg7[%c0_12, %c0_13] : memref<64x32xf32, #tpu.memory_space<vmem>>, vector<64x32xf32>
    tpu.vector_store %arg7[%c0_12, %c0_13], %27 {strides = array<i32>} : memref<64x32xf32, #tpu.memory_space<vmem>>, vector<64x32xf32>,
    %c0_14 = arith.constant 0 : index
    %c0_15 = arith.constant 0 : index
    %29 = vector.load %arg5[%c0_14, %c0_15] : memref<32x32xbf16, #tpu.memory_space<vmem>>, vector<32x32xbf16>
    %cst_16 = arith.constant dense<0.000000e+00> : vector<64x32xf32>
    %30 = tpu.matmul %25, %29, %cst_16 {dimension_numbers = #tpu.dot_dimension_numbers<[1], [0], [0], [1], [0, 0, 1, 1], [], []>} : vector<64x32xbf16>, vector<32x32xbf16>, vector<64x32xf32> -> vector<64x32xf32>
    %c0_17 = arith.constant 0 : index
    %c0_18 = arith.constant 0 : index
    %31 = vector.load %arg8[%c0_17, %c0_18] : memref<64x32xf32, #tpu.memory_space<vmem>>, vector<64x32xf32>
    tpu.vector_store %arg8[%c0_17, %c0_18], %30 {strides = array<i32>} : memref<64x32xf32, #tpu.memory_space<vmem>>, vector<64x32xf32>,
    %c0_19 = arith.constant 0 : index
    %c0_20 = arith.constant 0 : index
    %32 = vector.load %arg6[%c0_19, %c0_20] : memref<32x32xbf16, #tpu.memory_space<vmem>>, vector<32x32xbf16>
    %cst_21 = arith.constant dense<0.000000e+00> : vector<64x32xf32>
    %33 = tpu.matmul %25, %32, %cst_21 {dimension_numbers = #tpu.dot_dimension_numbers<[1], [0], [0], [1], [0, 0, 1, 1], [], []>} : vector<64x32xbf16>, vector<32x32xbf16>, vector<64x32xf32> -> vector<64x32xf32>
    %c0_22 = arith.constant 0 : index
    %c0_23 = arith.constant 0 : index
    %34 = vector.load %arg9[%c0_22, %c0_23] : memref<64x32xf32, #tpu.memory_space<vmem>>, vector<64x32xf32>
    tpu.vector_store %arg9[%c0_22, %c0_23], %33 {strides = array<i32>} : memref<64x32xf32, #tpu.memory_space<vmem>>, vector<64x32xf32>,
    return
  }
  func.func @transform_0(%arg0: i32) -> (i32, i32) {
    %c0_i32 = arith.constant 0 : i32
    %c0_i32_0 = arith.constant 0 : i32
    return %arg0, %c0_i32 : i32, i32
  }
  func.func @transform_1(%arg0: i32) -> (i32, i32) {
    %c0_i32 = arith.constant 0 : i32
    %c0_i32_0 = arith.constant 0 : i32
    %c0_i32_1 = arith.constant 0 : i32
    return %c0_i32, %c0_i32_0 : i32, i32
  }
  func.func @transform_2(%arg0: i32) -> (i32, i32) {
    %c0_i32 = arith.constant 0 : i32
    %c0_i32_0 = arith.constant 0 : i32
    %c0_i32_1 = arith.constant 0 : i32
    return %c0_i32, %c0_i32_0 : i32, i32
  }
  func.func @transform_3(%arg0: i32) -> (i32, i32) {
    %c0_i32 = arith.constant 0 : i32
    %c0_i32_0 = arith.constant 0 : i32
    %c0_i32_1 = arith.constant 0 : i32
    return %c0_i32, %c0_i32_0 : i32, i32
  }
  func.func @transform_4(%arg0: i32) -> (i32, i32) {
    %c0_i32 = arith.constant 0 : i32
    %c0_i32_0 = arith.constant 0 : i32
    %c0_i32_1 = arith.constant 0 : i32
    return %c0_i32, %c0_i32_0 : i32, i32
  }
  func.func @transform_5(%arg0: i32) -> (i32, i32) {
    %c0_i32 = arith.constant 0 : i32
    %c0_i32_0 = arith.constant 0 : i32
    %c0_i32_1 = arith.constant 0 : i32
    return %c0_i32, %c0_i32_0 : i32, i32
  }
  func.func @transform_6(%arg0: i32) -> (i32, i32) {
    %c0_i32 = arith.constant 0 : i32
    %c0_i32_0 = arith.constant 0 : i32
    return %arg0, %c0_i32 : i32, i32
  }
  func.func @transform_7(%arg0: i32) -> (i32, i32) {
    %c0_i32 = arith.constant 0 : i32
    %c0_i32_0 = arith.constant 0 : i32
    return %arg0, %c0_i32 : i32, i32
  }
  func.func @transform_8(%arg0: i32) -> (i32, i32) {
    %c0_i32 = arith.constant 0 : i32
    %c0_i32_0 = arith.constant 0 : i32
    return %arg0, %c0_i32 : i32, i32
  }
}

module attributes {stable_mosaic.version = 11 : i64} {
  func.func @_center_attn_kernel(%arg0: i32, %arg1: memref<1x8x8x32xf32, #tpu.memory_space<vmem>>, %arg2: memref<1x8x8x32xf32, #tpu.memory_space<vmem>>, %arg3: memref<1x8x8x32xf32, #tpu.memory_space<vmem>>, %arg4: memref<32x32xbf16, #tpu.memory_space<vmem>>, %arg5: memref<1x8x8x32xf32, #tpu.memory_space<vmem>>, %arg6: memref<10x17x32xf32, #tpu.memory_space<vmem>>, %arg7: memref<10x17x32xf32, #tpu.memory_space<vmem>>) attributes {dimension_semantics = [#tpu.dimension_semantics<parallel>], iteration_bounds = array<i64: 2>, scalar_prefetch = 0 : i64, scratch_operands = 2 : i64, tpu.core_type = #tpu.core_type<tc>, window_params = [{transform_indices = @transform_0, window_bounds = array<i64: 1, 8, 8, 32>}, {transform_indices = @transform_1, window_bounds = array<i64: 1, 8, 8, 32>}, {transform_indices = @transform_2, window_bounds = array<i64: 1, 8, 8, 32>}, {pipeline_mode = #tpu.pipeline_mode<synchronous>, transform_indices = @transform_3, window_bounds = array<i64: 32, 32>}, {transform_indices = @transform_4, window_bounds = array<i64: 1, 8, 8, 32>}]} {
    %cst = arith.constant 0.000000e+00 : f32
    %0 = vector.broadcast %cst : f32 to vector<10x17x32xf32>
    %c0 = arith.constant 0 : index
    %c0_0 = arith.constant 0 : index
    %c0_1 = arith.constant 0 : index
    %1 = vector.load %arg6[%c0, %c0_0, %c0_1] : memref<10x17x32xf32, #tpu.memory_space<vmem>>, vector<10x17x32xf32>
    tpu.vector_store %arg6[%c0, %c0_0, %c0_1], %0 {strides = array<i32>} : memref<10x17x32xf32, #tpu.memory_space<vmem>>, vector<10x17x32xf32>,
    %cst_2 = arith.constant 0.000000e+00 : f32
    %2 = vector.broadcast %cst_2 : f32 to vector<10x17x32xf32>
    %c0_3 = arith.constant 0 : index
    %c0_4 = arith.constant 0 : index
    %c0_5 = arith.constant 0 : index
    %3 = vector.load %arg7[%c0_3, %c0_4, %c0_5] : memref<10x17x32xf32, #tpu.memory_space<vmem>>, vector<10x17x32xf32>
    tpu.vector_store %arg7[%c0_3, %c0_4, %c0_5], %2 {strides = array<i32>} : memref<10x17x32xf32, #tpu.memory_space<vmem>>, vector<10x17x32xf32>,
    %c0_6 = arith.constant 0 : index
    %c0_7 = arith.constant 0 : index
    %c0_8 = arith.constant 0 : index
    %c0_9 = arith.constant 0 : index
    %4 = vector.load %arg2[%c0_6, %c0_7, %c0_8, %c0_9] : memref<1x8x8x32xf32, #tpu.memory_space<vmem>>, vector<1x8x8x32xf32>
    %5 = vector.shape_cast %4 : vector<1x8x8x32xf32> to vector<8x8x32xf32>
    %c1 = arith.constant 1 : index
    %c8 = arith.constant 8 : index
    %c0_10 = arith.constant 0 : index
    %6 = vector.load %arg6[%c1, %c8, %c0_10] : memref<10x17x32xf32, #tpu.memory_space<vmem>>, vector<8x8x32xf32>
    tpu.vector_store %arg6[%c1, %c8, %c0_10], %5 {strides = array<i32>} : memref<10x17x32xf32, #tpu.memory_space<vmem>>, vector<8x8x32xf32>,
    %c0_11 = arith.constant 0 : index
    %c0_12 = arith.constant 0 : index
    %c0_13 = arith.constant 0 : index
    %c0_14 = arith.constant 0 : index
    %7 = vector.load %arg3[%c0_11, %c0_12, %c0_13, %c0_14] : memref<1x8x8x32xf32, #tpu.memory_space<vmem>>, vector<1x8x8x32xf32>
    %8 = vector.shape_cast %7 : vector<1x8x8x32xf32> to vector<8x8x32xf32>
    %c1_15 = arith.constant 1 : index
    %c8_16 = arith.constant 8 : index
    %c0_17 = arith.constant 0 : index
    %9 = vector.load %arg7[%c1_15, %c8_16, %c0_17] : memref<10x17x32xf32, #tpu.memory_space<vmem>>, vector<8x8x32xf32>
    tpu.vector_store %arg7[%c1_15, %c8_16, %c0_17], %8 {strides = array<i32>} : memref<10x17x32xf32, #tpu.memory_space<vmem>>, vector<8x8x32xf32>,
    %c0_18 = arith.constant 0 : index
    %c0_19 = arith.constant 0 : index
    %c0_20 = arith.constant 0 : index
    %c0_21 = arith.constant 0 : index
    %10 = vector.load %arg1[%c0_18, %c0_19, %c0_20, %c0_21] : memref<1x8x8x32xf32, #tpu.memory_space<vmem>>, vector<1x8x8x32xf32>
    %11 = vector.shape_cast %10 : vector<1x8x8x32xf32> to vector<8x8x32xf32>
    %12 = vector.shape_cast %11 : vector<8x8x32xf32> to vector<64x32xf32>
    %cst_22 = arith.constant 0.353553385 : f32
    %13 = vector.broadcast %cst_22 : f32 to vector<64x32xf32>
    %14 = arith.mulf %12, %13 : vector<64x32xf32>
    %c0_23 = arith.constant 0 : index
    %c0_24 = arith.constant 0 : index
    %15 = vector.load %arg4[%c0_23, %c0_24] : memref<32x32xbf16, #tpu.memory_space<vmem>>, vector<32x32xbf16>
    %c0_25 = arith.constant 0 : index
    %c7 = arith.constant 7 : index
    %c0_26 = arith.constant 0 : index
    %16 = vector.load %arg6[%c0_25, %c7, %c0_26] : memref<10x17x32xf32, #tpu.memory_space<vmem>>, vector<8x8x32xf32>
    %17 = vector.shape_cast %16 : vector<8x8x32xf32> to vector<64x32xf32>
    %18 = arith.mulf %14, %17 : vector<64x32xf32>
    %19 = arith.truncf %18 : vector<64x32xf32> to vector<64x32xbf16>
    %cst_27 = arith.constant dense<0.000000e+00> : vector<64x32xf32>
    %20 = tpu.matmul %19, %15, %cst_27 {dimension_numbers = #tpu.dot_dimension_numbers<[1], [0], [0], [1], [0, 0, 1, 1], [], []>} : vector<64x32xbf16>, vector<32x32xbf16>, vector<64x32xf32> -> vector<64x32xf32>
    %c0_28 = arith.constant 0 : index
    %c8_29 = arith.constant 8 : index
    %c0_30 = arith.constant 0 : index
    %21 = vector.load %arg6[%c0_28, %c8_29, %c0_30] : memref<10x17x32xf32, #tpu.memory_space<vmem>>, vector<8x8x32xf32>
    %22 = vector.shape_cast %21 : vector<8x8x32xf32> to vector<64x32xf32>
    %23 = arith.mulf %14, %22 : vector<64x32xf32>
    %24 = arith.truncf %23 : vector<64x32xf32> to vector<64x32xbf16>
    %cst_31 = arith.constant dense<0.000000e+00> : vector<64x32xf32>
    %25 = tpu.matmul %24, %15, %cst_31 {dimension_numbers = #tpu.dot_dimension_numbers<[1], [0], [0], [1], [0, 0, 1, 1], [], []>} : vector<64x32xbf16>, vector<32x32xbf16>, vector<64x32xf32> -> vector<64x32xf32>
    %c0_32 = arith.constant 0 : index
    %c9 = arith.constant 9 : index
    %c0_33 = arith.constant 0 : index
    %26 = vector.load %arg6[%c0_32, %c9, %c0_33] : memref<10x17x32xf32, #tpu.memory_space<vmem>>, vector<8x8x32xf32>
    %27 = vector.shape_cast %26 : vector<8x8x32xf32> to vector<64x32xf32>
    %28 = arith.mulf %14, %27 : vector<64x32xf32>
    %29 = arith.truncf %28 : vector<64x32xf32> to vector<64x32xbf16>
    %cst_34 = arith.constant dense<0.000000e+00> : vector<64x32xf32>
    %30 = tpu.matmul %29, %15, %cst_34 {dimension_numbers = #tpu.dot_dimension_numbers<[1], [0], [0], [1], [0, 0, 1, 1], [], []>} : vector<64x32xbf16>, vector<32x32xbf16>, vector<64x32xf32> -> vector<64x32xf32>
    %c1_35 = arith.constant 1 : index
    %c7_36 = arith.constant 7 : index
    %c0_37 = arith.constant 0 : index
    %31 = vector.load %arg6[%c1_35, %c7_36, %c0_37] : memref<10x17x32xf32, #tpu.memory_space<vmem>>, vector<8x8x32xf32>
    %32 = vector.shape_cast %31 : vector<8x8x32xf32> to vector<64x32xf32>
    %33 = arith.mulf %14, %32 : vector<64x32xf32>
    %34 = arith.truncf %33 : vector<64x32xf32> to vector<64x32xbf16>
    %cst_38 = arith.constant dense<0.000000e+00> : vector<64x32xf32>
    %35 = tpu.matmul %34, %15, %cst_38 {dimension_numbers = #tpu.dot_dimension_numbers<[1], [0], [0], [1], [0, 0, 1, 1], [], []>} : vector<64x32xbf16>, vector<32x32xbf16>, vector<64x32xf32> -> vector<64x32xf32>
    %c1_39 = arith.constant 1 : index
    %c8_40 = arith.constant 8 : index
    %c0_41 = arith.constant 0 : index
    %36 = vector.load %arg6[%c1_39, %c8_40, %c0_41] : memref<10x17x32xf32, #tpu.memory_space<vmem>>, vector<8x8x32xf32>
    %37 = vector.shape_cast %36 : vector<8x8x32xf32> to vector<64x32xf32>
    %38 = arith.mulf %14, %37 : vector<64x32xf32>
    %39 = arith.truncf %38 : vector<64x32xf32> to vector<64x32xbf16>
    %cst_42 = arith.constant dense<0.000000e+00> : vector<64x32xf32>
    %40 = tpu.matmul %39, %15, %cst_42 {dimension_numbers = #tpu.dot_dimension_numbers<[1], [0], [0], [1], [0, 0, 1, 1], [], []>} : vector<64x32xbf16>, vector<32x32xbf16>, vector<64x32xf32> -> vector<64x32xf32>
    %c1_43 = arith.constant 1 : index
    %c9_44 = arith.constant 9 : index
    %c0_45 = arith.constant 0 : index
    %41 = vector.load %arg6[%c1_43, %c9_44, %c0_45] : memref<10x17x32xf32, #tpu.memory_space<vmem>>, vector<8x8x32xf32>
    %42 = vector.shape_cast %41 : vector<8x8x32xf32> to vector<64x32xf32>
    %43 = arith.mulf %14, %42 : vector<64x32xf32>
    %44 = arith.truncf %43 : vector<64x32xf32> to vector<64x32xbf16>
    %cst_46 = arith.constant dense<0.000000e+00> : vector<64x32xf32>
    %45 = tpu.matmul %44, %15, %cst_46 {dimension_numbers = #tpu.dot_dimension_numbers<[1], [0], [0], [1], [0, 0, 1, 1], [], []>} : vector<64x32xbf16>, vector<32x32xbf16>, vector<64x32xf32> -> vector<64x32xf32>
    %c2 = arith.constant 2 : index
    %c7_47 = arith.constant 7 : index
    %c0_48 = arith.constant 0 : index
    %46 = vector.load %arg6[%c2, %c7_47, %c0_48] : memref<10x17x32xf32, #tpu.memory_space<vmem>>, vector<8x8x32xf32>
    %47 = vector.shape_cast %46 : vector<8x8x32xf32> to vector<64x32xf32>
    %48 = arith.mulf %14, %47 : vector<64x32xf32>
    %49 = arith.truncf %48 : vector<64x32xf32> to vector<64x32xbf16>
    %cst_49 = arith.constant dense<0.000000e+00> : vector<64x32xf32>
    %50 = tpu.matmul %49, %15, %cst_49 {dimension_numbers = #tpu.dot_dimension_numbers<[1], [0], [0], [1], [0, 0, 1, 1], [], []>} : vector<64x32xbf16>, vector<32x32xbf16>, vector<64x32xf32> -> vector<64x32xf32>
    %c2_50 = arith.constant 2 : index
    %c8_51 = arith.constant 8 : index
    %c0_52 = arith.constant 0 : index
    %51 = vector.load %arg6[%c2_50, %c8_51, %c0_52] : memref<10x17x32xf32, #tpu.memory_space<vmem>>, vector<8x8x32xf32>
    %52 = vector.shape_cast %51 : vector<8x8x32xf32> to vector<64x32xf32>
    %53 = arith.mulf %14, %52 : vector<64x32xf32>
    %54 = arith.truncf %53 : vector<64x32xf32> to vector<64x32xbf16>
    %cst_53 = arith.constant dense<0.000000e+00> : vector<64x32xf32>
    %55 = tpu.matmul %54, %15, %cst_53 {dimension_numbers = #tpu.dot_dimension_numbers<[1], [0], [0], [1], [0, 0, 1, 1], [], []>} : vector<64x32xbf16>, vector<32x32xbf16>, vector<64x32xf32> -> vector<64x32xf32>
    %c2_54 = arith.constant 2 : index
    %c9_55 = arith.constant 9 : index
    %c0_56 = arith.constant 0 : index
    %56 = vector.load %arg6[%c2_54, %c9_55, %c0_56] : memref<10x17x32xf32, #tpu.memory_space<vmem>>, vector<8x8x32xf32>
    %57 = vector.shape_cast %56 : vector<8x8x32xf32> to vector<64x32xf32>
    %58 = arith.mulf %14, %57 : vector<64x32xf32>
    %59 = arith.truncf %58 : vector<64x32xf32> to vector<64x32xbf16>
    %cst_57 = arith.constant dense<0.000000e+00> : vector<64x32xf32>
    %60 = tpu.matmul %59, %15, %cst_57 {dimension_numbers = #tpu.dot_dimension_numbers<[1], [0], [0], [1], [0, 0, 1, 1], [], []>} : vector<64x32xbf16>, vector<32x32xbf16>, vector<64x32xf32> -> vector<64x32xf32>
    %61 = arith.maximumf %20, %25 : vector<64x32xf32>
    %62 = arith.maximumf %61, %30 : vector<64x32xf32>
    %63 = arith.maximumf %62, %35 : vector<64x32xf32>
    %64 = arith.maximumf %63, %40 : vector<64x32xf32>
    %65 = arith.maximumf %64, %45 : vector<64x32xf32>
    %66 = arith.maximumf %65, %50 : vector<64x32xf32>
    %67 = arith.maximumf %66, %55 : vector<64x32xf32>
    %68 = arith.maximumf %67, %60 : vector<64x32xf32>
    %cst_58 = arith.constant 0.000000e+00 : f32
    %69 = vector.broadcast %cst_58 : f32 to vector<64x32xf32>
    %cst_59 = arith.constant 0.000000e+00 : f32
    %70 = vector.broadcast %cst_59 : f32 to vector<64x32xf32>
    %71 = arith.subf %20, %68 : vector<64x32xf32>
    %72 = math.exp %71 : vector<64x32xf32>
    %73 = arith.addf %69, %72 : vector<64x32xf32>
    %c0_60 = arith.constant 0 : index
    %c7_61 = arith.constant 7 : index
    %c0_62 = arith.constant 0 : index
    %74 = vector.load %arg7[%c0_60, %c7_61, %c0_62] : memref<10x17x32xf32, #tpu.memory_space<vmem>>, vector<8x8x32xf32>
    %75 = vector.shape_cast %74 : vector<8x8x32xf32> to vector<64x32xf32>
    %76 = arith.mulf %72, %75 : vector<64x32xf32>
    %77 = arith.addf %70, %76 : vector<64x32xf32>
    %78 = arith.subf %25, %68 : vector<64x32xf32>
    %79 = math.exp %78 : vector<64x32xf32>
    %80 = arith.addf %73, %79 : vector<64x32xf32>
    %c0_63 = arith.constant 0 : index
    %c8_64 = arith.constant 8 : index
    %c0_65 = arith.constant 0 : index
    %81 = vector.load %arg7[%c0_63, %c8_64, %c0_65] : memref<10x17x32xf32, #tpu.memory_space<vmem>>, vector<8x8x32xf32>
    %82 = vector.shape_cast %81 : vector<8x8x32xf32> to vector<64x32xf32>
    %83 = arith.mulf %79, %82 : vector<64x32xf32>
    %84 = arith.addf %77, %83 : vector<64x32xf32>
    %85 = arith.subf %30, %68 : vector<64x32xf32>
    %86 = math.exp %85 : vector<64x32xf32>
    %87 = arith.addf %80, %86 : vector<64x32xf32>
    %c0_66 = arith.constant 0 : index
    %c9_67 = arith.constant 9 : index
    %c0_68 = arith.constant 0 : index
    %88 = vector.load %arg7[%c0_66, %c9_67, %c0_68] : memref<10x17x32xf32, #tpu.memory_space<vmem>>, vector<8x8x32xf32>
    %89 = vector.shape_cast %88 : vector<8x8x32xf32> to vector<64x32xf32>
    %90 = arith.mulf %86, %89 : vector<64x32xf32>
    %91 = arith.addf %84, %90 : vector<64x32xf32>
    %92 = arith.subf %35, %68 : vector<64x32xf32>
    %93 = math.exp %92 : vector<64x32xf32>
    %94 = arith.addf %87, %93 : vector<64x32xf32>
    %c1_69 = arith.constant 1 : index
    %c7_70 = arith.constant 7 : index
    %c0_71 = arith.constant 0 : index
    %95 = vector.load %arg7[%c1_69, %c7_70, %c0_71] : memref<10x17x32xf32, #tpu.memory_space<vmem>>, vector<8x8x32xf32>
    %96 = vector.shape_cast %95 : vector<8x8x32xf32> to vector<64x32xf32>
    %97 = arith.mulf %93, %96 : vector<64x32xf32>
    %98 = arith.addf %91, %97 : vector<64x32xf32>
    %99 = arith.subf %40, %68 : vector<64x32xf32>
    %100 = math.exp %99 : vector<64x32xf32>
    %101 = arith.addf %94, %100 : vector<64x32xf32>
    %c1_72 = arith.constant 1 : index
    %c8_73 = arith.constant 8 : index
    %c0_74 = arith.constant 0 : index
    %102 = vector.load %arg7[%c1_72, %c8_73, %c0_74] : memref<10x17x32xf32, #tpu.memory_space<vmem>>, vector<8x8x32xf32>
    %103 = vector.shape_cast %102 : vector<8x8x32xf32> to vector<64x32xf32>
    %104 = arith.mulf %100, %103 : vector<64x32xf32>
    %105 = arith.addf %98, %104 : vector<64x32xf32>
    %106 = arith.subf %45, %68 : vector<64x32xf32>
    %107 = math.exp %106 : vector<64x32xf32>
    %108 = arith.addf %101, %107 : vector<64x32xf32>
    %c1_75 = arith.constant 1 : index
    %c9_76 = arith.constant 9 : index
    %c0_77 = arith.constant 0 : index
    %109 = vector.load %arg7[%c1_75, %c9_76, %c0_77] : memref<10x17x32xf32, #tpu.memory_space<vmem>>, vector<8x8x32xf32>
    %110 = vector.shape_cast %109 : vector<8x8x32xf32> to vector<64x32xf32>
    %111 = arith.mulf %107, %110 : vector<64x32xf32>
    %112 = arith.addf %105, %111 : vector<64x32xf32>
    %113 = arith.subf %50, %68 : vector<64x32xf32>
    %114 = math.exp %113 : vector<64x32xf32>
    %115 = arith.addf %108, %114 : vector<64x32xf32>
    %c2_78 = arith.constant 2 : index
    %c7_79 = arith.constant 7 : index
    %c0_80 = arith.constant 0 : index
    %116 = vector.load %arg7[%c2_78, %c7_79, %c0_80] : memref<10x17x32xf32, #tpu.memory_space<vmem>>, vector<8x8x32xf32>
    %117 = vector.shape_cast %116 : vector<8x8x32xf32> to vector<64x32xf32>
    %118 = arith.mulf %114, %117 : vector<64x32xf32>
    %119 = arith.addf %112, %118 : vector<64x32xf32>
    %120 = arith.subf %55, %68 : vector<64x32xf32>
    %121 = math.exp %120 : vector<64x32xf32>
    %122 = arith.addf %115, %121 : vector<64x32xf32>
    %c2_81 = arith.constant 2 : index
    %c8_82 = arith.constant 8 : index
    %c0_83 = arith.constant 0 : index
    %123 = vector.load %arg7[%c2_81, %c8_82, %c0_83] : memref<10x17x32xf32, #tpu.memory_space<vmem>>, vector<8x8x32xf32>
    %124 = vector.shape_cast %123 : vector<8x8x32xf32> to vector<64x32xf32>
    %125 = arith.mulf %121, %124 : vector<64x32xf32>
    %126 = arith.addf %119, %125 : vector<64x32xf32>
    %127 = arith.subf %60, %68 : vector<64x32xf32>
    %128 = math.exp %127 : vector<64x32xf32>
    %129 = arith.addf %122, %128 : vector<64x32xf32>
    %c2_84 = arith.constant 2 : index
    %c9_85 = arith.constant 9 : index
    %c0_86 = arith.constant 0 : index
    %130 = vector.load %arg7[%c2_84, %c9_85, %c0_86] : memref<10x17x32xf32, #tpu.memory_space<vmem>>, vector<8x8x32xf32>
    %131 = vector.shape_cast %130 : vector<8x8x32xf32> to vector<64x32xf32>
    %132 = arith.mulf %128, %131 : vector<64x32xf32>
    %133 = arith.addf %126, %132 : vector<64x32xf32>
    %134 = tpu.reciprocal %129 {approx = true} : vector<64x32xf32> -> vector<64x32xf32>
    %135 = arith.mulf %133, %134 : vector<64x32xf32>
    %136 = vector.shape_cast %135 : vector<64x32xf32> to vector<8x8x32xf32>
    %c0_87 = arith.constant 0 : index
    %c0_88 = arith.constant 0 : index
    %c0_89 = arith.constant 0 : index
    %c0_90 = arith.constant 0 : index
    %137 = vector.load %arg5[%c0_87, %c0_88, %c0_89, %c0_90] : memref<1x8x8x32xf32, #tpu.memory_space<vmem>>, vector<1x8x8x32xf32>
    %138 = vector.shape_cast %137 : vector<1x8x8x32xf32> to vector<8x8x32xf32>
    %139 = vector.shape_cast %136 : vector<8x8x32xf32> to vector<1x8x8x32xf32>
    tpu.vector_store %arg5[%c0_87, %c0_88, %c0_89, %c0_90], %139 {strides = array<i32>} : memref<1x8x8x32xf32, #tpu.memory_space<vmem>>, vector<1x8x8x32xf32>,
    return
  }
  func.func @transform_0(%arg0: i32) -> (i32, i32, i32, i32) {
    %c0_i32 = arith.constant 0 : i32
    %c0_i32_0 = arith.constant 0 : i32
    %c0_i32_1 = arith.constant 0 : i32
    %c0_i32_2 = arith.constant 0 : i32
    return %arg0, %c0_i32, %c0_i32_0, %c0_i32_1 : i32, i32, i32, i32
  }
  func.func @transform_1(%arg0: i32) -> (i32, i32, i32, i32) {
    %c0_i32 = arith.constant 0 : i32
    %c0_i32_0 = arith.constant 0 : i32
    %c0_i32_1 = arith.constant 0 : i32
    %c0_i32_2 = arith.constant 0 : i32
    return %arg0, %c0_i32, %c0_i32_0, %c0_i32_1 : i32, i32, i32, i32
  }
  func.func @transform_2(%arg0: i32) -> (i32, i32, i32, i32) {
    %c0_i32 = arith.constant 0 : i32
    %c0_i32_0 = arith.constant 0 : i32
    %c0_i32_1 = arith.constant 0 : i32
    %c0_i32_2 = arith.constant 0 : i32
    return %arg0, %c0_i32, %c0_i32_0, %c0_i32_1 : i32, i32, i32, i32
  }
  func.func @transform_3(%arg0: i32) -> (i32, i32) {
    %c0_i32 = arith.constant 0 : i32
    %c0_i32_0 = arith.constant 0 : i32
    %c0_i32_1 = arith.constant 0 : i32
    return %c0_i32, %c0_i32_0 : i32, i32
  }
  func.func @transform_4(%arg0: i32) -> (i32, i32, i32, i32) {
    %c0_i32 = arith.constant 0 : i32
    %c0_i32_0 = arith.constant 0 : i32
    %c0_i32_1 = arith.constant 0 : i32
    %c0_i32_2 = arith.constant 0 : i32
    return %arg0, %c0_i32, %c0_i32_0, %c0_i32_1 : i32, i32, i32, i32
  }
}

module attributes {stable_mosaic.version = 11 : i64} {
  func.func @_linear_res_kernel(%arg0: i32, %arg1: memref<64x32xf32, #tpu.memory_space<vmem>>, %arg2: memref<32x32xbf16, #tpu.memory_space<vmem>>, %arg3: memref<1x32xf32, #tpu.memory_space<vmem>>, %arg4: memref<64x32xf32, #tpu.memory_space<vmem>>, %arg5: memref<64x32xf32, #tpu.memory_space<vmem>>) attributes {dimension_semantics = [#tpu.dimension_semantics<parallel>], iteration_bounds = array<i64: 2>, scalar_prefetch = 0 : i64, scratch_operands = 0 : i64, tpu.core_type = #tpu.core_type<tc>, window_params = [{transform_indices = @transform_0, window_bounds = array<i64: 64, 32>}, {pipeline_mode = #tpu.pipeline_mode<synchronous>, transform_indices = @transform_1, window_bounds = array<i64: 32, 32>}, {pipeline_mode = #tpu.pipeline_mode<synchronous>, transform_indices = @transform_2, window_bounds = array<i64: 1, 32>}, {transform_indices = @transform_3, window_bounds = array<i64: 64, 32>}, {transform_indices = @transform_4, window_bounds = array<i64: 64, 32>}]} {
    %c0 = arith.constant 0 : index
    %c0_0 = arith.constant 0 : index
    %0 = vector.load %arg1[%c0, %c0_0] : memref<64x32xf32, #tpu.memory_space<vmem>>, vector<64x32xf32>
    %1 = arith.truncf %0 : vector<64x32xf32> to vector<64x32xbf16>
    %c0_1 = arith.constant 0 : index
    %c0_2 = arith.constant 0 : index
    %2 = vector.load %arg2[%c0_1, %c0_2] : memref<32x32xbf16, #tpu.memory_space<vmem>>, vector<32x32xbf16>
    %cst = arith.constant dense<0.000000e+00> : vector<64x32xf32>
    %3 = tpu.matmul %1, %2, %cst {dimension_numbers = #tpu.dot_dimension_numbers<[1], [0], [0], [1], [0, 0, 1, 1], [], []>} : vector<64x32xbf16>, vector<32x32xbf16>, vector<64x32xf32> -> vector<64x32xf32>
    %c0_3 = arith.constant 0 : index
    %c0_4 = arith.constant 0 : index
    %4 = vector.load %arg3[%c0_3, %c0_4] : memref<1x32xf32, #tpu.memory_space<vmem>>, vector<1x32xf32>
    %5 = vector.broadcast %4 : vector<1x32xf32> to vector<64x32xf32>
    %6 = arith.addf %3, %5 : vector<64x32xf32>
    %c0_5 = arith.constant 0 : index
    %c0_6 = arith.constant 0 : index
    %7 = vector.load %arg4[%c0_5, %c0_6] : memref<64x32xf32, #tpu.memory_space<vmem>>, vector<64x32xf32>
    %8 = arith.addf %6, %7 : vector<64x32xf32>
    %c0_7 = arith.constant 0 : index
    %c0_8 = arith.constant 0 : index
    %9 = vector.load %arg5[%c0_7, %c0_8] : memref<64x32xf32, #tpu.memory_space<vmem>>, vector<64x32xf32>
    tpu.vector_store %arg5[%c0_7, %c0_8], %8 {strides = array<i32>} : memref<64x32xf32, #tpu.memory_space<vmem>>, vector<64x32xf32>,
    return
  }
  func.func @transform_0(%arg0: i32) -> (i32, i32) {
    %c0_i32 = arith.constant 0 : i32
    %c0_i32_0 = arith.constant 0 : i32
    return %arg0, %c0_i32 : i32, i32
  }
  func.func @transform_1(%arg0: i32) -> (i32, i32) {
    %c0_i32 = arith.constant 0 : i32
    %c0_i32_0 = arith.constant 0 : i32
    %c0_i32_1 = arith.constant 0 : i32
    return %c0_i32, %c0_i32_0 : i32, i32
  }
  func.func @transform_2(%arg0: i32) -> (i32, i32) {
    %c0_i32 = arith.constant 0 : i32
    %c0_i32_0 = arith.constant 0 : i32
    %c0_i32_1 = arith.constant 0 : i32
    return %c0_i32, %c0_i32_0 : i32, i32
  }
  func.func @transform_3(%arg0: i32) -> (i32, i32) {
    %c0_i32 = arith.constant 0 : i32
    %c0_i32_0 = arith.constant 0 : i32
    return %arg0, %c0_i32 : i32, i32
  }
  func.func @transform_4(%arg0: i32) -> (i32, i32) {
    %c0_i32 = arith.constant 0 : i32
    %c0_i32_0 = arith.constant 0 : i32
    return %arg0, %c0_i32 : i32, i32
  }
}

module attributes {stable_mosaic.version = 11 : i64} {
  func.func @_mlp_kernel(%arg0: i32, %arg1: memref<1x8x8x32xf32, #tpu.memory_space<vmem>>, %arg2: memref<1x32xf32, #tpu.memory_space<vmem>>, %arg3: memref<1x32xf32, #tpu.memory_space<vmem>>, %arg4: memref<32x128xbf16, #tpu.memory_space<vmem>>, %arg5: memref<1x128xf32, #tpu.memory_space<vmem>>, %arg6: memref<9x128xf32, #tpu.memory_space<vmem>>, %arg7: memref<1x128xf32, #tpu.memory_space<vmem>>, %arg8: memref<128x32xbf16, #tpu.memory_space<vmem>>, %arg9: memref<1x32xf32, #tpu.memory_space<vmem>>, %arg10: memref<1x8x8x32xf32, #tpu.memory_space<vmem>>, %arg11: memref<10x17x128xf32, #tpu.memory_space<vmem>>) attributes {dimension_semantics = [#tpu.dimension_semantics<parallel>], iteration_bounds = array<i64: 2>, scalar_prefetch = 0 : i64, scratch_operands = 1 : i64, tpu.core_type = #tpu.core_type<tc>, window_params = [{transform_indices = @transform_0, window_bounds = array<i64: 1, 8, 8, 32>}, {pipeline_mode = #tpu.pipeline_mode<synchronous>, transform_indices = @transform_1, window_bounds = array<i64: 1, 32>}, {pipeline_mode = #tpu.pipeline_mode<synchronous>, transform_indices = @transform_2, window_bounds = array<i64: 1, 32>}, {pipeline_mode = #tpu.pipeline_mode<synchronous>, transform_indices = @transform_3, window_bounds = array<i64: 32, 128>}, {pipeline_mode = #tpu.pipeline_mode<synchronous>, transform_indices = @transform_4, window_bounds = array<i64: 1, 128>}, {pipeline_mode = #tpu.pipeline_mode<synchronous>, transform_indices = @transform_5, window_bounds = array<i64: 9, 128>}, {pipeline_mode = #tpu.pipeline_mode<synchronous>, transform_indices = @transform_6, window_bounds = array<i64: 1, 128>}, {pipeline_mode = #tpu.pipeline_mode<synchronous>, transform_indices = @transform_7, window_bounds = array<i64: 128, 32>}, {pipeline_mode = #tpu.pipeline_mode<synchronous>, transform_indices = @transform_8, window_bounds = array<i64: 1, 32>}, {transform_indices = @transform_9, window_bounds = array<i64: 1, 8, 8, 32>}]} {
    %c0 = arith.constant 0 : index
    %c0_0 = arith.constant 0 : index
    %c0_1 = arith.constant 0 : index
    %c0_2 = arith.constant 0 : index
    %0 = vector.load %arg1[%c0, %c0_0, %c0_1, %c0_2] : memref<1x8x8x32xf32, #tpu.memory_space<vmem>>, vector<1x8x8x32xf32>
    %1 = vector.shape_cast %0 : vector<1x8x8x32xf32> to vector<8x8x32xf32>
    %2 = vector.shape_cast %1 : vector<8x8x32xf32> to vector<64x32xf32>
    %cst = arith.constant dense<0.000000e+00> : vector<64xf32>
    %3 = vector.multi_reduction <add>, %2, %cst [1] : vector<64x32xf32> to vector<64xf32>
    %4 = vector.shape_cast %3 : vector<64xf32> to vector<64x1xf32>
    %cst_3 = arith.constant 3.200000e+01 : f32
    %5 = vector.broadcast %cst_3 : f32 to vector<64x1xf32>
    %6 = arith.divf %4, %5 : vector<64x1xf32>
    %7 = vector.broadcast %6 : vector<64x1xf32> to vector<64x32xf32>
    %8 = arith.subf %2, %7 : vector<64x32xf32>
    %9 = arith.mulf %8, %8 : vector<64x32xf32>
    %cst_4 = arith.constant dense<0.000000e+00> : vector<64xf32>
    %10 = vector.multi_reduction <add>, %9, %cst_4 [1] : vector<64x32xf32> to vector<64xf32>
    %11 = vector.shape_cast %10 : vector<64xf32> to vector<64x1xf32>
    %cst_5 = arith.constant 3.200000e+01 : f32
    %12 = vector.broadcast %cst_5 : f32 to vector<64x1xf32>
    %13 = arith.divf %11, %12 : vector<64x1xf32>
    %14 = vector.broadcast %6 : vector<64x1xf32> to vector<64x32xf32>
    %15 = arith.subf %2, %14 : vector<64x32xf32>
    %cst_6 = arith.constant 9.99999974E-6 : f32
    %16 = vector.broadcast %cst_6 : f32 to vector<64x1xf32>
    %17 = arith.addf %13, %16 : vector<64x1xf32>
    %18 = math.rsqrt %17 : vector<64x1xf32>
    %19 = vector.broadcast %18 : vector<64x1xf32> to vector<64x32xf32>
    %20 = arith.mulf %15, %19 : vector<64x32xf32>
    %c0_7 = arith.constant 0 : index
    %c0_8 = arith.constant 0 : index
    %21 = vector.load %arg2[%c0_7, %c0_8] : memref<1x32xf32, #tpu.memory_space<vmem>>, vector<1x32xf32>
    %22 = vector.broadcast %21 : vector<1x32xf32> to vector<64x32xf32>
    %23 = arith.mulf %20, %22 : vector<64x32xf32>
    %c0_9 = arith.constant 0 : index
    %c0_10 = arith.constant 0 : index
    %24 = vector.load %arg3[%c0_9, %c0_10] : memref<1x32xf32, #tpu.memory_space<vmem>>, vector<1x32xf32>
    %25 = vector.broadcast %24 : vector<1x32xf32> to vector<64x32xf32>
    %26 = arith.addf %23, %25 : vector<64x32xf32>
    %27 = arith.truncf %26 : vector<64x32xf32> to vector<64x32xbf16>
    %c0_11 = arith.constant 0 : index
    %c0_12 = arith.constant 0 : index
    %28 = vector.load %arg4[%c0_11, %c0_12] : memref<32x128xbf16, #tpu.memory_space<vmem>>, vector<32x128xbf16>
    %cst_13 = arith.constant dense<0.000000e+00> : vector<64x128xf32>
    %29 = tpu.matmul %27, %28, %cst_13 {dimension_numbers = #tpu.dot_dimension_numbers<[1], [0], [0], [1], [0, 0, 1, 1], [], []>} : vector<64x32xbf16>, vector<32x128xbf16>, vector<64x128xf32> -> vector<64x128xf32>
    %c0_14 = arith.constant 0 : index
    %c0_15 = arith.constant 0 : index
    %30 = vector.load %arg5[%c0_14, %c0_15] : memref<1x128xf32, #tpu.memory_space<vmem>>, vector<1x128xf32>
    %31 = vector.broadcast %30 : vector<1x128xf32> to vector<64x128xf32>
    %32 = arith.addf %29, %31 : vector<64x128xf32>
    %cst_16 = arith.constant 0.000000e+00 : f32
    %33 = vector.broadcast %cst_16 : f32 to vector<10x17x128xf32>
    %c0_17 = arith.constant 0 : index
    %c0_18 = arith.constant 0 : index
    %c0_19 = arith.constant 0 : index
    %34 = vector.load %arg11[%c0_17, %c0_18, %c0_19] : memref<10x17x128xf32, #tpu.memory_space<vmem>>, vector<10x17x128xf32>
    tpu.vector_store %arg11[%c0_17, %c0_18, %c0_19], %33 {strides = array<i32>} : memref<10x17x128xf32, #tpu.memory_space<vmem>>, vector<10x17x128xf32>,
    %35 = vector.shape_cast %32 : vector<64x128xf32> to vector<8x8x128xf32>
    %c1 = arith.constant 1 : index
    %c8 = arith.constant 8 : index
    %c0_20 = arith.constant 0 : index
    %36 = vector.load %arg11[%c1, %c8, %c0_20] : memref<10x17x128xf32, #tpu.memory_space<vmem>>, vector<8x8x128xf32>
    tpu.vector_store %arg11[%c1, %c8, %c0_20], %35 {strides = array<i32>} : memref<10x17x128xf32, #tpu.memory_space<vmem>>, vector<8x8x128xf32>,
    %c0_21 = arith.constant 0 : index
    %c0_22 = arith.constant 0 : index
    %37 = vector.load %arg7[%c0_21, %c0_22] : memref<1x128xf32, #tpu.memory_space<vmem>>, vector<1x128xf32>
    %38 = vector.shape_cast %37 : vector<1x128xf32> to vector<1x1x128xf32>
    %39 = vector.shape_cast %38 : vector<1x1x128xf32> to vector<1x1x128xf32>
    %40 = vector.broadcast %39 : vector<1x1x128xf32> to vector<8x8x128xf32>
    %c0_23 = arith.constant 0 : index
    %c0_24 = arith.constant 0 : index
    %41 = vector.load %arg6[%c0_23, %c0_24] : memref<9x128xf32, #tpu.memory_space<vmem>>, vector<1x128xf32>
    %42 = vector.shape_cast %41 : vector<1x128xf32> to vector<128xf32>
    %43 = vector.shape_cast %42 : vector<128xf32> to vector<1x1x128xf32>
    %c0_25 = arith.constant 0 : index
    %c7 = arith.constant 7 : index
    %c0_26 = arith.constant 0 : index
    %44 = vector.load %arg11[%c0_25, %c7, %c0_26] : memref<10x17x128xf32, #tpu.memory_space<vmem>>, vector<8x8x128xf32>
    %45 = vector.broadcast %43 : vector<1x1x128xf32> to vector<8x8x128xf32>
    %46 = arith.mulf %44, %45 : vector<8x8x128xf32>
    %47 = arith.addf %40, %46 : vector<8x8x128xf32>
    %c1_27 = arith.constant 1 : index
    %c0_28 = arith.constant 0 : index
    %48 = vector.load %arg6[%c1_27, %c0_28] : memref<9x128xf32, #tpu.memory_space<vmem>>, vector<1x128xf32>
    %49 = vector.shape_cast %48 : vector<1x128xf32> to vector<128xf32>
    %50 = vector.shape_cast %49 : vector<128xf32> to vector<1x1x128xf32>
    %c0_29 = arith.constant 0 : index
    %c8_30 = arith.constant 8 : index
    %c0_31 = arith.constant 0 : index
    %51 = vector.load %arg11[%c0_29, %c8_30, %c0_31] : memref<10x17x128xf32, #tpu.memory_space<vmem>>, vector<8x8x128xf32>
    %52 = vector.broadcast %50 : vector<1x1x128xf32> to vector<8x8x128xf32>
    %53 = arith.mulf %51, %52 : vector<8x8x128xf32>
    %54 = arith.addf %47, %53 : vector<8x8x128xf32>
    %c2 = arith.constant 2 : index
    %c0_32 = arith.constant 0 : index
    %55 = vector.load %arg6[%c2, %c0_32] : memref<9x128xf32, #tpu.memory_space<vmem>>, vector<1x128xf32>
    %56 = vector.shape_cast %55 : vector<1x128xf32> to vector<128xf32>
    %57 = vector.shape_cast %56 : vector<128xf32> to vector<1x1x128xf32>
    %c0_33 = arith.constant 0 : index
    %c9 = arith.constant 9 : index
    %c0_34 = arith.constant 0 : index
    %58 = vector.load %arg11[%c0_33, %c9, %c0_34] : memref<10x17x128xf32, #tpu.memory_space<vmem>>, vector<8x8x128xf32>
    %59 = vector.broadcast %57 : vector<1x1x128xf32> to vector<8x8x128xf32>
    %60 = arith.mulf %58, %59 : vector<8x8x128xf32>
    %61 = arith.addf %54, %60 : vector<8x8x128xf32>
    %c3 = arith.constant 3 : index
    %c0_35 = arith.constant 0 : index
    %62 = vector.load %arg6[%c3, %c0_35] : memref<9x128xf32, #tpu.memory_space<vmem>>, vector<1x128xf32>
    %63 = vector.shape_cast %62 : vector<1x128xf32> to vector<128xf32>
    %64 = vector.shape_cast %63 : vector<128xf32> to vector<1x1x128xf32>
    %c1_36 = arith.constant 1 : index
    %c7_37 = arith.constant 7 : index
    %c0_38 = arith.constant 0 : index
    %65 = vector.load %arg11[%c1_36, %c7_37, %c0_38] : memref<10x17x128xf32, #tpu.memory_space<vmem>>, vector<8x8x128xf32>
    %66 = vector.broadcast %64 : vector<1x1x128xf32> to vector<8x8x128xf32>
    %67 = arith.mulf %65, %66 : vector<8x8x128xf32>
    %68 = arith.addf %61, %67 : vector<8x8x128xf32>
    %c4 = arith.constant 4 : index
    %c0_39 = arith.constant 0 : index
    %69 = vector.load %arg6[%c4, %c0_39] : memref<9x128xf32, #tpu.memory_space<vmem>>, vector<1x128xf32>
    %70 = vector.shape_cast %69 : vector<1x128xf32> to vector<128xf32>
    %71 = vector.shape_cast %70 : vector<128xf32> to vector<1x1x128xf32>
    %c1_40 = arith.constant 1 : index
    %c8_41 = arith.constant 8 : index
    %c0_42 = arith.constant 0 : index
    %72 = vector.load %arg11[%c1_40, %c8_41, %c0_42] : memref<10x17x128xf32, #tpu.memory_space<vmem>>, vector<8x8x128xf32>
    %73 = vector.broadcast %71 : vector<1x1x128xf32> to vector<8x8x128xf32>
    %74 = arith.mulf %72, %73 : vector<8x8x128xf32>
    %75 = arith.addf %68, %74 : vector<8x8x128xf32>
    %c5 = arith.constant 5 : index
    %c0_43 = arith.constant 0 : index
    %76 = vector.load %arg6[%c5, %c0_43] : memref<9x128xf32, #tpu.memory_space<vmem>>, vector<1x128xf32>
    %77 = vector.shape_cast %76 : vector<1x128xf32> to vector<128xf32>
    %78 = vector.shape_cast %77 : vector<128xf32> to vector<1x1x128xf32>
    %c1_44 = arith.constant 1 : index
    %c9_45 = arith.constant 9 : index
    %c0_46 = arith.constant 0 : index
    %79 = vector.load %arg11[%c1_44, %c9_45, %c0_46] : memref<10x17x128xf32, #tpu.memory_space<vmem>>, vector<8x8x128xf32>
    %80 = vector.broadcast %78 : vector<1x1x128xf32> to vector<8x8x128xf32>
    %81 = arith.mulf %79, %80 : vector<8x8x128xf32>
    %82 = arith.addf %75, %81 : vector<8x8x128xf32>
    %c6 = arith.constant 6 : index
    %c0_47 = arith.constant 0 : index
    %83 = vector.load %arg6[%c6, %c0_47] : memref<9x128xf32, #tpu.memory_space<vmem>>, vector<1x128xf32>
    %84 = vector.shape_cast %83 : vector<1x128xf32> to vector<128xf32>
    %85 = vector.shape_cast %84 : vector<128xf32> to vector<1x1x128xf32>
    %c2_48 = arith.constant 2 : index
    %c7_49 = arith.constant 7 : index
    %c0_50 = arith.constant 0 : index
    %86 = vector.load %arg11[%c2_48, %c7_49, %c0_50] : memref<10x17x128xf32, #tpu.memory_space<vmem>>, vector<8x8x128xf32>
    %87 = vector.broadcast %85 : vector<1x1x128xf32> to vector<8x8x128xf32>
    %88 = arith.mulf %86, %87 : vector<8x8x128xf32>
    %89 = arith.addf %82, %88 : vector<8x8x128xf32>
    %c7_51 = arith.constant 7 : index
    %c0_52 = arith.constant 0 : index
    %90 = vector.load %arg6[%c7_51, %c0_52] : memref<9x128xf32, #tpu.memory_space<vmem>>, vector<1x128xf32>
    %91 = vector.shape_cast %90 : vector<1x128xf32> to vector<128xf32>
    %92 = vector.shape_cast %91 : vector<128xf32> to vector<1x1x128xf32>
    %c2_53 = arith.constant 2 : index
    %c8_54 = arith.constant 8 : index
    %c0_55 = arith.constant 0 : index
    %93 = vector.load %arg11[%c2_53, %c8_54, %c0_55] : memref<10x17x128xf32, #tpu.memory_space<vmem>>, vector<8x8x128xf32>
    %94 = vector.broadcast %92 : vector<1x1x128xf32> to vector<8x8x128xf32>
    %95 = arith.mulf %93, %94 : vector<8x8x128xf32>
    %96 = arith.addf %89, %95 : vector<8x8x128xf32>
    %c8_56 = arith.constant 8 : index
    %c0_57 = arith.constant 0 : index
    %97 = vector.load %arg6[%c8_56, %c0_57] : memref<9x128xf32, #tpu.memory_space<vmem>>, vector<1x128xf32>
    %98 = vector.shape_cast %97 : vector<1x128xf32> to vector<128xf32>
    %99 = vector.shape_cast %98 : vector<128xf32> to vector<1x1x128xf32>
    %c2_58 = arith.constant 2 : index
    %c9_59 = arith.constant 9 : index
    %c0_60 = arith.constant 0 : index
    %100 = vector.load %arg11[%c2_58, %c9_59, %c0_60] : memref<10x17x128xf32, #tpu.memory_space<vmem>>, vector<8x8x128xf32>
    %101 = vector.broadcast %99 : vector<1x1x128xf32> to vector<8x8x128xf32>
    %102 = arith.mulf %100, %101 : vector<8x8x128xf32>
    %103 = arith.addf %96, %102 : vector<8x8x128xf32>
    %cst_61 = arith.constant 5.000000e-01 : f32
    %104 = vector.broadcast %cst_61 : f32 to vector<8x8x128xf32>
    %105 = arith.mulf %104, %103 : vector<8x8x128xf32>
    %cst_62 = arith.constant 0.707106769 : f32
    %106 = vector.broadcast %cst_62 : f32 to vector<8x8x128xf32>
    %107 = arith.mulf %103, %106 : vector<8x8x128xf32>
    %108 = math.erf %107 : vector<8x8x128xf32>
    %cst_63 = arith.constant 1.000000e+00 : f32
    %109 = vector.broadcast %cst_63 : f32 to vector<8x8x128xf32>
    %110 = arith.addf %109, %108 : vector<8x8x128xf32>
    %111 = arith.mulf %105, %110 : vector<8x8x128xf32>
    %112 = vector.shape_cast %111 : vector<8x8x128xf32> to vector<64x128xf32>
    %113 = arith.truncf %112 : vector<64x128xf32> to vector<64x128xbf16>
    %c0_64 = arith.constant 0 : index
    %c0_65 = arith.constant 0 : index
    %114 = vector.load %arg8[%c0_64, %c0_65] : memref<128x32xbf16, #tpu.memory_space<vmem>>, vector<128x32xbf16>
    %cst_66 = arith.constant dense<0.000000e+00> : vector<64x32xf32>
    %115 = tpu.matmul %113, %114, %cst_66 {dimension_numbers = #tpu.dot_dimension_numbers<[1], [0], [0], [1], [0, 0, 1, 1], [], []>} : vector<64x128xbf16>, vector<128x32xbf16>, vector<64x32xf32> -> vector<64x32xf32>
    %c0_67 = arith.constant 0 : index
    %c0_68 = arith.constant 0 : index
    %116 = vector.load %arg9[%c0_67, %c0_68] : memref<1x32xf32, #tpu.memory_space<vmem>>, vector<1x32xf32>
    %117 = vector.broadcast %116 : vector<1x32xf32> to vector<64x32xf32>
    %118 = arith.addf %115, %117 : vector<64x32xf32>
    %119 = arith.addf %118, %2 : vector<64x32xf32>
    %120 = vector.shape_cast %119 : vector<64x32xf32> to vector<8x8x32xf32>
    %c0_69 = arith.constant 0 : index
    %c0_70 = arith.constant 0 : index
    %c0_71 = arith.constant 0 : index
    %c0_72 = arith.constant 0 : index
    %121 = vector.load %arg10[%c0_69, %c0_70, %c0_71, %c0_72] : memref<1x8x8x32xf32, #tpu.memory_space<vmem>>, vector<1x8x8x32xf32>
    %122 = vector.shape_cast %121 : vector<1x8x8x32xf32> to vector<8x8x32xf32>
    %123 = vector.shape_cast %120 : vector<8x8x32xf32> to vector<1x8x8x32xf32>
    tpu.vector_store %arg10[%c0_69, %c0_70, %c0_71, %c0_72], %123 {strides = array<i32>} : memref<1x8x8x32xf32, #tpu.memory_space<vmem>>, vector<1x8x8x32xf32>,
    return
  }
  func.func @transform_0(%arg0: i32) -> (i32, i32, i32, i32) {
    %c0_i32 = arith.constant 0 : i32
    %c0_i32_0 = arith.constant 0 : i32
    %c0_i32_1 = arith.constant 0 : i32
    %c0_i32_2 = arith.constant 0 : i32
    return %arg0, %c0_i32, %c0_i32_0, %c0_i32_1 : i32, i32, i32, i32
  }
  func.func @transform_1(%arg0: i32) -> (i32, i32) {
    %c0_i32 = arith.constant 0 : i32
    %c0_i32_0 = arith.constant 0 : i32
    %c0_i32_1 = arith.constant 0 : i32
    return %c0_i32, %c0_i32_0 : i32, i32
  }
  func.func @transform_2(%arg0: i32) -> (i32, i32) {
    %c0_i32 = arith.constant 0 : i32
    %c0_i32_0 = arith.constant 0 : i32
    %c0_i32_1 = arith.constant 0 : i32
    return %c0_i32, %c0_i32_0 : i32, i32
  }
  func.func @transform_3(%arg0: i32) -> (i32, i32) {
    %c0_i32 = arith.constant 0 : i32
    %c0_i32_0 = arith.constant 0 : i32
    %c0_i32_1 = arith.constant 0 : i32
    return %c0_i32, %c0_i32_0 : i32, i32
  }
  func.func @transform_4(%arg0: i32) -> (i32, i32) {
    %c0_i32 = arith.constant 0 : i32
    %c0_i32_0 = arith.constant 0 : i32
    %c0_i32_1 = arith.constant 0 : i32
    return %c0_i32, %c0_i32_0 : i32, i32
  }
  func.func @transform_5(%arg0: i32) -> (i32, i32) {
    %c0_i32 = arith.constant 0 : i32
    %c0_i32_0 = arith.constant 0 : i32
    %c0_i32_1 = arith.constant 0 : i32
    return %c0_i32, %c0_i32_0 : i32, i32
  }
  func.func @transform_6(%arg0: i32) -> (i32, i32) {
    %c0_i32 = arith.constant 0 : i32
    %c0_i32_0 = arith.constant 0 : i32
    %c0_i32_1 = arith.constant 0 : i32
    return %c0_i32, %c0_i32_0 : i32, i32
  }
  func.func @transform_7(%arg0: i32) -> (i32, i32) {
    %c0_i32 = arith.constant 0 : i32
    %c0_i32_0 = arith.constant 0 : i32
    %c0_i32_1 = arith.constant 0 : i32
    return %c0_i32, %c0_i32_0 : i32, i32
  }
  func.func @transform_8(%arg0: i32) -> (i32, i32) {
    %c0_i32 = arith.constant 0 : i32
    %c0_i32_0 = arith.constant 0 : i32
    %c0_i32_1 = arith.constant 0 : i32
    return %c0_i32, %c0_i32_0 : i32, i32
  }
  func.func @transform_9(%arg0: i32) -> (i32, i32, i32, i32) {
    %c0_i32 = arith.constant 0 : i32
    %c0_i32_0 = arith.constant 0 : i32
    %c0_i32_1 = arith.constant 0 : i32
    %c0_i32_2 = arith.constant 0 : i32
    return %arg0, %c0_i32, %c0_i32_0, %c0_i32_1 : i32, i32, i32, i32
  }
}

</mosaic_0001>

<bundles_post_ra>
// kernel: block_pallas.6
= control target key start
LH: loop header
LB: loop body
LE: loop exit
PB: predicated region body
PF: predicated region fallthrough
CT: control target
= control target key end

     0   :  { %s465_s15 = smov 0   ;;  %s531_s0 = inlined_call_operand.vmem [shape: f32[128,32], index: 0, kind: input, shape index: {}]   ;;  %s532_s1 = inlined_call_operand.vmem [shape: bf16[32,32], index: 1, kind: input, shape index: {}]   ;;  %s533_s2 = inlined_call_operand.vmem [shape: f32[1,32], index: 2, kind: input, shape index: {}]   ;;  %s534_s3 = inlined_call_operand.vmem [shape: f32[128,32], index: 3, kind: input, shape index: {}]   ;;  %s535_s4 = inlined_call_operand.vmem [shape: f32[128,32], index: 4, kind: output, shape index: {}]  }
   0x1 LB: > { %s390_s16 = sadd.s32 4294967295, %s438_s15   ;;  %p394_p0 = scmp.ge.s32.totalorder %s438_s15, 1  ;;  %s438_s15 = sphi %s465_s15, %s14_s15  }
   0x2   : > { %p174_p1 = scmp.lt.s32.totalorder %s438_s15, 3 }
   0x4   : > { %p175_p2 = pnand %p394_p0, %p174_p1 }
   0x5   : > { %s395_s19 = sshll.u32 (!%p175_p2), %s390_s16, 3 }
   0x6   : > { %178 = sbr.rel (%p175_p2) target bundleno = 166 (0xa6), region = 36  ;;  %p206_p3 = scmp.lt.s32.totalorder (!%p175_p2), %s395_s19, 15 }
   0xb   : > { %v416_v0 = vld [vmem:[%s532_s1 + $0x8] sm:$0xff]  ;;  %v415_v1 = vld [vmem:[%s532_s1] sm:$0xff]  ;;  %s537_s19 = smov (!%p206_p3, %s395_s19), 15  ;;  %vm256_vm0 = vcmask 261120  }
   0xc   : > { %275 = vmatpush.bf16.msra.mxu0 %v416_v0  ;;  %417 = vmatpush.bf16.msra.mxu1 %v416_v0  ;;  %s479_s22 = sshll.u32 %s537_s19, 3  ;;  %v431_v14 = vld [vmem:[%s533_s2] ss:$0 sm:$0xff] }
   0xd   : > { %418 = vmatpush.bf16.msra.mxu2 %v416_v0  ;;  %419 = vmatpush.bf16.msra.mxu3 %v416_v0  ;;  %s209_s25 = scalar_lea.vmem %s531_s0, %s479_s22  ;;  %s493_s28 = scalar_lea.vmem %s534_s3, %s479_s22 }
   0xe   : > { %v224_v2 = vld [vmem:[%s209_s25] sm:$0xff]  ;;  %v225_v3 = vld [vmem:[%s209_s25 + $0x8] sm:$0xff]  ;;  %v226_v4 = vld [vmem:[%s209_s25 + $0x10] sm:$0xff]  ;;  %s504_s7 = scalar_lea.vmem %s535_s4, %s479_s22 }
   0xf   : > { %v232_v5 = vpack.c.bf16 %v225_v3, %v224_v2  ;;  %v227_v6 = vld [vmem:[%s209_s25 + $0x18] sm:$0xff]  ;;  %v228_v7 = vld [vmem:[%s209_s25 + $0x20] sm:$0xff]  ;;  %v229_v8 = vld [vmem:[%s209_s25 + $0x28] sm:$0xff] }
  0x10   : > { %276 = vmatpush.bf16.msra.mxu0 %v415_v1  ;;  %420 = vmatpush.bf16.msra.mxu1 %v415_v1  ;;  %v233_v9 = vpack.c.bf16 %v227_v6, %v226_v4  ;;  %v234_v10 = vpack.c.bf16 %v229_v8, %v228_v7  ;;  %v230_v11 = vld [vmem:[%s209_s25 + $0x30] sm:$0xff]  ;;  %v231_v12 = vld [vmem:[%s209_s25 + $0x38] sm:$0xff]  ;;  %v298_v16 = vld [vmem:[%s493_s28] sm:$0xff] }
  0x11   : > { %421 = vmatpush.bf16.msra.mxu2 %v415_v1  ;;  %422 = vmatpush.bf16.msra.mxu3 %v415_v1  ;;  %v235_v13 = vpack.c.bf16 %v231_v12, %v230_v11  ;;  %v300_v19 = vld [vmem:[%s493_s28 + $0x10] sm:$0xff]  ;;  %v302_v24 = vld [vmem:[%s493_s28 + $0x20] sm:$0xff]  ;;  %v299_v29 = vld [vmem:[%s493_s28 + $0x8] sm:$0xff] }
  0x12   : > { %v304_v27 = vld [vmem:[%s493_s28 + $0x30] sm:$0xff]  ;;  %v301_v33 = vld [vmem:[%s493_s28 + $0x18] sm:$0xff]  ;;  %v303_v40 = vld [vmem:[%s493_s28 + $0x28] sm:$0xff] }
  0x13   : > { %409 = vmatmul.msk.bf16.vlgmr.msra.gmra.mxu0 %vm256_vm0, %v232_v5  ;;  %410 = vmatmul.msk.bf16.vlgmr.msra.gmra.mxu1 %vm256_vm0, %v233_v9  ;;  %v305_v43 = vld [vmem:[%s493_s28 + $0x38] sm:$0xff] }
  0x14   : > { %411 = vmatmul.msk.bf16.vlgmr.msra.gmra.mxu2 %vm256_vm0, %v234_v10  ;;  %412 = vmatmul.msk.bf16.vlgmr.msra.gmra.mxu3 %vm256_vm0, %v235_v13 }
  0x90   : > { %v278_v15 = vpop.f32.mrf.mxu0  ;;  %v283_v18 = vpop.f32.mrf.mxu1 }
  0x91   : > { %v279_v17 = vadd.f32 %v431_v14, %v278_v15  ;;  %v284_v20 = vadd.f32 %v431_v14, %v283_v18 }
  0x93   : > { %v306_v21 = vadd.f32 %v298_v16, %v279_v17  ;;  %v308_v22 = vadd.f32 %v300_v19, %v284_v20 }
  0x95   : > { %314 = vst.msk [vmem:[%s504_s7] sm:$0xff] %vm256_vm0, %v306_v21 }
  0x96   : > { %316 = vst.msk [vmem:[%s504_s7 + $0x10] sm:$0xff] %vm256_vm0, %v308_v22 }
  0x97   : > { %v288_v23 = vpop.f32.mrf.mxu2  ;;  %v293_v26 = vpop.f32.mrf.mxu3 }
  0x98   : > { %v289_v25 = vadd.f32 %v431_v14, %v288_v23  ;;  %v280_v28 = vpop.f32.mrf.mxu0  ;;  %v294_v30 = vadd.f32 %v431_v14, %v293_v26  ;;  %v285_v32 = vpop.f32.mrf.mxu1 }
  0x99   : > { %v281_v31 = vadd.f32 %v431_v14, %v280_v28  ;;  %v286_v35 = vadd.f32 %v431_v14, %v285_v32 }
  0x9a   : > { %v310_v34 = vadd.f32 %v302_v24, %v289_v25  ;;  %v312_v36 = vadd.f32 %v304_v27, %v294_v30 }
  0x9b   : > { %v307_v37 = vadd.f32 %v299_v29, %v281_v31  ;;  %v309_v38 = vadd.f32 %v301_v33, %v286_v35 }
  0x9c   : > { %318 = vst.msk [vmem:[%s504_s7 + $0x20] sm:$0xff] %vm256_vm0, %v310_v34 }
  0x9d   : > { %320 = vst.msk [vmem:[%s504_s7 + $0x30] sm:$0xff] %vm256_vm0, %v312_v36 }
  0x9e   : > { %315 = vst.msk [vmem:[%s504_s7 + $0x8] sm:$0xff] %vm256_vm0, %v307_v37 }
  0x9f   : > { %317 = vst.msk [vmem:[%s504_s7 + $0x18] sm:$0xff] %vm256_vm0, %v309_v38  ;;  %v290_v39 = vpop.f32.mrf.mxu2  ;;  %v295_v42 = vpop.f32.mrf.mxu3 }
  0xa0   : > { %v291_v41 = vadd.f32 %v431_v14, %v290_v39  ;;  %v296_v44 = vadd.f32 %v431_v14, %v295_v42 }
  0xa2   : > { %v311_v45 = vadd.f32 %v303_v40, %v291_v41  ;;  %v313_v46 = vadd.f32 %v305_v43, %v296_v44 }
  0xa4   : > { %319 = vst.msk [vmem:[%s504_s7 + $0x28] sm:$0xff] %vm256_vm0, %v311_v45 }
  0xa5   : > { %321 = vst.msk [vmem:[%s504_s7 + $0x38] sm:$0xff] %vm256_vm0, %v313_v46 }
  0xa6 PF: > { %s14_s15 = sadd.s32 1, %s438_s15  }
  0xa7   : > { %p11_p4 = scmp.ge.s32.totalorder %s14_s15, 4  }
  0xa9   :  { %13 = sbr.rel (!%p11_p4) target bundleno = 1 (0x1), region = 69 }

// kernel: block_pallas.4
= control target key start
LH: loop header
LB: loop body
LE: loop exit
PB: predicated region body
PF: predicated region fallthrough
CT: control target
= control target key end

     0   :  { %s998_s27 = smov 0   ;;  %s1267_s0 = inlined_call_operand.vmem [shape: f32[128,32], index: 0, kind: input, shape index: {}]   ;;  %s1268_s1 = inlined_call_operand.vmem [shape: f32[1,32], index: 1, kind: input, shape index: {}]   ;;  %s1269_s2 = inlined_call_operand.vmem [shape: f32[1,32], index: 2, kind: input, shape index: {}]   ;;  %s1270_s3 = inlined_call_operand.vmem [shape: bf16[32,32], index: 3, kind: input, shape index: {}]   ;;  %s1271_s4 = inlined_call_operand.vmem [shape: bf16[32,32], index: 4, kind: input, shape index: {}]   ;;  %s1272_s5 = inlined_call_operand.vmem [shape: bf16[32,32], index: 5, kind: input, shape index: {}]   ;;  %s1273_s6 = inlined_call_operand.vmem [shape: f32[128,32], index: 6, kind: output, shape index: {0}]   ;;  %s1274_s7 = inlined_call_operand.vmem [shape: f32[128,32], index: 7, kind: output, shape index: {1}]   ;;  %s1275_s8 = inlined_call_operand.vmem [shape: f32[128,32], index: 8, kind: output, shape index: {2}]  }
   0x1 LB: > { %s852_s28 = sadd.s32 4294967295, %s950_s27   ;;  %p856_p0 = scmp.ge.s32.totalorder %s950_s27, 1  ;;  %s950_s27 = sphi %s998_s27, %s19_s27  }
   0x2   : > { %p268_p1 = scmp.lt.s32.totalorder %s950_s27, 3 }
   0x4   : > { %p269_p2 = pnand %p856_p0, %p268_p1 }
   0x5   : > { %s857_s29 = sshll.u32 (!%p269_p2), %s852_s28, 3 }
   0x6   : > { %272 = sbr.rel (%p269_p2) target bundleno = 467 (0x1d3), region = 44  ;;  %p313_p3 = scmp.lt.s32.totalorder (!%p269_p2), %s857_s29, 15 }
   0xb   : > { %s1281_s29 = smov (!%p313_p3, %s857_s29), 15  ;;  %vm345_vm0 = vcmask 261120   ;;  %v952_v16 = vmov 32.0  }
   0xc   : > { %s1006_s30 = sshll.u32 %s1281_s29, 3  ;;  %926 = vrcp.f32 %v952_v16 }
   0xd   : > { %s316_s11 = scalar_lea.vmem %s1267_s0, %s1006_s30  ;;  %s1202_s10 = scalar_lea.vmem %s1274_s7, %s1006_s30 }
   0xe   : > { %v341_v0 = vld [vmem:[%s316_s11 + $0x20] sm:$0xff]  ;;  %v339_v1 = vld [vmem:[%s316_s11 + $0x10] sm:$0xff]  ;;  %v342_v6 = vld [vmem:[%s316_s11 + $0x28] sm:$0xff]  ;;  %s1208_s13 = scalar_lea.vmem %s1273_s6, %s1006_s30  ;;  %s1218_s16 = scalar_lea.vmem %s1275_s8, %s1006_s30 }
   0xf   : > { %v337_v2 = vld [vmem:[%s316_s11] sm:$0xff]  ;;  %v358_v3 = vsel %vm345_vm0, %v341_v0, 0.0  ;;  %v352_v4 = vsel %vm345_vm0, %v339_v1, 0.0  ;;  %v340_v7 = vld [vmem:[%s316_s11 + $0x18] sm:$0xff]  ;;  %v338_v8 = vld [vmem:[%s316_s11 + $0x8] sm:$0xff]  ;;  %v361_v9 = vsel %vm345_vm0, %v342_v6, 0.0 }
  0x10   : > { %v346_v5 = vsel %vm345_vm0, %v337_v2, 0.0  ;;  %359 = vadd.xlane.f32.xlu2 %v358_v3  ;;  %353 = vadd.xlane.f32.xlu0 %v352_v4  ;;  %v355_v10 = vsel %vm345_vm0, %v340_v7, 0.0  ;;  %v349_v11 = vsel %vm345_vm0, %v338_v8, 0.0  ;;  %v343_v12 = vld [vmem:[%s316_s11 + $0x30] sm:$0xff]  ;;  %v344_v13 = vld [vmem:[%s316_s11 + $0x38] sm:$0xff]  ;;  %v906_v3 = vld [vmem:[%s1271_s4 + $0x8] sm:$0xff] }
  0x11   : > { %347 = vadd.xlane.f32.xlu1 %v346_v5  ;;  %v364_v14 = vsel %vm345_vm0, %v343_v12, 0.0  ;;  %v367_v15 = vsel %vm345_vm0, %v344_v13, 0.0  ;;  %v1080_v4 = vld [vmem:[%s1272_s5 + $0x8] sm:$0xff]  ;;  %911 = vmatpush.bf16.msra.mxu1 %v906_v3 }
  0x12   : > { %v927_v17 = vpop.eup %926  ;;  %913 = vmatpush.bf16.msra.mxu2 %v1080_v4 }
  0x13   : > { %v371_v18 = vmul.f32 32.0, %v927_v17  ;;  %vm375_vm1 = vweird.f32 %v927_v17 }
  0x15   : > { %v372_v19 = vsub.f32 1.0, %v371_v18 }
  0x17   : > { %v373_v20 = vmul.f32 %v927_v17, %v372_v19 }
  0x18   : > { %362 = vadd.xlane.f32.xlu2 %v361_v9  ;;  %356 = vadd.xlane.f32.xlu0 %v355_v10  ;;  %v905_v9 = vld [vmem:[%s1271_s4] sm:$0xff] }
  0x19   : > { %350 = vadd.xlane.f32.xlu1 %v349_v11  ;;  %v374_v21 = vadd.f32 %v927_v17, %v373_v20  ;;  %v1093_v10 = vld [vmem:[%s1272_s5] sm:$0xff]  ;;  %912 = vmatpush.bf16.msra.mxu1 %v905_v9 }
  0x1a   : > { %914 = vmatpush.bf16.msra.mxu2 %v1093_v10 }
  0x1b   : > { %v1020_v22 = vsel %vm375_vm1, %v927_v17, %v374_v21 }
  0x20   : > { %365 = vadd.xlane.f32.xlu0 %v364_v14 }
  0x21   : > { %368 = vadd.xlane.f32.xlu1 %v367_v15 }
  0x83   : > { %v360_v23 = vpop.xlane.xlu2 %359  ;;  %v354_v24 = vpop.xlane.xlu0 %353 }
  0x84   : > { %v379_v25 = vmul.f32 %v1020_v22, %v354_v24  ;;  %v348_v26 = vpop.xlane.xlu1 %347  ;;  %v381_v36 = vmul.f32 %v1020_v22, %v360_v23 }
  0x85   : > { %v377_v27 = vmul.f32 %v1020_v22, %v348_v26 }
  0x86   : > { %v1024_v28 = vsub.f32 %v339_v1, %v379_v25  ;;  %v1044_v44 = vsub.f32 %v341_v0, %v381_v36 }
  0x87   : > { %v1026_v29 = vsub.f32 %v337_v2, %v377_v27  ;;  %v904_v2 = vld [vmem:[%s1270_s3 + $0x8] sm:$0xff] }
  0x88   : > { %v395_v30 = vmul.f32 %v1024_v28, %v1024_v28  ;;  %v397_v53 = vmul.f32 %v1044_v44, %v1044_v44  ;;  %591 = vmatpush.bf16.msra.mxu0 %v904_v2  ;;  %909 = vmatpush.bf16.msra.mxu3 %v904_v2  ;;  %v1132_v2 = vld [vmem:[%s1268_s1] ss:$0 sm:$0xff] }
  0x89   : > { %v393_v31 = vmul.f32 %v1026_v29, %v1026_v29 }
  0x8a   : > { %v407_v32 = vsel %vm345_vm0, %v395_v30, 0.0  ;;  %v413_v57 = vsel %vm345_vm0, %v397_v53, 0.0 }
  0x8b   : > { %v363_v33 = vpop.xlane.xlu2 %362  ;;  %408 = vadd.xlane.f32.xlu2 %v407_v32  ;;  %v357_v34 = vpop.xlane.xlu0 %356  ;;  %v401_v35 = vsel %vm345_vm0, %v393_v31, 0.0 }
  0x8c   : > { %v382_v37 = vmul.f32 %v1020_v22, %v363_v33  ;;  %v380_v38 = vmul.f32 %v1020_v22, %v357_v34  ;;  %402 = vadd.xlane.f32.xlu1 %v401_v35  ;;  %v351_v39 = vpop.xlane.xlu1 %350 }
  0x8d   : > { %v378_v40 = vmul.f32 %v1020_v22, %v351_v39 }
  0x8e   : > { %v1038_v41 = vsub.f32 %v342_v6, %v382_v37  ;;  %v1040_v42 = vsub.f32 %v340_v7, %v380_v38 }
  0x8f   : > { %v1042_v43 = vsub.f32 %v338_v8, %v378_v40  ;;  %v903_v8 = vld [vmem:[%s1270_s3] sm:$0xff] }
  0x90   : > { %v396_v45 = vmul.f32 %v1040_v42, %v1040_v42  ;;  %v398_v46 = vmul.f32 %v1038_v41, %v1038_v41  ;;  %592 = vmatpush.bf16.msra.mxu0 %v903_v8  ;;  %910 = vmatpush.bf16.msra.mxu3 %v903_v8 }
  0x91   : > { %v394_v47 = vmul.f32 %v1042_v43, %v1042_v43 }
  0x92   : > { %v410_v48 = vsel %vm345_vm0, %v396_v45, 0.0  ;;  %v416_v49 = vsel %vm345_vm0, %v398_v46, 0.0 }
  0x93   : > { %411 = vadd.xlane.f32.xlu0 %v410_v48  ;;  %v366_v50 = vpop.xlane.xlu0 %365  ;;  %v404_v51 = vsel %vm345_vm0, %v394_v47, 0.0 }
  0x94   : > { %v383_v52 = vmul.f32 %v1020_v22, %v366_v50  ;;  %417 = vadd.xlane.f32.xlu1 %v416_v49  ;;  %405 = vadd.xlane.f32.xlu2 %v404_v51  ;;  %v369_v54 = vpop.xlane.xlu1 %368 }
  0x95   : > { %v384_v55 = vmul.f32 %v1020_v22, %v369_v54  ;;  %644 = vmatpush.bf16.msrb.mxu0 %v906_v3 }
  0x96   : > { %v1059_v56 = vsub.f32 %v343_v12, %v383_v52 }
  0x97   : > { %v1064_v59 = vsub.f32 %v344_v13, %v384_v55 }
  0x98   : > { %v399_v58 = vmul.f32 %v1059_v56, %v1059_v56 }
  0x99   : > { %v400_v61 = vmul.f32 %v1064_v59, %v1064_v59  ;;  %645 = vmatpush.bf16.msrb.mxu0 %v905_v9 }
  0x9a   : > { %v419_v60 = vsel %vm345_vm0, %v399_v58, 0.0 }
  0x9b   : > { %414 = vadd.xlane.f32.xlu0 %v413_v57  ;;  %v422_v62 = vsel %vm345_vm0, %v400_v61, 0.0 }
  0x9c   : > { %420 = vadd.xlane.f32.xlu2 %v419_v60 }
  0xa3   : > { %423 = vadd.xlane.f32.xlu0 %v422_v62 }
  0xfe   : > { %v409_v63 = vpop.xlane.xlu2 %408 }
  0xff   : > { %v427_v0 = vmul.f32 %v409_v63, %v1020_v22  ;;  %v403_v1 = vpop.xlane.xlu1 %402 }
 0x100   : > { %v425_v5 = vmul.f32 %v403_v1, %v1020_v22 }
 0x101   : > { %v435_v6 = vadd.f32 1e-05, %v427_v0 }
 0x102   : > { %v433_v7 = vadd.f32 1e-05, %v425_v5 }
 0x103   : > { %928 = vrsqrt.f32 %v435_v6  ;;  %vm467_vm5 = vweird.f32 %v435_v6 }
 0x104   : > { %930 = vrsqrt.f32 %v433_v7  ;;  %vm447_vm3 = vweird.f32 %v433_v7 }
 0x106   : > { %v412_v11 = vpop.xlane.xlu0 %411 }
 0x107   : > { %v428_v12 = vmul.f32 %v412_v11, %v1020_v22  ;;  %v406_v13 = vpop.xlane.xlu2 %405  ;;  %v418_v14 = vpop.xlane.xlu1 %417 }
 0x108   : > { %v426_v15 = vmul.f32 %v406_v13, %v1020_v22  ;;  %v430_v16 = vmul.f32 %v418_v14, %v1020_v22 }
 0x109   : > { %v929_v17 = vpop.eup %928  ;;  %v436_v18 = vadd.f32 1e-05, %v428_v12 }
 0x10a   : > { %v931_v19 = vpop.eup %930  ;;  %v462_v20 = vmul.f32 %v929_v17, %v435_v6  ;;  %v1099_v21 = vadd.f32 1e-05, %v426_v15  ;;  %v1101_v23 = vadd.f32 1e-05, %v430_v16  ;;  %vm468_vm2 = vweird.f32 %v929_v17  ;;  %v1148_v16 = vld [vmem:[%s1269_s2] ss:$0 sm:$0xff] }
 0x10b   : > { %v442_v24 = vmul.f32 %v931_v19, %v433_v7  ;;  %932 = vrsqrt.f32 %v436_v18  ;;  %vm448_vm4 = vweird.f32 %v931_v19  ;;  %vm1111_vm6 = vmor %vm467_vm5, %vm468_vm2  ;;  %vm477_vm11 = vweird.f32 %v436_v18 }
 0x10c   : > { %v463_v25 = vmul.f32 %v929_v17, %v462_v20  ;;  %934 = vrsqrt.f32 %v1099_v21  ;;  %vm449_vm7 = vmor %vm447_vm3, %vm448_vm4  ;;  %vm457_vm9 = vweird.f32 %v1099_v21  ;;  %vm497_vm14 = vweird.f32 %v1101_v23 }
 0x10d   : > { %v443_v26 = vmul.f32 %v931_v19, %v442_v24  ;;  %936 = vrsqrt.f32 %v1101_v23 }
 0x10e   : > { %v464_v27 = vmul.f32 0.5, %v463_v25  ;;  %v415_v30 = vpop.xlane.xlu0 %414 }
 0x10f   : > { %v444_v31 = vmul.f32 0.5, %v443_v26  ;;  %v429_v32 = vmul.f32 %v415_v30, %v1020_v22  ;;  %v421_v33 = vpop.xlane.xlu2 %420 }
 0x110   : > { %v465_v34 = vsub.f32 1.5, %v464_v27  ;;  %v431_v38 = vmul.f32 %v421_v33, %v1020_v22 }
 0x111   : > { %v933_v35 = vpop.eup %932  ;;  %v445_v36 = vsub.f32 1.5, %v444_v31  ;;  %v1106_v37 = vadd.f32 1e-05, %v429_v32 }
 0x112   : > { %v935_v39 = vpop.eup %934  ;;  %v466_v40 = vmul.f32 %v929_v17, %v465_v34  ;;  %v472_v45 = vmul.f32 %v933_v35, %v436_v18  ;;  %v1122_v55 = vadd.f32 1e-05, %v431_v38  ;;  %vm478_vm8 = vweird.f32 %v933_v35 }
 0x113   : > { %v1109_v46 = vpop.eup %936  ;;  %v446_v48 = vmul.f32 %v931_v19, %v445_v36  ;;  %v452_v49 = vmul.f32 %v935_v39, %v1099_v21  ;;  %938 = vrsqrt.f32 %v1106_v37  ;;  %vm458_vm10 = vweird.f32 %v935_v39  ;;  %vm479_vm12 = vmor %vm477_vm11, %vm478_vm8 }
 0x114   : > { %v473_v50 = vmul.f32 %v933_v35, %v472_v45  ;;  %v492_v51 = vmul.f32 %v1109_v46, %v1101_v23  ;;  %v470_v52 = vsel %vm1111_vm6, %v929_v17, %v466_v40  ;;  %940 = vrsqrt.f32 %v1122_v55  ;;  %vm459_vm13 = vmor %vm457_vm9, %vm458_vm10 }
 0x115   : > { %v450_v53 = vsel %vm449_vm7, %v931_v19, %v446_v48  ;;  %v453_v54 = vmul.f32 %v935_v39, %v452_v49  ;;  %v523_v63 = vmul.f32 %v470_v52, %v1024_v28  ;;  %vm498_vm15 = vweird.f32 %v1109_v46 }
 0x116   : > { %v474_v57 = vmul.f32 0.5, %v473_v50  ;;  %v493_v58 = vmul.f32 %v1109_v46, %v492_v51  ;;  %v424_v60 = vpop.xlane.xlu0 %423  ;;  %v521_v0 = vmul.f32 %v450_v53, %v1026_v29  ;;  %vm487_vm1 = vweird.f32 %v1106_v37  ;;  %vm1160_vm3 = vmor %vm497_vm14, %vm498_vm15 }
 0x117   : > { %v454_v61 = vmul.f32 0.5, %v453_v54  ;;  %v432_v62 = vmul.f32 %v424_v60, %v1020_v22  ;;  %v535_v11 = vmul.f32 %v1132_v2, %v523_v63  ;;  %vm507_vm7 = vweird.f32 %v1122_v55 }
 0x118   : > { %v475_v1 = vsub.f32 1.5, %v474_v57  ;;  %v494_v6 = vmul.f32 0.5, %v493_v58  ;;  %v533_v15 = vmul.f32 %v1132_v2, %v521_v0 }
 0x119   : > { %v939_v3 = vpop.eup %938  ;;  %v455_v5 = vsub.f32 1.5, %v454_v61  ;;  %v1135_v7 = vadd.f32 1e-05, %v432_v62 }
 0x11a   : > { %v476_v8 = vmul.f32 %v933_v35, %v475_v1  ;;  %v482_v22 = vmul.f32 %v939_v3, %v1106_v37  ;;  %v495_v14 = vsub.f32 1.5, %v494_v6  ;;  %v941_v19 = vpop.eup %940  ;;  %vm488_vm2 = vweird.f32 %v939_v3 }
 0x11b   : > { %v456_v28 = vmul.f32 %v935_v39, %v455_v5  ;;  %942 = vrsqrt.f32 %v1135_v7  ;;  %v545_v26 = vadd.f32 %v1148_v16, %v533_v15  ;;  %v502_v31 = vmul.f32 %v941_v19, %v1122_v55  ;;  %vm489_vm4 = vmor %vm487_vm1, %vm488_vm2 }
 0x11c   : > { %v480_v29 = vsel %vm479_vm12, %v933_v35, %v476_v8  ;;  %v483_v9 = vmul.f32 %v939_v3, %v482_v22  ;;  %v496_v25 = vmul.f32 %v1109_v46, %v495_v14  ;;  %vm517_vm5 = vweird.f32 %v1135_v7 }
 0x11d   : > { %v524_v12 = vmul.f32 %v480_v29, %v1040_v42  ;;  %v460_v13 = vsel %vm459_vm13, %v935_v39, %v456_v28  ;;  %v503_v39 = vmul.f32 %v941_v19, %v502_v31  ;;  %vm508_vm8 = vweird.f32 %v941_v19 }
 0x11e   : > { %v522_v17 = vmul.f32 %v460_v13, %v1042_v43  ;;  %v484_v18 = vmul.f32 0.5, %v483_v9  ;;  %v547_v43 = vadd.f32 %v1148_v16, %v535_v11  ;;  %v500_v38 = vsel %vm1160_vm3, %v1109_v46, %v496_v25  ;;  %vm509_vm10 = vmor %vm507_vm7, %vm508_vm8 }
 0x11f   : > { %v536_v20 = vmul.f32 %v1132_v2, %v524_v12  ;;  %v526_v47 = vmul.f32 %v500_v38, %v1038_v41  ;;  %v504_v48 = vmul.f32 0.5, %v503_v39 }
 0x120   : > { %v485_v42 = vsub.f32 1.5, %v484_v18  ;;  %v534_v21 = vmul.f32 %v1132_v2, %v522_v17 }
 0x121   : > { %v943_v24 = vpop.eup %942  ;;  %v548_v27 = vadd.f32 %v1148_v16, %v536_v20  ;;  %v538_v46 = vmul.f32 %v1132_v2, %v526_v47  ;;  %v505_v51 = vsub.f32 1.5, %v504_v48 }
 0x122   : > { %v486_v30 = vmul.f32 %v939_v3, %v485_v42  ;;  %v512_v32 = vmul.f32 %v943_v24, %v1135_v7  ;;  %v546_v33 = vadd.f32 %v1148_v16, %v534_v21  ;;  %vm518_vm6 = vweird.f32 %v943_v24 }
 0x123   : > { %v554_v34 = vpack.c.bf16 %v548_v27, %v547_v43  ;;  %vm519_vm9 = vmor %vm517_vm5, %vm518_vm6  ;;  %v550_v41 = vadd.f32 %v1148_v16, %v538_v46 }
 0x124   : > { %v490_v35 = vsel %vm489_vm4, %v939_v3, %v486_v30  ;;  %v513_v36 = vmul.f32 %v943_v24, %v512_v32  ;;  %v553_v37 = vpack.c.bf16 %v546_v33, %v545_v26 }
 0x125   : > { %874 = vmatmul.msk.bf16.vlgmr.msra.gmra.mxu3 %vm345_vm0, %v554_v34  ;;  %886 = vmatmul.msk.bf16.vlgmr.msra.gmra.mxu1 %vm345_vm0, %v554_v34  ;;  %v525_v40 = vmul.f32 %v490_v35, %v1044_v44 }
 0x126   : > { %873 = vmatmul.msk.bf16.vlgmr.msra.gmra.mxu0 %vm345_vm0, %v553_v37  ;;  %898 = vmatmul.msk.bf16.vlgmr.msra.gmra.mxu2 %vm345_vm0, %v554_v34  ;;  %v514_v45 = vmul.f32 0.5, %v513_v36 }
 0x127   : > { %697 = vmatpush.bf16.msra.mxu0 %v1080_v4  ;;  %v537_v49 = vmul.f32 %v1132_v2, %v525_v40  ;;  %v506_v4 = vmul.f32 %v941_v19, %v505_v51 }
 0x128   : > { %v515_v50 = vsub.f32 1.5, %v514_v45 }
 0x129   : > { %v549_v52 = vadd.f32 %v1148_v16, %v537_v49  ;;  %v510_v54 = vsel %vm509_vm10, %v941_v19, %v506_v4 }
 0x12a   : > { %v516_v44 = vmul.f32 %v943_v24, %v515_v50  ;;  %v527_v57 = vmul.f32 %v510_v54, %v1059_v56 }
 0x12b   : > { %698 = vmatpush.bf16.msra.mxu0 %v1093_v10  ;;  %v555_v53 = vpack.c.bf16 %v550_v41, %v549_v52 }
 0x12c   : > { %v520_v10 = vsel %vm519_vm9, %v943_v24, %v516_v44  ;;  %v539_v60 = vmul.f32 %v1132_v2, %v527_v57 }
 0x12d   : > { %v528_v55 = vmul.f32 %v520_v10, %v1064_v59 }
 0x12e   : > { %v551_v62 = vadd.f32 %v1148_v16, %v539_v60 }
 0x12f   : > { %v540_v58 = vmul.f32 %v1132_v2, %v528_v55 }
 0x131   : > { %v552_v61 = vadd.f32 %v1148_v16, %v540_v58 }
 0x133   : > { %v556_v63 = vpack.c.bf16 %v552_v61, %v551_v62 }
 0x135   : > { %875 = vmatmul.msk.bf16.gmra.mxu3 %vm345_vm0, %v555_v53  ;;  %887 = vmatmul.msk.bf16.gmra.mxu1 %vm345_vm0, %v555_v53 }
 0x136   : > { %885 = vmatmul.msk.bf16.vlgmr.msrb.gmra.mxu0 %vm345_vm0, %v553_v37  ;;  %899 = vmatmul.msk.bf16.gmra.mxu2 %vm345_vm0, %v555_v53 }
 0x145   : > { %876 = vmatmul.msk.bf16.gmra.mxu3 %vm345_vm0, %v556_v63  ;;  %888 = vmatmul.msk.bf16.gmra.mxu1 %vm345_vm0, %v556_v63 }
 0x146   : > { %897 = vmatmul.msk.bf16.vlgmr.msra.gmra.mxu0 %vm345_vm0, %v553_v37  ;;  %900 = vmatmul.msk.bf16.gmra.mxu2 %vm345_vm0, %v556_v63 }
 0x1a2   : > { %v652_v56 = vpop.f32.mrf.mxu1 }
 0x1a3   : > { %v594_v59 = vpop.f32.mrf.mxu0  ;;  %669 = vst.msk [vmem:[%s1202_s10 + $0x10] sm:$0xff] %vm345_vm0, %v652_v56 }
 0x1a4   : > { %614 = vst.msk [vmem:[%s1208_s13] sm:$0xff] %vm345_vm0, %v594_v59 }
 0x1a8   : > { %v599_v0 = vpop.f32.mrf.mxu3 }
 0x1a9   : > { %616 = vst.msk [vmem:[%s1208_s13 + $0x10] sm:$0xff] %vm345_vm0, %v599_v0  ;;  %v705_v1 = vpop.f32.mrf.mxu2 }
 0x1aa   : > { %722 = vst.msk [vmem:[%s1218_s16 + $0x10] sm:$0xff] %vm345_vm0, %v705_v1  ;;  %v654_v2 = vpop.f32.mrf.mxu1 }
 0x1ab   : > { %v596_v3 = vpop.f32.mrf.mxu0  ;;  %670 = vst.msk [vmem:[%s1202_s10 + $0x18] sm:$0xff] %vm345_vm0, %v654_v2 }
 0x1ac   : > { %615 = vst.msk [vmem:[%s1208_s13 + $0x8] sm:$0xff] %vm345_vm0, %v596_v3 }
 0x1b0   : > { %v601_v5 = vpop.f32.mrf.mxu3 }
 0x1b1   : > { %617 = vst.msk [vmem:[%s1208_s13 + $0x18] sm:$0xff] %vm345_vm0, %v601_v5  ;;  %v707_v6 = vpop.f32.mrf.mxu2 }
 0x1b2   : > { %723 = vst.msk [vmem:[%s1218_s16 + $0x18] sm:$0xff] %vm345_vm0, %v707_v6  ;;  %v657_v7 = vpop.f32.mrf.mxu1 }
 0x1b3   : > { %v647_v8 = vpop.f32.mrf.mxu0  ;;  %671 = vst.msk [vmem:[%s1202_s10 + $0x20] sm:$0xff] %vm345_vm0, %v657_v7 }
 0x1b4   : > { %667 = vst.msk [vmem:[%s1202_s10] sm:$0xff] %vm345_vm0, %v647_v8 }
 0x1b8   : > { %v604_v22 = vpop.f32.mrf.mxu3 }
 0x1b9   : > { %618 = vst.msk [vmem:[%s1208_s13 + $0x20] sm:$0xff] %vm345_vm0, %v604_v22  ;;  %v710_v28 = vpop.f32.mrf.mxu2 }
 0x1ba   : > { %724 = vst.msk [vmem:[%s1218_s16 + $0x20] sm:$0xff] %vm345_vm0, %v710_v28  ;;  %v659_v29 = vpop.f32.mrf.mxu1 }
 0x1bb   : > { %v649_v9 = vpop.f32.mrf.mxu0  ;;  %672 = vst.msk [vmem:[%s1202_s10 + $0x28] sm:$0xff] %vm345_vm0, %v659_v29 }
 0x1bc   : > { %668 = vst.msk [vmem:[%s1202_s10 + $0x8] sm:$0xff] %vm345_vm0, %v649_v9 }
 0x1c0   : > { %v606_v11 = vpop.f32.mrf.mxu3 }
 0x1c1   : > { %619 = vst.msk [vmem:[%s1208_s13 + $0x28] sm:$0xff] %vm345_vm0, %v606_v11  ;;  %v712_v12 = vpop.f32.mrf.mxu2 }
 0x1c2   : > { %725 = vst.msk [vmem:[%s1218_s16 + $0x28] sm:$0xff] %vm345_vm0, %v712_v12  ;;  %v662_v13 = vpop.f32.mrf.mxu1 }
 0x1c3   : > { %673 = vst.msk [vmem:[%s1202_s10 + $0x30] sm:$0xff] %vm345_vm0, %v662_v13  ;;  %v700_v14 = vpop.f32.mrf.mxu0 }
 0x1c4   : > { %720 = vst.msk [vmem:[%s1218_s16] sm:$0xff] %vm345_vm0, %v700_v14 }
 0x1c8   : > { %v609_v15 = vpop.f32.mrf.mxu3 }
 0x1c9   : > { %620 = vst.msk [vmem:[%s1208_s13 + $0x30] sm:$0xff] %vm345_vm0, %v609_v15  ;;  %v715_v16 = vpop.f32.mrf.mxu2 }
 0x1ca   : > { %726 = vst.msk [vmem:[%s1218_s16 + $0x30] sm:$0xff] %vm345_vm0, %v715_v16  ;;  %v664_v17 = vpop.f32.mrf.mxu1 }
 0x1cb   : > { %674 = vst.msk [vmem:[%s1202_s10 + $0x38] sm:$0xff] %vm345_vm0, %v664_v17  ;;  %v702_v18 = vpop.f32.mrf.mxu0 }
 0x1cc   : > { %721 = vst.msk [vmem:[%s1218_s16 + $0x8] sm:$0xff] %vm345_vm0, %v702_v18 }
 0x1d0   : > { %v611_v19 = vpop.f32.mrf.mxu3 }
 0x1d1   : > { %621 = vst.msk [vmem:[%s1208_s13 + $0x38] sm:$0xff] %vm345_vm0, %v611_v19  ;;  %v717_v20 = vpop.f32.mrf.mxu2 }
 0x1d2   : > { %727 = vst.msk [vmem:[%s1218_s16 + $0x38] sm:$0xff] %vm345_vm0, %v717_v20 }
 0x1d3 PF: > { %s19_s27 = sadd.s32 1, %s950_s27  }
 0x1d4   : > { %p16_p4 = scmp.ge.s32.totalorder %s19_s27, 4  }
 0x1d6   :  { %18 = sbr.rel (!%p16_p4) target bundleno = 1 (0x1), region = 98 }

// kernel: block_pallas.7
= control target key start
LH: loop header
LB: loop body
LE: loop exit
PB: predicated region body
PF: predicated region fallthrough
CT: control target
= control target key end

     0   :  { %s1636_s30 = smov 0   ;;  %s2365_s0 = inlined_call_operand.vmem [shape: f32[2,8,8,32], index: 0, kind: input, shape index: {}]   ;;  %s2366_s1 = inlined_call_operand.vmem [shape: f32[1,32], index: 1, kind: input, shape index: {}]   ;;  %s2367_s2 = inlined_call_operand.vmem [shape: f32[1,32], index: 2, kind: input, shape index: {}]   ;;  %s2368_s3 = inlined_call_operand.vmem [shape: bf16[32,128], index: 3, kind: input, shape index: {}]   ;;  %s2369_s4 = inlined_call_operand.vmem [shape: f32[1,128], index: 4, kind: input, shape index: {}]   ;;  %s2370_s5 = inlined_call_operand.vmem [shape: f32[9,128], index: 5, kind: input, shape index: {}]   ;;  %s2371_s6 = inlined_call_operand.vmem [shape: f32[1,128], index: 6, kind: input, shape index: {}]   ;;  %s2372_s7 = inlined_call_operand.vmem [shape: bf16[128,32], index: 7, kind: input, shape index: {}]   ;;  %s2373_s8 = inlined_call_operand.vmem [shape: f32[1,32], index: 8, kind: input, shape index: {}]   ;;  %s2374_s9 = inlined_call_operand.vmem [shape: f32[2,8,8,32], index: 9, kind: output, shape index: {}]  }
   0x1 LB: > { %s1417_s10 = sadd.s32 4294967295, %s1582_s30   ;;  %p1421_p0 = scmp.ge.s32.totalorder %s1582_s30, 1  ;;  %s1582_s30 = sphi %s1636_s30, %s19_s30  }
   0x2   : > { %p287_p1 = scmp.lt.s32.totalorder %s1582_s30, 3 }
   0x4   : > { %p288_p2 = pnand %p1421_p0, %p287_p1 }
   0x5   : > { %p323_p3 = scmp.lt.s32.totalorder (!%p288_p2), %s1417_s10, 1 }
   0x6   : > { %291 = sbr.rel (%p288_p2) target bundleno = 736 (0x2e0), region = 56 }
   0xb   : > { %s2392_s10 = smov (!%p323_p3, %s1417_s10), 1  ;;  %vm342_vm0 = vcmask 261120   ;;  %v1584_v16 = vmov 32.0  }
   0xc   : > { %s1480_s11 = sshll.u32 %s2392_s10, 6  ;;  %1534 = vrcp.f32 %v1584_v16 }
   0xd   : > { %s1652_s14 = scalar_lea.vmem %s2365_s0, %s1480_s11  ;;  %s2336_s13 = scalar_lea.vmem %s2374_s9, %s1480_s11 }
   0xe   : > { %v340_v0 = vld [vmem:[%s1652_s14 + $0x30] sm:$0xff]  ;;  %v338_v1 = vld [vmem:[%s1652_s14 + $0x20] sm:$0xff]  ;;  %v341_v6 = vld [vmem:[%s1652_s14 + $0x38] sm:$0xff] }
   0xf   : > { %v336_v2 = vld [vmem:[%s1652_s14 + $0x10] sm:$0xff]  ;;  %v361_v3 = vsel %vm342_vm0, %v340_v0, 0.0  ;;  %v355_v4 = vsel %vm342_vm0, %v338_v1, 0.0  ;;  %v339_v7 = vld [vmem:[%s1652_s14 + $0x28] sm:$0xff]  ;;  %v337_v8 = vld [vmem:[%s1652_s14 + $0x18] sm:$0xff]  ;;  %v364_v9 = vsel %vm342_vm0, %v341_v6, 0.0 }
  0x10   : > { %v349_v5 = vsel %vm342_vm0, %v336_v2, 0.0  ;;  %362 = vadd.xlane.f32.xlu2 %v361_v3  ;;  %356 = vadd.xlane.f32.xlu1 %v355_v4  ;;  %v358_v10 = vsel %vm342_vm0, %v339_v7, 0.0  ;;  %v352_v11 = vsel %vm342_vm0, %v337_v8, 0.0  ;;  %v335_v12 = vld [vmem:[%s1652_s14 + $0x8] sm:$0xff]  ;;  %v334_v13 = vld [vmem:[%s1652_s14] sm:$0xff] }
  0x11   : > { %350 = vadd.xlane.f32.xlu0 %v349_v5  ;;  %v346_v14 = vsel %vm342_vm0, %v335_v12, 0.0  ;;  %v343_v15 = vsel %vm342_vm0, %v334_v13, 0.0  ;;  %v1482_v5 = vld [vmem:[%s2368_s3] sm:$0xff] }
  0x12   : > { %v1535_v17 = vpop.eup %1534 }
  0x13   : > { %v368_v18 = vmul.f32 32.0, %v1535_v17  ;;  %vm372_vm1 = vweird.f32 %v1535_v17 }
  0x15   : > { %v369_v19 = vsub.f32 1.0, %v368_v18 }
  0x17   : > { %v370_v20 = vmul.f32 %v1535_v17, %v369_v19 }
  0x18   : > { %365 = vadd.xlane.f32.xlu2 %v364_v9  ;;  %359 = vadd.xlane.f32.xlu1 %v358_v10 }
  0x19   : > { %353 = vadd.xlane.f32.xlu0 %v352_v11  ;;  %v371_v21 = vadd.f32 %v1535_v17, %v370_v20 }
  0x1b   : > { %v1670_v22 = vsel %vm372_vm1, %v1535_v17, %v371_v21 }
  0x20   : > { %347 = vadd.xlane.f32.xlu1 %v346_v14 }
  0x21   : > { %344 = vadd.xlane.f32.xlu0 %v343_v15 }
  0x83   : > { %v363_v23 = vpop.xlane.xlu2 %362  ;;  %v357_v24 = vpop.xlane.xlu1 %356 }
  0x84   : > { %v378_v25 = vmul.f32 %v1670_v22, %v357_v24  ;;  %v351_v26 = vpop.xlane.xlu0 %350  ;;  %v380_v39 = vmul.f32 %v1670_v22, %v363_v23 }
  0x85   : > { %v376_v27 = vmul.f32 %v1670_v22, %v351_v26 }
  0x86   : > { %v1674_v28 = vsub.f32 %v338_v1, %v378_v25  ;;  %v1698_v46 = vsub.f32 %v340_v0, %v380_v39 }
  0x87   : > { %v1676_v29 = vsub.f32 %v336_v2, %v376_v27  ;;  %v1483_v2 = vld [vmem:[%s2368_s3 + $0x8] sm:$0xff] }
  0x88   : > { %v394_v30 = vmul.f32 %v1674_v28, %v1674_v28  ;;  %v396_v55 = vmul.f32 %v1698_v46, %v1698_v46  ;;  %1492 = vmatpush.bf16.msra.mxu3 %v1483_v2  ;;  %592 = vmatpush.bf16.msra.mxu0 %v1483_v2 }
  0x89   : > { %v392_v31 = vmul.f32 %v1676_v29, %v1676_v29 }
  0x8a   : > { %v410_v32 = vsel %vm342_vm0, %v394_v30, 0.0  ;;  %v416_v58 = vsel %vm342_vm0, %v396_v55, 0.0 }
  0x8b   : > { %v366_v33 = vpop.xlane.xlu2 %365  ;;  %v360_v34 = vpop.xlane.xlu1 %359  ;;  %v404_v35 = vsel %vm342_vm0, %v392_v31, 0.0  ;;  %411 = vadd.xlane.f32.xlu1 %v410_v32 }
  0x8c   : > { %v381_v36 = vmul.f32 %v1670_v22, %v366_v33  ;;  %v379_v37 = vmul.f32 %v1670_v22, %v360_v34  ;;  %405 = vadd.xlane.f32.xlu2 %v404_v35  ;;  %v354_v38 = vpop.xlane.xlu0 %353  ;;  %1493 = vmatpush.bf16.msra.mxu3 %v1482_v5 }
  0x8d   : > { %v377_v40 = vmul.f32 %v1670_v22, %v354_v38  ;;  %593 = vmatpush.bf16.msra.mxu0 %v1482_v5 }
  0x8e   : > { %v1688_v41 = vsub.f32 %v341_v6, %v381_v36  ;;  %v1690_v42 = vsub.f32 %v339_v7, %v379_v37 }
  0x8f   : > { %v1692_v43 = vsub.f32 %v337_v8, %v377_v40 }
  0x90   : > { %v395_v44 = vmul.f32 %v1690_v42, %v1690_v42  ;;  %v397_v45 = vmul.f32 %v1688_v41, %v1688_v41 }
  0x91   : > { %v393_v47 = vmul.f32 %v1692_v43, %v1692_v43 }
  0x92   : > { %v413_v48 = vsel %vm342_vm0, %v395_v44, 0.0  ;;  %v419_v49 = vsel %vm342_vm0, %v397_v45, 0.0 }
  0x93   : > { %420 = vadd.xlane.f32.xlu1 %v419_v49  ;;  %v407_v50 = vsel %vm342_vm0, %v393_v47, 0.0  ;;  %v348_v51 = vpop.xlane.xlu1 %347 }
  0x94   : > { %414 = vadd.xlane.f32.xlu2 %v413_v48  ;;  %408 = vadd.xlane.f32.xlu0 %v407_v50  ;;  %v345_v52 = vpop.xlane.xlu0 %344  ;;  %v375_v54 = vmul.f32 %v1670_v22, %v348_v51 }
  0x95   : > { %v374_v53 = vmul.f32 %v1670_v22, %v345_v52 }
  0x96   : > { %v1711_v57 = vsub.f32 %v335_v12, %v375_v54  ;;  %v1763_v54 = vld [vmem:[%s2366_s1] ss:$0 sm:$0xff] }
  0x97   : > { %v1709_v56 = vsub.f32 %v334_v13, %v374_v53 }
  0x98   : > { %v391_v61 = vmul.f32 %v1711_v57, %v1711_v57 }
  0x99   : > { %v390_v59 = vmul.f32 %v1709_v56, %v1709_v56 }
  0x9a   : > { %v401_v62 = vsel %vm342_vm0, %v391_v61, 0.0 }
  0x9b   : > { %v398_v60 = vsel %vm342_vm0, %v390_v59, 0.0 }
  0x9c   : > { %417 = vadd.xlane.f32.xlu0 %v416_v58  ;;  %399 = vadd.xlane.f32.xlu2 %v398_v60 }
  0xa4   : > { %402 = vadd.xlane.f32.xlu0 %v401_v62 }
  0xfe   : > { %v412_v0 = vpop.xlane.xlu1 %411 }
  0xff   : > { %v406_v63 = vpop.xlane.xlu2 %405  ;;  %v426_v4 = vmul.f32 %v412_v0, %v1670_v22 }
 0x100   : > { %v424_v1 = vmul.f32 %v406_v63, %v1670_v22 }
 0x101   : > { %v1728_v6 = vadd.f32 1e-05, %v426_v4 }
 0x102   : > { %v432_v3 = vadd.f32 1e-05, %v424_v1  ;;  %v1775_v1 = vld [vmem:[%s2367_s2] ss:$0 sm:$0xff] }
 0x103   : > { %vm484_vm10 = vweird.f32 %v1728_v6 }
 0x104   : > { %1536 = vrsqrt.f32 %v432_v3  ;;  %vm464_vm3 = vweird.f32 %v432_v3 }
 0x105   : > { %1538 = vrsqrt.f32 %v1728_v6 }
 0x106   : > { %v421_v16 = vpop.xlane.xlu1 %420 }
 0x107   : > { %v415_v7 = vpop.xlane.xlu2 %414  ;;  %v409_v8 = vpop.xlane.xlu0 %408  ;;  %v429_v21 = vmul.f32 %v421_v16, %v1670_v22 }
 0x108   : > { %v427_v9 = vmul.f32 %v415_v7, %v1670_v22  ;;  %v425_v10 = vmul.f32 %v409_v8, %v1670_v22 }
 0x109   : > { %v1749_v34 = vadd.f32 1e-05, %v429_v21 }
 0x10a   : > { %v1537_v11 = vpop.eup %1536  ;;  %v1733_v12 = vadd.f32 1e-05, %v427_v9  ;;  %v433_v13 = vadd.f32 1e-05, %v425_v10 }
 0x10b   : > { %v459_v14 = vmul.f32 %v1537_v11, %v432_v3  ;;  %v1736_v20 = vpop.eup %1538  ;;  %vm465_vm2 = vweird.f32 %v1537_v11 }
 0x10c   : > { %1540 = vrsqrt.f32 %v1733_v12  ;;  %v479_v31 = vmul.f32 %v1736_v20, %v1728_v6  ;;  %vm466_vm4 = vmor %vm464_vm3, %vm465_vm2  ;;  %vm474_vm6 = vweird.f32 %v433_v13  ;;  %vm494_vm8 = vweird.f32 %v1733_v12 }
 0x10d   : > { %v460_v15 = vmul.f32 %v1537_v11, %v459_v14  ;;  %1542 = vrsqrt.f32 %v433_v13  ;;  %vm485_vm11 = vweird.f32 %v1736_v20 }
 0x10e   : > { %v480_v39 = vmul.f32 %v1736_v20, %v479_v31  ;;  %vm1795_vm15 = vmor %vm484_vm10, %vm485_vm11 }
 0x10f   : > { %v461_v17 = vmul.f32 0.5, %v460_v15  ;;  %v400_v18 = vpop.xlane.xlu2 %399  ;;  %v418_v19 = vpop.xlane.xlu0 %417 }
 0x110   : > { %v422_v23 = vmul.f32 %v400_v18, %v1670_v22  ;;  %v428_v25 = vmul.f32 %v418_v19, %v1670_v22  ;;  %v481_v53 = vmul.f32 0.5, %v480_v39 }
 0x111   : > { %v462_v24 = vsub.f32 1.5, %v461_v17 }
 0x112   : > { %v1741_v26 = vpop.eup %1540  ;;  %v1743_v27 = vadd.f32 1e-05, %v422_v23  ;;  %v1752_v36 = vadd.f32 1e-05, %v428_v25 }
 0x113   : > { %v1543_v30 = vpop.eup %1542  ;;  %v489_v32 = vmul.f32 %v1741_v26, %v1733_v12  ;;  %v463_v33 = vmul.f32 %v1537_v11, %v462_v24  ;;  %vm495_vm9 = vweird.f32 %v1741_v26  ;;  %v1884_v12 = vld [vmem:[%s2370_s5 + $0x2] ss:$0 sm:$0xff] }
 0x114   : > { %v469_v35 = vmul.f32 %v1543_v30, %v433_v13  ;;  %1544 = vrsqrt.f32 %v1743_v27  ;;  %vm475_vm5 = vweird.f32 %v1543_v30  ;;  %vm444_vm12 = vweird.f32 %v1743_v27  ;;  %vm1787_vm14 = vmor %vm494_vm8, %vm495_vm9 }
 0x115   : > { %v490_v37 = vmul.f32 %v1741_v26, %v489_v32  ;;  %v467_v44 = vsel %vm466_vm4, %v1537_v11, %v463_v33  ;;  %1546 = vrsqrt.f32 %v1749_v34  ;;  %vm476_vm7 = vmor %vm474_vm6, %vm475_vm5  ;;  %vm504_vm5 = vweird.f32 %v1752_v36 }
 0x116   : > { %v470_v38 = vmul.f32 %v1543_v30, %v469_v35  ;;  %1548 = vrsqrt.f32 %v1752_v36  ;;  %v520_v52 = vmul.f32 %v467_v44, %v1676_v29  ;;  %v482_v29 = vsub.f32 1.5, %v481_v53 }
 0x117   : > { %v403_v40 = vpop.xlane.xlu0 %402  ;;  %v491_v48 = vmul.f32 0.5, %v490_v37 }
 0x118   : > { %v471_v45 = vmul.f32 0.5, %v470_v38  ;;  %v423_v47 = vmul.f32 %v403_v40, %v1670_v22  ;;  %v532_v0 = vmul.f32 %v1763_v54, %v520_v52  ;;  %v483_v8 = vmul.f32 %v1736_v20, %v482_v29  ;;  %v1854_v29 = vld [vmem:[%s2370_s5] ss:$0 sm:$0xff] }
 0x119   : > { %v492_v59 = vsub.f32 1.5, %v491_v48 }
 0x11a   : > { %v472_v49 = vsub.f32 1.5, %v471_v45  ;;  %v431_v50 = vadd.f32 1e-05, %v423_v47  ;;  %v1545_v51 = vpop.eup %1544  ;;  %v544_v10 = vadd.f32 %v1775_v1, %v532_v0  ;;  %v487_v21 = vsel %vm1795_vm15, %v1736_v20, %v483_v8 }
 0x11b   : > { %v439_v58 = vmul.f32 %v1545_v51, %v1743_v27  ;;  %v1766_v22 = vpop.eup %1546  ;;  %v493_v3 = vmul.f32 %v1741_v26, %v492_v59  ;;  %vm445_vm13 = vweird.f32 %v1545_v51  ;;  %v522_v31 = vmul.f32 %v487_v21, %v1674_v28  ;;  %v1902_v21 = vld [vmem:[%s2370_s5 + $0x7] ss:$0 sm:$0xff] }
 0x11c   : > { %v473_v55 = vmul.f32 %v1543_v30, %v472_v49  ;;  %1550 = vrsqrt.f32 %v431_v50  ;;  %v1768_v62 = vpop.eup %1548  ;;  %v509_v6 = vmul.f32 %v1766_v22, %v1749_v34  ;;  %vm1801_vm1 = vmor %vm444_vm12, %vm445_vm13  ;;  %vm454_vm2 = vweird.f32 %v431_v50 }
 0x11d   : > { %v440_v61 = vmul.f32 %v1545_v51, %v439_v58  ;;  %v499_v5 = vmul.f32 %v1768_v62, %v1752_v36  ;;  %v497_v17 = vsel %vm1787_vm14, %v1741_v26, %v493_v3  ;;  %v534_v44 = vmul.f32 %v1763_v54, %v522_v31  ;;  %v1920_v31 = vld [vmem:[%s2370_s5 + $0x8] ss:$0 sm:$0xff] }
 0x11e   : > { %v477_v60 = vsel %vm476_vm7, %v1543_v30, %v473_v55  ;;  %v510_v23 = vmul.f32 %v1766_v22, %v509_v6  ;;  %v523_v27 = vmul.f32 %v497_v17, %v1690_v42  ;;  %vm505_vm6 = vweird.f32 %v1768_v62 }
 0x11f   : > { %v521_v63 = vmul.f32 %v477_v60, %v1692_v43  ;;  %v441_v2 = vmul.f32 0.5, %v440_v61  ;;  %v500_v18 = vmul.f32 %v1768_v62, %v499_v5  ;;  %vm514_vm7 = vweird.f32 %v1749_v34  ;;  %vm506_vm9 = vmor %vm504_vm5, %vm505_vm6 }
 0x120   : > { %v511_v20 = vmul.f32 0.5, %v510_v23  ;;  %v535_v35 = vmul.f32 %v1763_v54, %v523_v27  ;;  %vm515_vm8 = vweird.f32 %v1766_v22  ;;  %v546_v48 = vadd.f32 %v1775_v1, %v534_v44  ;;  %v1915_v27 = vld [vmem:[%s2370_s5 + $0x3] ss:$0 sm:$0xff] }
 0x121   : > { %v533_v43 = vmul.f32 %v1763_v54, %v521_v63  ;;  %v442_v4 = vsub.f32 1.5, %v441_v2  ;;  %v501_v26 = vmul.f32 0.5, %v500_v18  ;;  %vm516_vm10 = vmor %vm514_vm7, %vm515_vm8  ;;  %v1863_v2 = vld [vmem:[%s2371_s6] ss:$0 sm:$0xff] }
 0x122   : > { %v1551_v7 = vpop.eup %1550  ;;  %v512_v42 = vsub.f32 1.5, %v511_v20 }
 0x123   : > { %v545_v11 = vadd.f32 %v1775_v1, %v533_v43  ;;  %v443_v13 = vmul.f32 %v1545_v51, %v442_v4  ;;  %v449_v14 = vmul.f32 %v1551_v7, %v431_v50  ;;  %vm455_vm3 = vweird.f32 %v1551_v7  ;;  %v1868_v43 = vld [vmem:[%s2370_s5 + $0x1] ss:$0 sm:$0xff] }
 0x124   : > { %vm456_vm4 = vmor %vm454_vm2, %vm455_vm3  ;;  %v502_v37 = vsub.f32 1.5, %v501_v26  ;;  %v513_v36 = vmul.f32 %v1766_v22, %v512_v42  ;;  %v694_v9 = vmul.f32 0.0, %v1868_v43  ;;  %v1488_v42 = vld [vmem:[%s2372_s7 + $0x20] sm:$0xff] }
 0x125   : > { %v551_v16 = vpack.c.bf16 %v545_v11, %v544_v10  ;;  %v450_v19 = vmul.f32 %v1551_v7, %v449_v14  ;;  %v447_v24 = vsel %vm1801_vm1, %v1545_v51, %v443_v13  ;;  %v1490_v11 = vld [vmem:[%s2372_s7 + $0x30] sm:$0xff] }
 0x126   : > { %v518_v32 = vmul.f32 %v447_v24, %v1709_v56  ;;  %v547_v56 = vadd.f32 %v1775_v1, %v535_v35  ;;  %v503_v45 = vmul.f32 %v1768_v62, %v502_v37  ;;  %v517_v34 = vsel %vm516_vm10, %v1766_v22, %v513_v36 }
 0x127   : > { %1435 = vmatmul.msk.bf16.vlgmr.msra.gmra.mxu3 %vm342_vm0, %v551_v16  ;;  %v451_v25 = vmul.f32 0.5, %v450_v19  ;;  %v525_v53 = vmul.f32 %v517_v34, %v1688_v41  ;;  %v1848_v41 = vld [vmem:[%s2369_s4] ss:$0 sm:$0xff]  ;;  %v1891_v16 = vld [vmem:[%s2370_s5 + $0x4] ss:$0 sm:$0xff] }
 0x128   : > { %v530_v40 = vmul.f32 %v1763_v54, %v518_v32  ;;  %v552_v50 = vpack.c.bf16 %v547_v56, %v546_v48  ;;  %v507_v51 = vsel %vm506_vm9, %v1768_v62, %v503_v45  ;;  %v1585_v62 = vmov 0.0   ;;  %v1897_v19 = vld [vmem:[%s2370_s5 + $0x6] ss:$0 sm:$0xff]  ;;  %v1950_v48 = vld [vmem:[%s2370_s5 + $0x5] ss:$0 sm:$0xff] }
 0x129   : > { %v452_v30 = vsub.f32 1.5, %v451_v25  ;;  %v524_v52 = vmul.f32 %v507_v51, %v1698_v46  ;;  %v537_v58 = vmul.f32 %v1763_v54, %v525_v53  ;;  %615 = vst [vmem:[#allocation2] sm:$0xff] %v1585_v62  ;;  %v1489_v25 = vld [vmem:[%s2372_s7 + $0x28] sm:$0xff] }
 0x12a   : > { %616 = vst [vmem:[#allocation2 + $0x8] sm:$0xff] %v1585_v62 }
 0x12b   : > { %v453_v33 = vmul.f32 %v1551_v7, %v452_v30  ;;  %v536_v55 = vmul.f32 %v1763_v54, %v524_v52  ;;  %v549_v60 = vadd.f32 %v1775_v1, %v537_v58  ;;  %617 = vst [vmem:[#allocation2 + $0x10] sm:$0x1] %v1585_v62 }
 0x12c   : > { %618 = vst [vmem:[#allocation2 + $0x18] sm:$0xff] %v1585_v62 }
 0x12d   : > { %v457_v38 = vsel %vm456_vm4, %v1551_v7, %v453_v33  ;;  %v548_v59 = vadd.f32 %v1775_v1, %v536_v55  ;;  %620 = vst [vmem:[#allocation2 + $0x28] sm:$0x1] %v1585_v62  ;;  %v1491_v7 = vld [vmem:[%s2372_s7 + $0x38] sm:$0xff] }
 0x12e   : > { %v519_v39 = vmul.f32 %v457_v38, %v1711_v57  ;;  %v542_v57 = vadd.f32 %v1775_v1, %v530_v40  ;;  %621 = vst [vmem:[#allocation2 + $0x30] sm:$0xff] %v1585_v62  ;;  %1317 = vmatpush.bf16.msrb.mxu0 %v1491_v7  ;;  %1494 = vmatpush.bf16.msra.mxu1 %v1491_v7 }
 0x12f   : > { %v553_v61 = vpack.c.bf16 %v549_v60, %v548_v59  ;;  %623 = vst [vmem:[#allocation2 + $0x40] sm:$0x1] %v1585_v62  ;;  %1495 = vmatpush.bf16.msra.mxu2 %v1491_v7 }
 0x130   : > { %v531_v28 = vmul.f32 %v1763_v54, %v519_v39  ;;  %624 = vst [vmem:[#allocation2 + $0x48] sm:$0xff] %v1585_v62 }
 0x131   : > { %626 = vst [vmem:[#allocation2 + $0x58] sm:$0x1] %v1585_v62  ;;  %v659_v22 = vld [vmem:[#allocation2 + $0x7] sm:$0xff] }
 0x132   : > { %v543_v47 = vadd.f32 %v1775_v1, %v531_v28  ;;  %627 = vst [vmem:[#allocation2 + $0x60] sm:$0xff] %v1585_v62  ;;  %v668_v63 = vmul.f32 %v1854_v29, %v659_v22  ;;  %v711_v10 = vld [vmem:[#allocation2 + $0x9] sm:$0xff]  ;;  %1318 = vmatpush.bf16.msrb.mxu0 %v1490_v11  ;;  %1496 = vmatpush.bf16.msra.mxu1 %v1490_v11 }
 0x133   : > { %629 = vst [vmem:[#allocation2 + $0x70] sm:$0x1] %v1585_v62  ;;  %v720_v15 = vmul.f32 %v1884_v12, %v711_v10  ;;  %1497 = vmatpush.bf16.msra.mxu2 %v1490_v11 }
 0x134   : > { %v550_v49 = vpack.c.bf16 %v543_v47, %v542_v57  ;;  %630 = vst [vmem:[#allocation2 + $0x78] sm:$0xff] %v1585_v62  ;;  %v676_v8 = vadd.f32 %v1863_v2, %v668_v63 }
 0x135   : > { %632 = vst [vmem:[#allocation2 + $0x88] sm:$0x1] %v1585_v62 }
 0x136   : > { %1434 = vmatmul.msk.bf16.vlgmr.msra.gmra.mxu0 %vm342_vm0, %v550_v49  ;;  %633 = vst [vmem:[#allocation2 + $0x90] sm:$0xff] %v1585_v62  ;;  %v702_v14 = vadd.f32 %v694_v9, %v676_v8  ;;  %1498 = vmatpush.bf16.msra.mxu1 %v1489_v25 }
 0x137   : > { %1436 = vmatmul.msk.bf16.gmra.mxu3 %vm342_vm0, %v552_v50  ;;  %635 = vst [vmem:[#allocation2 + $0xa0] sm:$0x1] %v1585_v62  ;;  %1319 = vmatpush.bf16.msrb.mxu0 %v1489_v25 }
 0x138   : > { %636 = vst [vmem:[#allocation2 + $0xa8] sm:$0xff] %v1585_v62  ;;  %v728_v33 = vadd.f32 %v720_v15, %v702_v14  ;;  %1499 = vmatpush.bf16.msra.mxu2 %v1489_v25 }
 0x139   : > { %638 = vst [vmem:[#allocation2 + $0xb8] sm:$0x1] %v1585_v62 }
 0x13a   : > { %639 = vst [vmem:[#allocation2 + $0xc0] sm:$0xff] %v1585_v62  ;;  %1500 = vmatpush.bf16.msra.mxu1 %v1488_v42 }
 0x13b   : > { %641 = vst [vmem:[#allocation2 + $0xd0] sm:$0x1] %v1585_v62  ;;  %1320 = vmatpush.bf16.msrb.mxu0 %v1488_v42 }
 0x13c   : > { %642 = vst [vmem:[#allocation2 + $0xd8] sm:$0xff] %v1585_v62  ;;  %1501 = vmatpush.bf16.msra.mxu2 %v1488_v42 }
 0x13d   : > { %643 = vst [vmem:[#allocation2 + $0xe0] sm:$0xff] %v1585_v62 }
 0x13e   : > { %644 = vst [vmem:[#allocation2 + $0xe8] sm:$0x1] %v1585_v62 }
 0x147   : > { %1437 = vmatmul.msk.bf16.gmra.mxu3 %vm342_vm0, %v553_v61 }
 0x1aa   : > { %v600_v46 = vpop.f32.mrf.mxu3 }
 0x1ab   : > { %v601_v54 = vadd.f32 %v1848_v41, %v600_v46 }
 0x1ad   : > { %648 = vst [vmem:[#allocation2 + $0x50] sm:$0xff] %v601_v54  ;;  %v697_v17 = vmul.f32 %v1868_v43, %v601_v54  ;;  %v1934_v40 = vmul.f32 %v1902_v21, %v601_v54  ;;  %v1937_v44 = vmul.f32 %v1891_v16, %v601_v54  ;;  %v1487_v54 = vld [vmem:[%s2372_s7 + $0x18] sm:$0xff] }
 0x1ae   : > { %1321 = vmatpush.bf16.msrb.mxu0 %v1487_v54  ;;  %1502 = vmatpush.bf16.msra.mxu1 %v1487_v54 }
 0x1af   : > { %1503 = vmatpush.bf16.msra.mxu2 %v1487_v54 }
 0x1b2   : > { %v602_v0 = vpop.f32.mrf.mxu3 }
 0x1b3   : > { %v1858_v1 = vadd.f32 %v1848_v41, %v602_v0  ;;  %v595_v3 = vpop.f32.mrf.mxu0 }
 0x1b4   : > { %v817_v4 = vld [vmem:[#allocation2 + $0x4f] sm:$0xff]  ;;  %v596_v5 = vadd.f32 %v1848_v41, %v595_v3 }
 0x1b5   : > { %649 = vst [vmem:[#allocation2 + $0x68] sm:$0xff] %v1858_v1  ;;  %v671_v6 = vmul.f32 %v1854_v29, %v817_v4  ;;  %v1904_v23 = vld [vmem:[#allocation2 + $0x51] sm:$0xff]  ;;  %v1931_v39 = vmul.f32 %v1897_v19, %v817_v4  ;;  %v1957_v49 = vmul.f32 %v1915_v27, %v817_v4  ;;  %v775_v59 = vmul.f32 %v1891_v16, %v1858_v1 }
 0x1b6   : > { %646 = vst [vmem:[#allocation2 + $0x20] sm:$0xff] %v596_v5  ;;  %v723_v35 = vmul.f32 %v1884_v12, %v1904_v23  ;;  %v695_v47 = vmul.f32 %v1868_v43, %v596_v5  ;;  %v1954_v36 = vmul.f32 %v1920_v31, %v1904_v23  ;;  %v772_v53 = vmul.f32 %v1891_v16, %v596_v5 }
 0x1b7   : > { %v679_v13 = vadd.f32 %v1863_v2, %v671_v6  ;;  %v698_v62 = vmul.f32 %v1868_v43, %v1858_v1 }
 0x1b9   : > { %v705_v26 = vadd.f32 %v697_v17, %v679_v13 }
 0x1ba   : > { %v605_v18 = vpop.f32.mrf.mxu3 }
 0x1bb   : > { %v1907_v24 = vadd.f32 %v1848_v41, %v605_v18  ;;  %v597_v30 = vpop.f32.mrf.mxu0  ;;  %v731_v45 = vadd.f32 %v723_v35, %v705_v26  ;;  %v1486_v26 = vld [vmem:[%s2372_s7 + $0x10] sm:$0xff] }
 0x1bc   : > { %v1922_v32 = vld [vmem:[#allocation2 + $0x67] sm:$0xff]  ;;  %v598_v20 = vadd.f32 %v1848_v41, %v597_v30  ;;  %1322 = vmatpush.bf16.msrb.mxu0 %v1486_v26  ;;  %1504 = vmatpush.bf16.msra.mxu1 %v1486_v26 }
 0x1bd   : > { %650 = vst [vmem:[#allocation2 + $0x80] sm:$0xff] %v1907_v24  ;;  %v749_v37 = vmul.f32 %v1915_v27, %v1922_v32  ;;  %v660_v38 = vld [vmem:[#allocation2 + $0x1f] sm:$0xff]  ;;  %v1944_v57 = vld [vmem:[#allocation2 + $0x69] sm:$0xff]  ;;  %v672_v50 = vmul.f32 %v1854_v29, %v1922_v32  ;;  %v854_v61 = vmul.f32 %v1902_v21, %v1907_v24  ;;  %1505 = vmatpush.bf16.msra.mxu2 %v1486_v26 }
 0x1be   : > { %647 = vst [vmem:[#allocation2 + $0x38] sm:$0xff] %v598_v20  ;;  %v669_v28 = vmul.f32 %v1854_v29, %v660_v38  ;;  %v746_v56 = vmul.f32 %v1915_v27, %v660_v38  ;;  %v712_v34 = vld [vmem:[#allocation2 + $0x21] sm:$0xff]  ;;  %v801_v60 = vmul.f32 %v1950_v48, %v1944_v57  ;;  %v773_v3 = vmul.f32 %v1891_v16, %v598_v20 }
 0x1bf   : > { %v757_v55 = vadd.f32 %v749_v37, %v731_v45  ;;  %v721_v0 = vmul.f32 %v1884_v12, %v712_v34  ;;  %v680_v7 = vadd.f32 %v1863_v2, %v672_v50  ;;  %v798_v8 = vmul.f32 %v1950_v48, %v712_v34 }
 0x1c0   : > { %v677_v51 = vadd.f32 %v1863_v2, %v669_v28  ;;  %v754_v52 = vadd.f32 %v746_v56, %v728_v33  ;;  %v851_v9 = vmul.f32 %v1902_v21, %v598_v20  ;;  %v696_v6 = vmul.f32 %v1868_v43, %v598_v20 }
 0x1c1   : > { %v783_v4 = vadd.f32 %v775_v59, %v757_v55  ;;  %v724_v25 = vmul.f32 %v1884_v12, %v1944_v57  ;;  %v706_v42 = vadd.f32 %v698_v62, %v680_v7  ;;  %v853_v7 = vmul.f32 %v1902_v21, %v1858_v1 }
 0x1c2   : > { %v607_v58 = vpop.f32.mrf.mxu3  ;;  %v703_v22 = vadd.f32 %v695_v47, %v677_v51  ;;  %v780_v63 = vadd.f32 %v772_v53, %v754_v52  ;;  %v827_v1 = vmul.f32 %v1897_v19, %v1922_v32 }
 0x1c3   : > { %v1972_v46 = vadd.f32 %v1848_v41, %v607_v58  ;;  %v809_v17 = vadd.f32 %v801_v60, %v783_v4  ;;  %v1485_v58 = vld [vmem:[%s2372_s7 + $0x8] sm:$0xff]  ;;  %v800_v4 = vmul.f32 %v1950_v48, %v1904_v23 }
 0x1c4   : > { %v819_v5 = vld [vmem:[#allocation2 + $0x7f] sm:$0xff]  ;;  %v729_v13 = vadd.f32 %v721_v0, %v703_v22  ;;  %v806_v20 = vadd.f32 %v798_v8, %v780_v63  ;;  %v699_v22 = vmul.f32 %v1868_v43, %v1907_v24  ;;  %1323 = vmatpush.bf16.msrb.mxu0 %v1485_v58  ;;  %1506 = vmatpush.bf16.msra.mxu1 %v1485_v58 }
 0x1c5   : > { %651 = vst [vmem:[#allocation2 + $0x98] sm:$0xff] %v1972_v46  ;;  %v828_v10 = vmul.f32 %v1897_v19, %v819_v5  ;;  %v1985_v11 = vld [vmem:[#allocation2 + $0x81] sm:$0xff]  ;;  %v738_v14 = vld [vmem:[#allocation2 + $0x37] sm:$0xff]  ;;  %v673_v18 = vmul.f32 %v1854_v29, %v819_v5  ;;  %v750_v53 = vmul.f32 %v1915_v27, %v819_v5  ;;  %v732_v5 = vadd.f32 %v724_v25, %v706_v42 }
 0x1c6   : > { %v790_v15 = vld [vmem:[#allocation2 + $0x39] sm:$0xff]  ;;  %v747_v30 = vmul.f32 %v1915_v27, %v738_v14  ;;  %v825_v33 = vmul.f32 %v1897_v19, %v738_v14  ;;  %v670_v35 = vmul.f32 %v1854_v29, %v738_v14  ;;  %v880_v38 = vmul.f32 %v1920_v31, %v1985_v11  ;;  %1507 = vmatpush.bf16.msra.mxu2 %v1485_v58 }
 0x1c7   : > { %v836_v37 = vadd.f32 %v828_v10, %v809_v17  ;;  %v799_v56 = vmul.f32 %v1950_v48, %v790_v15  ;;  %v877_v47 = vmul.f32 %v1920_v31, %v790_v15  ;;  %v681_v52 = vadd.f32 %v1863_v2, %v673_v18  ;;  %v1484_v10 = vld [vmem:[%s2372_s7] sm:$0xff] }
 0x1c8   : > { %v755_v28 = vadd.f32 %v747_v30, %v729_v13  ;;  %v833_v45 = vadd.f32 %v825_v33, %v806_v20  ;;  %v678_v51 = vadd.f32 %v1863_v2, %v670_v35  ;;  %v722_v54 = vmul.f32 %v1884_v12, %v790_v15  ;;  %1324 = vmatpush.bf16.msrb.mxu0 %v1484_v10 }
 0x1c9   : > { %v862_v34 = vadd.f32 %v854_v61, %v836_v37  ;;  %v758_v14 = vadd.f32 %v750_v53, %v732_v5  ;;  %v879_v17 = vmul.f32 %v1920_v31, %v1944_v57  ;;  %v725_v25 = vmul.f32 %v1884_v12, %v1985_v11  ;;  %1508 = vmatpush.bf16.msra.mxu1 %v1484_v10 }
 0x1ca   : > { %v610_v50 = vpop.f32.mrf.mxu3  ;;  %v781_v59 = vadd.f32 %v773_v3, %v755_v28  ;;  %v859_v60 = vadd.f32 %v851_v9, %v833_v45  ;;  %v704_v62 = vadd.f32 %v696_v6, %v678_v51  ;;  %v707_v9 = vadd.f32 %v699_v22, %v681_v52  ;;  %1509 = vmatpush.bf16.msra.mxu2 %v1484_v10 }
 0x1cb   : > { %v2004_v55 = vadd.f32 %v1848_v41, %v610_v50  ;;  %v2010_v61 = vadd.f32 %v880_v38, %v862_v34  ;;  %v777_v35 = vmul.f32 %v1891_v16, %v1972_v46  ;;  %v802_v45 = vmul.f32 %v1950_v48, %v1985_v11 }
 0x1cc   : > { %v807_v63 = vadd.f32 %v799_v56, %v781_v59  ;;  %v2015_v0 = vadd.f32 %v877_v47, %v859_v60  ;;  %v730_v3 = vadd.f32 %v722_v54, %v704_v62  ;;  %v2024_v6 = vld [vmem:[#allocation2 + $0x97] sm:$0xff]  ;;  %v733_v33 = vadd.f32 %v725_v25, %v707_v9 }
 0x1cd   : > { %652 = vst [vmem:[#allocation2 + $0xb0] sm:$0xff] %v2004_v55  ;;  %v2022_v8 = vmul.f32 0.70710677, %v2010_v61  ;;  %v751_v32 = vmul.f32 %v1915_v27, %v2024_v6  ;;  %v2054_v37 = vld [vmem:[#allocation2 + $0x99] sm:$0xff]  ;;  %v829_v60 = vmul.f32 %v1897_v19, %v2024_v6  ;;  %v855_v9 = vmul.f32 %v1902_v21, %v1972_v46 }
 0x1ce   : > { %v834_v13 = vadd.f32 %v1931_v39, %v807_v63  ;;  %v2031_v23 = vmul.f32 0.70710677, %v2015_v0  ;;  %v756_v15 = vadd.f32 %v1957_v49, %v730_v3  ;;  %v776_v49 = vmul.f32 %v1891_v16, %v1907_v24 }
 0x1cf   : > { %v1029_v18 = vmul.f32 %v2022_v8, %v2022_v8  ;;  %v759_v47 = vadd.f32 %v751_v32, %v733_v33  ;;  %v803_v50 = vmul.f32 %v1950_v48, %v2054_v37  ;;  %v856_v25 = vmul.f32 %v1902_v21, %v2004_v55 }
 0x1d0   : > { %v860_v39 = vadd.f32 %v1934_v40, %v834_v13  ;;  %v909_v26 = vmul.f32 %v2031_v23, %v2031_v23  ;;  %v782_v57 = vadd.f32 %v1937_v44, %v756_v15  ;;  %v784_v24 = vadd.f32 %v776_v49, %v758_v14 }
 0x1d1   : > { %v2050_v20 = vmin.f32 %v1029_v18, 16.0  ;;  %v785_v3 = vadd.f32 %v777_v35, %v759_v47 }
 0x1d2   : > { %v612_v30 = vpop.f32.mrf.mxu3  ;;  %v2058_v38 = vadd.f32 %v1954_v36, %v860_v39  ;;  %v2060_v42 = vmin.f32 %v909_v26, 16.0  ;;  %v808_v44 = vadd.f32 %v800_v4, %v782_v57  ;;  %v810_v11 = vadd.f32 %v802_v45, %v784_v24 }
 0x1d3   : > { %v613_v40 = vadd.f32 %v1848_v41, %v612_v30  ;;  %v1031_v28 = vmul.f32 2.1237322e-06, %v2050_v20  ;;  %v1042_v56 = vmul.f32 3.8918573e-05, %v2050_v20 }
 0x1d4   : > { %v2067_v41 = vmul.f32 0.70710677, %v2058_v38  ;;  %v911_v36 = vmul.f32 2.1237322e-06, %v2060_v42  ;;  %v922_v51 = vmul.f32 3.8918573e-05, %v2060_v42  ;;  %v835_v34 = vadd.f32 %v827_v1, %v808_v44 }
 0x1d5   : > { %653 = vst [vmem:[#allocation2 + $0xc8] sm:$0xff] %v613_v40  ;;  %v1032_v52 = vadd.f32 0.00028619796, %v1031_v28  ;;  %v1043_v53 = vadd.f32 0.001143296, %v1042_v56  ;;  %v837_v49 = vadd.f32 %v829_v60, %v810_v11  ;;  %v2097_v35 = vld [vmem:[#allocation2 + $0xaf] sm:$0xff]  ;;  %v811_v28 = vadd.f32 %v803_v50, %v785_v3 }
 0x1d6   : > { %v912_v58 = vadd.f32 0.00028619796, %v911_v36  ;;  %v949_v59 = vmul.f32 %v2067_v41, %v2067_v41  ;;  %v923_v62 = vadd.f32 0.001143296, %v922_v51  ;;  %v861_v54 = vadd.f32 %v853_v7, %v835_v34 }
 0x1d7   : > { %v1033_v22 = vmul.f32 %v1032_v52, %v2050_v20  ;;  %v1044_v63 = vmul.f32 %v1043_v53, %v2050_v20  ;;  %v830_v53 = vmul.f32 %v1897_v19, %v2097_v35 }
 0x1d8   : > { %v913_v4 = vmul.f32 %v912_v58, %v2060_v42  ;;  %v2080_v5 = vmin.f32 %v949_v59, 16.0  ;;  %v924_v10 = vmul.f32 %v923_v62, %v2060_v42  ;;  %v2085_v13 = vadd.f32 %v879_v17, %v861_v54 }
 0x1d9   : > { %v1034_v1 = vadd.f32 0.0036580483, %v1033_v22  ;;  %v1045_v14 = vadd.f32 0.014752088, %v1044_v63 }
 0x1da   : > { %v914_v15 = vadd.f32 0.0036580483, %v913_v4  ;;  %v951_v7 = vmul.f32 2.1237322e-06, %v2080_v5  ;;  %v962_v18 = vmul.f32 3.8918573e-05, %v2080_v5 }
 0x1db   : > { %v925_v39 = vadd.f32 0.014752088, %v924_v10  ;;  %v2092_v26 = vmul.f32 0.70710677, %v2085_v13  ;;  %v1035_v32 = vmul.f32 %v1034_v1, %v2050_v20  ;;  %v1046_v33 = vmul.f32 %v1045_v14, %v2050_v20 }
 0x1dc   : > { %v915_v17 = vmul.f32 %v914_v15, %v2060_v42  ;;  %v952_v30 = vadd.f32 0.00028619796, %v951_v7  ;;  %v963_v57 = vadd.f32 0.001143296, %v962_v18  ;;  %v838_v7 = vadd.f32 %v830_v53, %v811_v28 }
 0x1dd   : > { %v926_v40 = vmul.f32 %v925_v39, %v2060_v42  ;;  %v989_v24 = vmul.f32 %v2092_v26, %v2092_v26  ;;  %v1036_v44 = vadd.f32 0.05243302, %v1035_v32  ;;  %v1047_v47 = vadd.f32 0.112945676, %v1046_v33 }
 0x1de   : > { %v916_v56 = vadd.f32 0.05243302, %v915_v17  ;;  %v953_v45 = vmul.f32 %v952_v30, %v2080_v5  ;;  %v964_v36 = vmul.f32 %v963_v57, %v2080_v5  ;;  %v863_v28 = vadd.f32 %v855_v9, %v837_v49 }
 0x1df   : > { %v927_v51 = vadd.f32 0.112945676, %v926_v40  ;;  %v2104_v34 = vmin.f32 %v989_v24, 16.0  ;;  %v1037_v52 = vmul.f32 %v1036_v44, %v2050_v20  ;;  %v1048_v50 = vmul.f32 %v1047_v47, %v2050_v20 }
 0x1e0   : > { %v917_v58 = vmul.f32 %v916_v56, %v2060_v42  ;;  %v954_v59 = vadd.f32 0.0036580483, %v953_v45  ;;  %v965_v11 = vadd.f32 0.014752088, %v964_v36  ;;  %v881_v53 = vmul.f32 %v1920_v31, %v2054_v37 }
 0x1e1   : > { %v928_v60 = vmul.f32 %v927_v51, %v2060_v42  ;;  %v991_v62 = vmul.f32 2.1237322e-06, %v2104_v34  ;;  %v1002_v54 = vmul.f32 3.8918573e-05, %v2104_v34  ;;  %v1038_v22 = vadd.f32 0.18741608, %v1037_v52 }
 0x1e2   : > { %v918_v63 = vadd.f32 0.18741608, %v917_v58  ;;  %v955_v4 = vmul.f32 %v954_v59, %v2080_v5  ;;  %v966_v3 = vmul.f32 %v965_v11, %v2080_v5  ;;  %v1049_v10 = vadd.f32 0.4994258, %v1048_v50 }
 0x1e3   : > { %v929_v1 = vadd.f32 0.4994258, %v928_v60  ;;  %v992_v14 = vadd.f32 0.00028619796, %v991_v62  ;;  %v1003_v15 = vadd.f32 0.001143296, %v1002_v54  ;;  %v1039_v32 = vmul.f32 %v1038_v22, %v2050_v20 }
 0x1e4   : > { %v956_v18 = vadd.f32 0.05243302, %v955_v4  ;;  %v967_v39 = vadd.f32 0.112945676, %v966_v3  ;;  %v1050_v17 = vmul.f32 %v1049_v10, %v2050_v20  ;;  %v919_v30 = vmul.f32 %v918_v63, %v2060_v42 }
 0x1e5   : > { %v930_v57 = vmul.f32 %v929_v1, %v2060_v42  ;;  %v993_v33 = vmul.f32 %v992_v14, %v2104_v34  ;;  %v1004_v40 = vmul.f32 %v1003_v15, %v2104_v34  ;;  %v864_v20 = vadd.f32 %v856_v25, %v838_v7  ;;  %v2129_v42 = vld [vmem:[#allocation2 + $0xb1] sm:$0xff] }
 0x1e6   : > { %v957_v24 = vmul.f32 %v956_v18, %v2080_v5  ;;  %v968_v44 = vmul.f32 %v967_v39, %v2080_v5  ;;  %v2124_v56 = vadd.f32 1.0, %v1050_v17  ;;  %v920_v58 = vadd.f32 1.1283791, %v919_v30 }
 0x1e7   : > { %v2126_v45 = vadd.f32 1.0, %v930_v57  ;;  %v994_v36 = vadd.f32 0.0036580483, %v993_v33  ;;  %v1005_v47 = vadd.f32 0.014752088, %v1004_v40  ;;  %v2140_v60 = vmul.f32 0.5, %v2015_v0 }
 0x1e8   : > { %v958_v51 = vadd.f32 0.18741608, %v957_v24  ;;  %v969_v52 = vadd.f32 0.4994258, %v968_v44  ;;  %1552 = vrcp.f32 %v2124_v56  ;;  %v1040_v9 = vadd.f32 1.1283791, %v1039_v32 }
 0x1e9   : > { %1554 = vrcp.f32 %v2126_v45  ;;  %v943_v59 = vand.u32 2147483648, %v2126_v45  ;;  %v995_v25 = vmul.f32 %v994_v36, %v2104_v34  ;;  %v1006_v50 = vmul.f32 %v1005_v47, %v2104_v34 }
 0x1ea   : > { %v959_v49 = vmul.f32 %v958_v51, %v2080_v5  ;;  %v970_v11 = vmul.f32 %v969_v52, %v2080_v5  ;;  %v2143_v62 = vmul.f32 0.5, %v2058_v38  ;;  %v2146_v54 = vmul.f32 0.5, %v2010_v61 }
 0x1eb   : > { %v882_v22 = vmul.f32 %v1920_v31, %v2129_v42  ;;  %v941_v63 = vand.u32 2147483647, %v2126_v45  ;;  %v996_v5 = vadd.f32 0.05243302, %v995_v25  ;;  %v2153_v3 = vadd.f32 %v881_v53, %v863_v28 }
 0x1ec   : > { %v2151_v4 = vadd.f32 1.0, %v970_v11  ;;  %v960_v10 = vadd.f32 1.1283791, %v959_v49  ;;  %v1007_v1 = vadd.f32 0.112945676, %v1006_v50  ;;  %v2156_v0 = vmul.f32 %v1040_v9, %v2022_v8 }
 0x1ed   : > { %v2158_v38 = vadd.f32 %v882_v22, %v864_v20  ;;  %v921_v61 = vmul.f32 %v920_v58, %v2031_v23  ;;  %vm937_vm11 = vweird.f32 %v2126_v45  ;;  %v944_v15 = vor.u32 1.1754944e-38, %v943_v59 }
 0x1ee   : > { %v2160_v14 = vpop.eup %1552  ;;  %1556 = vrcp.f32 %v2151_v4  ;;  %v997_v18 = vmul.f32 %v996_v5, %v2104_v34  ;;  %v1008_v39 = vmul.f32 %v1007_v1, %v2104_v34  ;;  %v1061_v32 = vand.u32 2147483647, %v2124_v56 }
 0x1ef   : > { %v1555_v7 = vpop.eup %1554  ;;  %v1053_v8 = vmul.f32 %v2160_v14, %v2124_v56  ;;  %vm2171_vm12 = vcmp.eq.f32.partialorder %v941_v63, 8.507059e+37  ;;  %v981_v23 = vand.u32 2147483647, %v2151_v4  ;;  %vm1057_vm13 = vweird.f32 %v2124_v56 }
 0x1f0   : > { %v933_v17 = vmul.f32 %v1555_v7, %v2126_v45  ;;  %v1063_v57 = vand.u32 2147483648, %v2124_v56  ;;  %v961_v33 = vmul.f32 %v960_v10, %v2067_v41  ;;  %v998_v40 = vadd.f32 0.18741608, %v997_v18 }
 0x1f1   : > { %v1009_v24 = vadd.f32 0.4994258, %v1008_v39  ;;  %v1054_v44 = vsub.f32 1.0, %v1053_v8  ;;  %v983_v36 = vand.u32 2147483648, %v2151_v4  ;;  %v2181_v47 = vmul.f32 0.70710677, %v2153_v3 }
 0x1f2   : > { %v934_v28 = vsub.f32 1.0, %v933_v17  ;;  %v2184_v20 = vmul.f32 0.70710677, %v2158_v38  ;;  %vm938_vm14 = vweird.f32 %v1555_v7  ;;  %vm977_vm15 = vweird.f32 %v2151_v4 }
 0x1f3   : > { %v1010_v51 = vmul.f32 %v1009_v24, %v2104_v34  ;;  %v1055_v52 = vmul.f32 %v2160_v14, %v1054_v44  ;;  %vm2189_vm1 = vcmp.eq.f32.partialorder %v1061_v32, 8.507059e+37  ;;  %v999_v59 = vmul.f32 %v998_v40, %v2104_v34  ;;  %vm939_vm4 = vmor %vm937_vm11, %vm938_vm14 }
 0x1f4   : > { %v1557_v53 = vpop.eup %1556  ;;  %v935_v58 = vmul.f32 %v1555_v7, %v934_v28  ;;  %v1069_v9 = vmul.f32 %v2181_v47, %v2181_v47  ;;  %v1109_v49 = vmul.f32 %v2184_v20, %v2184_v20  ;;  %vm2199_vm2 = vcmp.eq.f32.partialorder %v981_v23, 8.507059e+37 }
 0x1f5   : > { %v973_v11 = vmul.f32 %v1557_v53, %v2151_v4  ;;  %v2203_v50 = vadd.f32 1.0, %v1010_v51  ;;  %vm1058_vm3 = vweird.f32 %v2160_v14  ;;  %v984_v63 = vor.u32 1.1754944e-38, %v983_v36 }
 0x1f6   : > { %v936_v22 = vadd.f32 %v1555_v7, %v935_v58  ;;  %v1056_v34 = vadd.f32 %v2160_v14, %v1055_v52  ;;  %v2207_v5 = vmin.f32 %v1069_v9, 16.0  ;;  %v1064_v1 = vor.u32 1.1754944e-38, %v1063_v57  ;;  %vm2217_vm6 = vmor %vm1057_vm13, %vm1058_vm3 }
 0x1f7   : > { %v974_v10 = vsub.f32 1.0, %v973_v11  ;;  %1558 = vrcp.f32 %v2203_v50  ;;  %v2213_v18 = vmin.f32 %v1109_v49, 16.0  ;;  %vm978_vm5 = vweird.f32 %v1557_v53 }
 0x1f8   : > { %v940_v39 = vsel %vm939_vm4, %v1555_v7, %v936_v22  ;;  %v1000_v8 = vadd.f32 1.1283791, %v999_v59  ;;  %v674_v17 = vmul.f32 %v1854_v29, %v2024_v6  ;;  %v1060_v57 = vsel %vm2217_vm6, %v2160_v14, %v1056_v34  ;;  %vm979_vm7 = vmor %vm977_vm15, %vm978_vm5 }
 0x1f9   : > { %v945_v45 = vsel %vm2171_vm12, %v944_v15, %v940_v39  ;;  %v975_v23 = vmul.f32 %v1557_v53, %v974_v10  ;;  %v1071_v7 = vmul.f32 2.1237322e-06, %v2207_v5  ;;  %v1021_v56 = vand.u32 2147483647, %v2203_v50 }
 0x1fa   : > { %v946_v40 = vmul.f32 %v945_v45, %v921_v61  ;;  %v1023_v24 = vand.u32 2147483648, %v2203_v50  ;;  %v675_v44 = vmul.f32 %v1854_v29, %v2097_v35  ;;  %v1082_v30 = vmul.f32 3.8918573e-05, %v2207_v5 }
 0x1fb   : > { %v976_v28 = vadd.f32 %v1557_v53, %v975_v23  ;;  %v1072_v6 = vadd.f32 0.00028619796, %v1071_v7  ;;  %v1111_v15 = vmul.f32 2.1237322e-06, %v2213_v18  ;;  %v1001_v14 = vmul.f32 %v1000_v8, %v2092_v26 }
 0x1fc   : > { %v1438_v36 = vclamps-f32 %v946_v40, 1.0  ;;  %v1065_v61 = vsel %vm2189_vm1, %v1064_v1, %v1060_v57  ;;  %v1122_v51 = vmul.f32 3.8918573e-05, %v2213_v18  ;;  %v1083_v59 = vadd.f32 0.001143296, %v1082_v30 }
 0x1fd   : > { %v1559_v52 = vpop.eup %1558  ;;  %v980_v29 = vsel %vm979_vm7, %v1557_v53, %v976_v28  ;;  %v1073_v58 = vmul.f32 %v1072_v6, %v2207_v5  ;;  %v1112_v9 = vadd.f32 0.00028619796, %v1111_v15  ;;  %vm1017_vm8 = vweird.f32 %v2203_v50 }
 0x1fe   : > { %v985_v49 = vsel %vm2199_vm2, %v984_v63, %v980_v29  ;;  %v1013_v11 = vmul.f32 %v1559_v52, %v2203_v50  ;;  %vm2247_vm9 = vcmp.eq.f32.partialorder %v1021_v56, 8.507059e+37  ;;  %v1024_v41 = vor.u32 1.1754944e-38, %v1023_v24 }
 0x1ff   : > { %v986_v4 = vmul.f32 %v985_v49, %v961_v33  ;;  %v1066_v22 = vmul.f32 %v1065_v61, %v2156_v0  ;;  %v1084_v53 = vmul.f32 %v1083_v59, %v2207_v5  ;;  %v1074_v10 = vadd.f32 0.0036580483, %v1073_v58 }
 0x200   : > { %v1014_v34 = vsub.f32 1.0, %v1013_v11  ;;  %v1113_v1 = vmul.f32 %v1112_v9, %v2213_v18  ;;  %v1123_v25 = vadd.f32 0.001143296, %v1122_v51  ;;  %v1229_v39 = vadd.f32 1.0, %v1438_v36 }
 0x201   : > { %v1439_v63 = vclamps-f32 %v986_v4, 1.0  ;;  %v1085_v8 = vadd.f32 0.014752088, %v1084_v53  ;;  %v682_v32 = vadd.f32 %v1863_v2, %v674_v17  ;;  %vm1018_vm10 = vweird.f32 %v1559_v52 }
 0x202   : > { %v1015_v45 = vmul.f32 %v1559_v52, %v1014_v34  ;;  %v1114_v23 = vadd.f32 0.0036580483, %v1113_v1  ;;  %v1124_v33 = vmul.f32 %v1123_v25, %v2213_v18  ;;  %v1441_v7 = vclamps-f32 %v1066_v22, 1.0  ;;  %vm1019_vm11 = vmor %vm1017_vm8, %vm1018_vm10 }
 0x203   : > { %v1230_v57 = vadd.f32 1.0, %v1439_v63  ;;  %v1086_v0 = vmul.f32 %v1085_v8, %v2207_v5  ;;  %v683_v40 = vadd.f32 %v1863_v2, %v675_v44  ;;  %v1075_v24 = vmul.f32 %v1074_v10, %v2207_v5  ;;  %v769_v10 = vld [vmem:[#allocation2 + $0xb0] sm:$0xff] }
 0x204   : > { %v1016_v56 = vadd.f32 %v1559_v52, %v1015_v45  ;;  %v1125_v28 = vadd.f32 0.014752088, %v1124_v33  ;;  %v700_v6 = vmul.f32 %v1868_v43, %v1972_v46  ;;  %v1237_v17 = vmul.f32 %v1229_v39, %v2140_v60  ;;  %v770_v39 = vld [vmem:[#allocation2 + $0xc8] sm:$0xff] }
 0x205   : > { %v1238_v30 = vmul.f32 %v1230_v57, %v2143_v62  ;;  %v1087_v15 = vadd.f32 0.112945676, %v1086_v0  ;;  %v701_v36 = vmul.f32 %v1868_v43, %v2004_v55  ;;  %v1115_v2 = vmul.f32 %v1114_v23, %v2213_v18  ;;  %v744_v43 = vld [vmem:[#allocation2 + $0xc7] sm:$0xff] }
 0x206   : > { %v1020_v61 = vsel %vm1019_vm11, %v1559_v52, %v1016_v56  ;;  %v1126_v44 = vmul.f32 %v1125_v28, %v2213_v18  ;;  %v708_v51 = vadd.f32 %v700_v6, %v682_v32  ;;  %v1076_v50 = vadd.f32 0.05243302, %v1075_v24  ;;  %v796_v56 = vld [vmem:[#allocation2 + $0xc9] sm:$0xff] }
 0x207   : > { %v1245_v29 = vpack.c.bf16 %v1238_v30, %v1237_v17  ;;  %v1025_v46 = vsel %vm2247_vm9, %v1024_v41, %v1020_v61  ;;  %v1088_v60 = vmul.f32 %v1087_v15, %v2207_v5  ;;  %v709_v62 = vadd.f32 %v701_v36, %v683_v40  ;;  %v875_v61 = vld [vmem:[#allocation2 + $0xe1] sm:$0xff] }
 0x208   : > { %v1026_v58 = vmul.f32 %v1025_v46, %v1001_v14  ;;  %v1127_v59 = vadd.f32 0.112945676, %v1126_v44  ;;  %v726_v9 = vmul.f32 %v1884_v12, %v2054_v37  ;;  %v1232_v55 = vadd.f32 1.0, %v1441_v7 }
 0x209   : > { %1325 = vmatmul.bf16.vlgmr.msrb.gmra.mxu0 %v1245_v29  ;;  %v1089_v52 = vadd.f32 0.4994258, %v1088_v60  ;;  %v727_v49 = vmul.f32 %v1884_v12, %v2129_v42  ;;  %v752_v11 = vmul.f32 %v1915_v27, %v2097_v35  ;;  %v1116_v4 = vadd.f32 0.05243302, %v1115_v2 }
 0x20a   : > { %v1440_v26 = vclamps-f32 %v1026_v58, 1.0  ;;  %v1128_v41 = vmul.f32 %v1127_v59, %v2213_v18  ;;  %v734_v14 = vadd.f32 %v726_v9, %v708_v51  ;;  %v895_v22 = vmul.f32 0.5, %v2085_v13 }
 0x20b   : > { %v1090_v53 = vmul.f32 %v1089_v52, %v2207_v5  ;;  %v735_v37 = vadd.f32 %v727_v49, %v709_v62  ;;  %v753_v34 = vmul.f32 %v1915_v27, %v744_v43  ;;  %v1077_v25 = vmul.f32 %v1076_v50, %v2207_v5 }
 0x20c   : > { %v1231_v1 = vadd.f32 1.0, %v1440_v26  ;;  %v1129_v12 = vadd.f32 0.4994258, %v1128_v41  ;;  %v760_v63 = vadd.f32 %v752_v11, %v734_v14  ;;  %v1240_v35 = vmul.f32 %v1232_v55, %v2146_v54  ;;  %v823_v54 = vld [vmem:[#allocation2 + $0xdf] sm:$0xff] }
 0x20d   : > { %v2284_v8 = vadd.f32 1.0, %v1090_v53  ;;  %v761_v32 = vadd.f32 %v753_v34, %v735_v37  ;;  %v1117_v13 = vmul.f32 %v1116_v4, %v2213_v18  ;;  %v778_v33 = vmul.f32 %v1891_v16, %v769_v10 }
 0x20e   : > { %v1239_v45 = vmul.f32 %v1231_v1, %v895_v22  ;;  %v1130_v23 = vmul.f32 %v1129_v12, %v2213_v18  ;;  %v779_v27 = vmul.f32 %v1891_v16, %v770_v39  ;;  %v1078_v7 = vadd.f32 0.18741608, %v1077_v25 }
 0x20f   : > { %1560 = vrcp.f32 %v2284_v8  ;;  %v786_v40 = vadd.f32 %v778_v33, %v760_v63  ;;  %v804_v28 = vmul.f32 %v1950_v48, %v2129_v42  ;;  %v1118_v6 = vadd.f32 0.18741608, %v1117_v13 }
 0x210   : > { %v1246_v57 = vpack.c.bf16 %v1240_v35, %v1239_v45  ;;  %v1131_v0 = vadd.f32 1.0, %v1130_v23  ;;  %v787_v24 = vadd.f32 %v779_v27, %v761_v32  ;;  %v805_v17 = vmul.f32 %v1950_v48, %v796_v56 }
 0x211   : > { %v812_v30 = vadd.f32 %v804_v28, %v786_v40  ;;  %v831_v15 = vmul.f32 %v1897_v19, %v744_v43  ;;  %v832_v16 = vmul.f32 %v1897_v19, %v823_v54  ;;  %v1079_v36 = vmul.f32 %v1078_v7, %v2207_v5 }
 0x212   : > { %1330 = vmatmul.bf16.vlgmr.msra.gmra.mxu1 %v1246_v57  ;;  %1562 = vrcp.f32 %v1131_v0  ;;  %v813_v44 = vadd.f32 %v805_v17, %v787_v24  ;;  %v857_v29 = vmul.f32 %v1902_v21, %v770_v39  ;;  %v858_v42 = vmul.f32 0.0, %v1902_v21 }
 0x213   : > { %v839_v51 = vadd.f32 %v831_v15, %v812_v30  ;;  %v1119_v60 = vmul.f32 %v1118_v6, %v2213_v18  ;;  %v883_v58 = vmul.f32 %v1920_v31, %v796_v56  ;;  %v884_v19 = vmul.f32 %v1920_v31, %v875_v61 }
 0x214   : > { %v840_v48 = vadd.f32 %v832_v16, %v813_v44  ;;  %v1103_v59 = vand.u32 2147483648, %v2284_v8  ;;  %v1080_v9 = vadd.f32 1.1283791, %v1079_v36  ;;  %v1101_v49 = vand.u32 2147483647, %v2284_v8 }
 0x215   : > { %v1561_v2 = vpop.eup %1560  ;;  %v865_v62 = vadd.f32 %v857_v29, %v839_v51  ;;  %v1120_v18 = vadd.f32 1.1283791, %v1119_v60  ;;  %vm1097_vm13 = vweird.f32 %v2284_v8  ;;  %v1141_v14 = vand.u32 2147483647, %v1131_v0 }
 0x216   : > { %v1093_v46 = vmul.f32 %v1561_v2, %v2284_v8  ;;  %v866_v55 = vadd.f32 %v858_v42, %v840_v48  ;;  %vm1098_vm12 = vweird.f32 %v1561_v2  ;;  %v1104_v41 = vor.u32 1.1754944e-38, %v1103_v59 }
 0x217   : > { %v2304_v52 = vadd.f32 %v883_v58, %v865_v62  ;;  %v1143_v22 = vand.u32 2147483648, %v1131_v0  ;;  %vm1099_vm14 = vmor %vm1097_vm13, %vm1098_vm12  ;;  %v1081_v10 = vmul.f32 %v1080_v9, %v2181_v47  ;;  %vm1102_vm1 = vcmp.eq.f32.partialorder %v1101_v49, 8.507059e+37 }
 0x218   : > { %v1563_v50 = vpop.eup %1562  ;;  %v1094_v5 = vsub.f32 1.0, %v1093_v46  ;;  %v2308_v26 = vadd.f32 %v884_v19, %v866_v55  ;;  %vm1137_vm2 = vweird.f32 %v1131_v0  ;;  %v1121_v8 = vmul.f32 %v1120_v18, %v2184_v20 }
 0x219   : > { %v1133_v43 = vmul.f32 %v1563_v50, %v1131_v0  ;;  %v2311_v31 = vmul.f32 0.70710677, %v2304_v52  ;;  %vm1138_vm15 = vweird.f32 %v1563_v50  ;;  %vm1142_vm4 = vcmp.eq.f32.partialorder %v1141_v14, 8.507059e+37 }
 0x21a   : > { %v1095_v21 = vmul.f32 %v1561_v2, %v1094_v5  ;;  %v2314_v37 = vmul.f32 0.70710677, %v2308_v26  ;;  %vm1139_vm3 = vmor %vm1137_vm2, %vm1138_vm15  ;;  %v1144_v32 = vor.u32 1.1754944e-38, %v1143_v22  ;;  %v897_v20 = vmul.f32 0.5, %v2153_v3 }
 0x21b   : > { %v1134_v11 = vsub.f32 1.0, %v1133_v43  ;;  %v1149_v34 = vmul.f32 %v2311_v31, %v2311_v31  ;;  %v898_v15 = vmul.f32 0.5, %v2158_v38 }
 0x21c   : > { %v1096_v4 = vadd.f32 %v1561_v2, %v1095_v21  ;;  %v1189_v39 = vmul.f32 %v2314_v37, %v2314_v37 }
 0x21d   : > { %v1135_v53 = vmul.f32 %v1563_v50, %v1134_v11  ;;  %v1150_v63 = vmin.f32 %v1149_v34, 16.0 }
 0x21e   : > { %v1100_v1 = vsel %vm1099_vm14, %v1561_v2, %v1096_v4  ;;  %v1190_v33 = vmin.f32 %v1189_v39, 16.0 }
 0x21f   : > { %v1105_v25 = vsel %vm1102_vm1, %v1104_v41, %v1100_v1  ;;  %v1136_v12 = vadd.f32 %v1563_v50, %v1135_v53  ;;  %v1151_v13 = vmul.f32 2.1237322e-06, %v1150_v63  ;;  %v1162_v23 = vmul.f32 3.8918573e-05, %v1150_v63 }
 0x220   : > { %v1106_v35 = vmul.f32 %v1105_v25, %v1081_v10  ;;  %v1191_v40 = vmul.f32 2.1237322e-06, %v1190_v33  ;;  %v1202_v54 = vmul.f32 3.8918573e-05, %v1190_v33 }
 0x221   : > { %v1140_v45 = vsel %vm1139_vm3, %v1563_v50, %v1136_v12  ;;  %v1152_v7 = vadd.f32 0.00028619796, %v1151_v13  ;;  %v1163_v0 = vadd.f32 0.001143296, %v1162_v23 }
 0x222   : > { %v1442_v47 = vclamps-f32 %v1106_v35, 1.0  ;;  %v1145_v27 = vsel %vm1142_vm4, %v1144_v32, %v1140_v45  ;;  %v1192_v17 = vadd.f32 0.00028619796, %v1191_v40  ;;  %v1203_v30 = vadd.f32 0.001143296, %v1202_v54 }
 0x223   : > { %v1146_v57 = vmul.f32 %v1145_v27, %v1121_v8  ;;  %v1153_v28 = vmul.f32 %v1152_v7, %v1150_v63  ;;  %v1164_v6 = vmul.f32 %v1163_v0, %v1150_v63 }
 0x224   : > { %v1233_v56 = vadd.f32 1.0, %v1442_v47  ;;  %v1193_v61 = vmul.f32 %v1192_v17, %v1190_v33  ;;  %v1204_v44 = vmul.f32 %v1203_v30, %v1190_v33 }
 0x225   : > { %v1443_v24 = vclamps-f32 %v1146_v57, 1.0  ;;  %v1165_v36 = vadd.f32 0.014752088, %v1164_v6  ;;  %v1154_v2 = vadd.f32 0.0036580483, %v1153_v28 }
 0x226   : > { %v1241_v51 = vmul.f32 %v1233_v56, %v897_v20  ;;  %v1194_v46 = vadd.f32 0.0036580483, %v1193_v61  ;;  %v1205_v60 = vadd.f32 0.014752088, %v1204_v44 }
 0x227   : > { %v1234_v16 = vadd.f32 1.0, %v1443_v24  ;;  %v1166_v42 = vmul.f32 %v1165_v36, %v1150_v63  ;;  %v1155_v58 = vmul.f32 %v1154_v2, %v1150_v63  ;;  %v900_v36 = vmul.f32 0.5, %v2308_v26 }
 0x228   : > { %v1206_v19 = vmul.f32 %v1205_v60, %v1190_v33  ;;  %v1195_v3 = vmul.f32 %v1194_v46, %v1190_v33 }
 0x229   : > { %v1242_v29 = vmul.f32 %v1234_v16, %v898_v15  ;;  %v1167_v62 = vadd.f32 0.112945676, %v1166_v42  ;;  %v1156_v38 = vadd.f32 0.05243302, %v1155_v58  ;;  %v1569_v58 = vld [vmem:[%s1652_s14 + $0x8] sm:$0xff] }
 0x22a   : > { %v1207_v5 = vadd.f32 0.112945676, %v1206_v19  ;;  %v1196_v55 = vadd.f32 0.05243302, %v1195_v3 }
 0x22b   : > { %v1247_v48 = vpack.c.bf16 %v1242_v29, %v1241_v51  ;;  %v1168_v50 = vmul.f32 %v1167_v62, %v1150_v63  ;;  %v1157_v18 = vmul.f32 %v1156_v38, %v1150_v63  ;;  %v1571_v38 = vld [vmem:[%s1652_s14 + $0x18] sm:$0xff] }
 0x22c   : > { %v1208_v9 = vmul.f32 %v1207_v5, %v1190_v33  ;;  %v1197_v4 = vmul.f32 %v1196_v55, %v1190_v33 }
 0x22d   : > { %1335 = vmatmul.bf16.vlgmr.msra.gmra.mxu2 %v1247_v48  ;;  %v1169_v59 = vadd.f32 0.4994258, %v1168_v50  ;;  %v1158_v14 = vadd.f32 0.18741608, %v1157_v18  ;;  %v1570_v50 = vld [vmem:[%s1652_s14 + $0x10] sm:$0xff] }
 0x22e   : > { %v1209_v21 = vadd.f32 0.4994258, %v1208_v9  ;;  %v1198_v22 = vadd.f32 0.18741608, %v1197_v4  ;;  %v1573_v4 = vld [vmem:[%s1652_s14 + $0x28] sm:$0xff] }
 0x22f   : > { %v1170_v43 = vmul.f32 %v1169_v59, %v1150_v63  ;;  %v1159_v34 = vmul.f32 %v1158_v14, %v1150_v63 }
 0x230   : > { %v1210_v11 = vmul.f32 %v1209_v21, %v1190_v33  ;;  %v1199_v12 = vmul.f32 %v1198_v22, %v1190_v33  ;;  %v1572_v21 = vld [vmem:[%s1652_s14 + $0x20] sm:$0xff] }
 0x231   : > { %v1171_v49 = vadd.f32 1.0, %v1170_v43  ;;  %v1160_v8 = vadd.f32 1.1283791, %v1159_v34 }
 0x232   : > { %v1211_v41 = vadd.f32 1.0, %v1210_v11  ;;  %v1200_v47 = vadd.f32 1.1283791, %v1199_v12 }
 0x233   : > { %1564 = vrcp.f32 %v1171_v49  ;;  %v1183_v39 = vand.u32 2147483648, %v1171_v49  ;;  %v1181_v45 = vand.u32 2147483647, %v1171_v49  ;;  %vm1177_vm6 = vweird.f32 %v1171_v49 }
 0x234   : > { %1566 = vrcp.f32 %v1211_v41  ;;  %v1223_v27 = vand.u32 2147483648, %v1211_v41  ;;  %v1221_v63 = vand.u32 2147483647, %v1211_v41  ;;  %v1161_v0 = vmul.f32 %v1160_v8, %v2311_v31 }
 0x235   : > { %v1184_v57 = vor.u32 1.1754944e-38, %v1183_v39  ;;  %vm1182_vm9 = vcmp.eq.f32.partialorder %v1181_v45, 8.507059e+37  ;;  %vm1217_vm10 = vweird.f32 %v1211_v41  ;;  %v1201_v28 = vmul.f32 %v1200_v47, %v2314_v37  ;;  %v1533_v37 = vld [vmem:[%s2373_s8] ss:$0 sm:$0xff] }
 0x236   : > { %v1224_v24 = vor.u32 1.1754944e-38, %v1223_v27  ;;  %vm1222_vm12 = vcmp.eq.f32.partialorder %v1221_v63, 8.507059e+37  ;;  %v899_v31 = vmul.f32 0.5, %v2304_v52  ;;  %v1568_v52 = vld [vmem:[%s1652_s14] sm:$0xff] }
 0x239   : > { %v1565_v53 = vpop.eup %1564 }
 0x23a   : > { %v1173_v10 = vmul.f32 %v1565_v53, %v1171_v49  ;;  %v1567_v1 = vpop.eup %1566  ;;  %vm1178_vm5 = vweird.f32 %v1565_v53 }
 0x23b   : > { %v1213_v35 = vmul.f32 %v1567_v1, %v1211_v41  ;;  %vm1179_vm7 = vmor %vm1177_vm6, %vm1178_vm5  ;;  %vm1218_vm8 = vweird.f32 %v1567_v1 }
 0x23c   : > { %v1174_v25 = vsub.f32 1.0, %v1173_v10  ;;  %vm1219_vm11 = vmor %vm1217_vm10, %vm1218_vm8 }
 0x23d   : > { %v1214_v13 = vsub.f32 1.0, %v1213_v35 }
 0x23e   : > { %v1175_v32 = vmul.f32 %v1565_v53, %v1174_v25  ;;  %v1575_v25 = vld [vmem:[%s1652_s14 + $0x38] sm:$0xff] }
 0x23f   : > { %v1215_v7 = vmul.f32 %v1567_v1, %v1214_v13 }
 0x240   : > { %v1176_v23 = vadd.f32 %v1565_v53, %v1175_v32 }
 0x241   : > { %v1216_v56 = vadd.f32 %v1567_v1, %v1215_v7 }
 0x242   : > { %v1180_v40 = vsel %vm1179_vm7, %v1565_v53, %v1176_v23  ;;  %v1574_v53 = vld [vmem:[%s1652_s14 + $0x30] sm:$0xff] }
 0x243   : > { %v1185_v33 = vsel %vm1182_vm9, %v1184_v57, %v1180_v40  ;;  %v1220_v6 = vsel %vm1219_vm11, %v1567_v1, %v1216_v56 }
 0x244   : > { %v1186_v54 = vmul.f32 %v1185_v33, %v1161_v0  ;;  %v1225_v20 = vsel %vm1222_vm12, %v1224_v24, %v1220_v6 }
 0x245   : > { %v1226_v30 = vmul.f32 %v1225_v20, %v1201_v28 }
 0x246   : > { %v1444_v17 = vclamps-f32 %v1186_v54, 1.0 }
 0x247   : > { %v1445_v15 = vclamps-f32 %v1226_v30, 1.0 }
 0x248   : > { %v1235_v16 = vadd.f32 1.0, %v1444_v17 }
 0x249   : > { %v1236_v61 = vadd.f32 1.0, %v1445_v15 }
 0x24a   : > { %v1243_v2 = vmul.f32 %v1235_v16, %v899_v31 }
 0x24b   : > { %v1244_v44 = vmul.f32 %v1236_v61, %v900_v36 }
 0x24d   : > { %v1248_v51 = vpack.c.bf16 %v1244_v44, %v1243_v2 }
 0x24f   : > { %1340 = vmatmul.bf16.gmra.mxu2 %v1248_v51 }
 0x286   : > { %v1326_v29 = vpop.f32.mrf.mxu0 }
 0x287   : > { %v1327_v42 = vadd.f32 %v1533_v37, %v1326_v29 }
 0x289   : > { %v1346_v26 = vadd.f32 %v1568_v52, %v1327_v42 }
 0x28b   : > { %1354 = vst.msk [vmem:[%s2336_s13] sm:$0xff] %vm342_vm0, %v1346_v26 }
 0x28e   : > { %v1328_v46 = vpop.f32.mrf.mxu0 }
 0x28f   : > { %v1331_v60 = vpop.f32.mrf.mxu1  ;;  %v1329_v48 = vadd.f32 %v1533_v37, %v1328_v46 }
 0x290   : > { %v1332_v62 = vadd.f32 %v1533_v37, %v1331_v60 }
 0x291   : > { %v1347_v19 = vadd.f32 %v1569_v58, %v1329_v48 }
 0x292   : > { %v1348_v3 = vadd.f32 %v1570_v50, %v1332_v62 }
 0x293   : > { %1355 = vst.msk [vmem:[%s2336_s13 + $0x8] sm:$0xff] %vm342_vm0, %v1347_v19 }
 0x294   : > { %1356 = vst.msk [vmem:[%s2336_s13 + $0x10] sm:$0xff] %vm342_vm0, %v1348_v3 }
 0x297   : > { %v1333_v5 = vpop.f32.mrf.mxu1 }
 0x298   : > { %v1334_v59 = vadd.f32 %v1533_v37, %v1333_v5 }
 0x29a   : > { %v1349_v9 = vadd.f32 %v1571_v38, %v1334_v59 }
 0x29c   : > { %1357 = vst.msk [vmem:[%s2336_s13 + $0x18] sm:$0xff] %vm342_vm0, %v1349_v9 }
 0x2b0   : > { %v1336_v43 = vpop.f32.mrf.mxu2 }
 0x2b1   : > { %v1337_v55 = vadd.f32 %v1533_v37, %v1336_v43 }
 0x2b3   : > { %v1350_v49 = vadd.f32 %v1572_v21, %v1337_v55 }
 0x2b5   : > { %1358 = vst.msk [vmem:[%s2336_s13 + $0x20] sm:$0xff] %vm342_vm0, %v1350_v49 }
 0x2b8   : > { %v1338_v18 = vpop.f32.mrf.mxu2 }
 0x2b9   : > { %v1339_v11 = vadd.f32 %v1533_v37, %v1338_v18 }
 0x2bb   : > { %v1351_v41 = vadd.f32 %v1573_v4, %v1339_v11 }
 0x2bd   : > { %1359 = vst.msk [vmem:[%s2336_s13 + $0x28] sm:$0xff] %vm342_vm0, %v1351_v41 }
 0x2d2   : > { %v1341_v14 = vpop.f32.mrf.mxu2 }
 0x2d3   : > { %v1342_v22 = vadd.f32 %v1533_v37, %v1341_v14 }
 0x2d5   : > { %v1352_v34 = vadd.f32 %v1574_v53, %v1342_v22 }
 0x2d7   : > { %1360 = vst.msk [vmem:[%s2336_s13 + $0x30] sm:$0xff] %vm342_vm0, %v1352_v34 }
 0x2da   : > { %v1343_v10 = vpop.f32.mrf.mxu2 }
 0x2db   : > { %v1344_v1 = vadd.f32 %v1533_v37, %v1343_v10 }
 0x2dd   : > { %v1353_v12 = vadd.f32 %v1575_v25, %v1344_v1 }
 0x2df   : > { %1361 = vst.msk [vmem:[%s2336_s13 + $0x38] sm:$0xff] %vm342_vm0, %v1353_v12 }
 0x2e0 PF: > { %s19_s30 = sadd.s32 1, %s1582_s30  }
 0x2e1   : > { %p16_p4 = scmp.ge.s32.totalorder %s19_s30, 4  }
 0x2e3   :  { %18 = sbr.rel (!%p16_p4) target bundleno = 1 (0x1), region = 88 }

// kernel: block_pallas.5
= control target key start
LH: loop header
LB: loop body
LE: loop exit
PB: predicated region body
PF: predicated region fallthrough
CT: control target
= control target key end

     0   :  { %s1863_s15 = smov 0   ;;  %s2784_s0 = inlined_call_operand.vmem [shape: f32[2,8,8,32], index: 0, kind: input, shape index: {}]   ;;  %s2785_s1 = inlined_call_operand.vmem [shape: f32[2,8,8,32], index: 1, kind: input, shape index: {}]   ;;  %s2786_s2 = inlined_call_operand.vmem [shape: f32[2,8,8,32], index: 2, kind: input, shape index: {}]   ;;  %s2787_s3 = inlined_call_operand.vmem [shape: bf16[32,32], index: 3, kind: input, shape index: {}]   ;;  %s2788_s4 = inlined_call_operand.vmem [shape: f32[2,8,8,32], index: 4, kind: output, shape index: {}]  }
   0x1 LB: > { %s1589_s16 = sadd.s32 4294967295, %s1835_s15   ;;  %p1593_p0 = scmp.ge.s32.totalorder %s1835_s15, 1  ;;  %s1835_s15 = sphi %s1863_s15, %s14_s15  }
   0x2   : > { %p182_p1 = scmp.lt.s32.totalorder %s1835_s15, 3 }
   0x4   : > { %p183_p2 = pnand %p1593_p0, %p182_p1 }
   0x6   : > { %186 = sbr.rel (%p183_p2) target bundleno = 424 (0x1a8), region = 36 }
   0xb   : > { %v1874_v0 = vld [vmem:[%s2787_s3 + $0x8] sm:$0xff]  ;;  %p218_p3 = scmp.lt.s32.totalorder %s1589_s16, 1  ;;  %vm239_vm0 = vcmask 261120   ;;  %v1837_v1 = vmov 0.0   ;;  %v1883_v2 = vld [vmem:[%s2787_s3] sm:$0xff]  ;;  %vm242_vm1 = vcmask 253952  }
   0xc   : > { %247 = vst.msk [vmem:[#allocation2 + $0x30] sm:$0xff] %vm239_vm0, %v1837_v1  ;;  %1654 = vmatpush.bf16.msra.mxu1 %v1874_v0  ;;  %1655 = vmatpush.bf16.msra.mxu2 %v1874_v0 }
   0xd   : > { %s2827_s16 = smov (!%p218_p3, %s1589_s16), 1  ;;  %248 = vst.msk [vmem:[#allocation2 + $0x38] sm:$0xff] %vm239_vm0, %v1837_v1  ;;  %1656 = vmatpush.bf16.msra.mxu3 %v1874_v0  ;;  %405 = vmatpush.bf16.msra.mxu0 %v1874_v0 }
   0xe   : > { %250 = vst.msk [vmem:[#allocation2 + $0x48] sm:$0xff] %vm239_vm0, %v1837_v1  ;;  %s1891_s21 = sshll.u32 %s2827_s16, 6 }
   0xf   : > { %251 = vst.msk [vmem:[#allocation2 + $0x50] sm:$0xff] %vm239_vm0, %v1837_v1  ;;  %s1899_s24 = scalar_lea.vmem %s2784_s0, %s1891_s21  ;;  %s1905_s27 = scalar_lea.vmem %s2785_s1, %s1891_s21 }
  0x10   : > { %240 = vst.msk [vmem:[#allocation2] sm:$0xff] %vm239_vm0, %v1837_v1  ;;  %1657 = vmatpush.bf16.msra.mxu1 %v1883_v2  ;;  %1658 = vmatpush.bf16.msra.mxu2 %v1883_v2  ;;  %v302_v3 = vld [vmem:[%s1905_s27 + $0x8] sm:$0xff]  ;;  %v303_v4 = vld [vmem:[%s1905_s27 + $0x10] sm:$0xff]  ;;  %v338_v6 = vld [vmem:[%s1899_s24 + $0x18] sm:$0xff]  ;;  %s2329_s30 = scalar_lea.vmem %s2786_s2, %s1891_s21  ;;  %s2531_s7 = scalar_lea.vmem %s2788_s4, %s1891_s21 }
  0x11   : > { %241 = vst.msk [vmem:[#allocation2 + $0x8] sm:$0xff] %vm239_vm0, %v1837_v1  ;;  %1659 = vmatpush.bf16.msra.mxu3 %v1883_v2  ;;  %406 = vmatpush.bf16.msra.mxu0 %v1883_v2  ;;  %v337_v5 = vld [vmem:[%s1899_s24 + $0x10] sm:$0xff]  ;;  %v1933_v8 = vmul.f32 0.35355338, %v338_v6  ;;  %v304_v14 = vld [vmem:[%s1905_s27 + $0x18] sm:$0xff]  ;;  %v305_v15 = vld [vmem:[%s1905_s27 + $0x20] sm:$0xff] }
  0x12   : > { %311 = vst.msk [vmem:[#allocation2 + $0x38] sm:$0xff] %vm239_vm0, %v302_v3  ;;  %v1929_v7 = vmul.f32 0.35355338, %v337_v5  ;;  %v306_v16 = vld [vmem:[%s1905_s27 + $0x28] sm:$0xff]  ;;  %v307_v17 = vld [vmem:[%s1905_s27 + $0x30] sm:$0xff]  ;;  %v339_v18 = vld [vmem:[%s1899_s24 + $0x20] sm:$0xff] }
  0x13   : > { %312 = vst.msk [vmem:[#allocation2 + $0x50] sm:$0xff] %vm239_vm0, %v303_v4  ;;  %v340_v19 = vld [vmem:[%s1899_s24 + $0x28] sm:$0xff]  ;;  %v301_v20 = vld [vmem:[%s1905_s27] sm:$0xff]  ;;  %v341_v21 = vld [vmem:[%s1899_s24 + $0x30] sm:$0xff]  ;;  %v2026_v24 = vmul.f32 0.35355338, %v339_v18 }
  0x14   : > { %527 = vmatpush.bf16.msrb.mxu2 %v1874_v0  ;;  %244 = vst.msk [vmem:[#allocation2 + $0x18] sm:$0xff] %vm239_vm0, %v1837_v1  ;;  %466 = vmatpush.bf16.msrb.mxu1 %v1874_v0  ;;  %v342_v22 = vld [vmem:[%s1899_s24 + $0x38] sm:$0xff]  ;;  %v335_v23 = vld [vmem:[%s1899_s24] sm:$0xff]  ;;  %v2028_v25 = vmul.f32 0.35355338, %v340_v19  ;;  %v336_v27 = vld [vmem:[%s1899_s24 + $0x8] sm:$0xff] }
  0x15   : > { %588 = vmatpush.bf16.msrb.mxu3 %v1874_v0  ;;  %649 = vmatpush.bf16.msrb.mxu0 %v1874_v0  ;;  %245 = vst.msk [vmem:[#allocation2 + $0x20] sm:$0xff] %vm239_vm0, %v1837_v1  ;;  %v2031_v26 = vmul.f32 0.35355338, %v341_v21  ;;  %v2036_v28 = vmul.f32 0.35355338, %v342_v22  ;;  %v308_v5 = vld [vmem:[%s1905_s27 + $0x38] sm:$0xff] }
  0x16   : > { %253 = vst.msk [vmem:[#allocation2 + $0x60] sm:$0xff] %vm239_vm0, %v1837_v1  ;;  %v2038_v29 = vmul.f32 0.35355338, %v335_v23  ;;  %v2050_v35 = vmul.f32 0.35355338, %v336_v27 }
  0x17   : > { %254 = vst.msk [vmem:[#allocation2 + $0x68] sm:$0xff] %vm239_vm0, %v1837_v1 }
  0x18   : > { %528 = vmatpush.bf16.msrb.mxu2 %v1883_v2  ;;  %256 = vst.msk [vmem:[#allocation2 + $0x78] sm:$0xff] %vm239_vm0, %v1837_v1  ;;  %467 = vmatpush.bf16.msrb.mxu1 %v1883_v2  ;;  %v355_v31 = vld [vmem:[#allocation2 + $0x7] sm:$0xff] }
  0x19   : > { %589 = vmatpush.bf16.msrb.mxu3 %v1883_v2  ;;  %650 = vmatpush.bf16.msrb.mxu0 %v1883_v2  ;;  %v1943_v9 = vld [vmem:[#allocation2 + $0x37] sm:$0xff]  ;;  %257 = vst.msk [vmem:[#allocation2 + $0x80] sm:$0xff] %vm239_vm0, %v1837_v1  ;;  %v428_v32 = vld [vmem:[#allocation2 + $0x8] sm:$0xff]  ;;  %v363_v40 = vmul.f32 %v355_v31, %v2038_v29 }
  0x1a   : > { %v1947_v10 = vld [vmem:[#allocation2 + $0x4f] sm:$0xff]  ;;  %v365_v11 = vmul.f32 %v1943_v9, %v1929_v7  ;;  %259 = vst.msk [vmem:[#allocation2 + $0x90] sm:$0xff] %vm239_vm0, %v1837_v1  ;;  %v436_v41 = vmul.f32 %v428_v32, %v2038_v29  ;;  %v2107_v55 = vld [vmem:[#allocation2 + $0x38] sm:$0xff]  ;;  %v559_v58 = vmul.f32 %v1943_v9, %v2050_v35 }
  0x1b   : > { %v366_v12 = vmul.f32 %v1947_v10, %v1933_v8  ;;  %260 = vst.msk [vmem:[#allocation2 + $0x98] sm:$0xff] %vm239_vm0, %v1837_v1  ;;  %v2109_v56 = vld [vmem:[#allocation2 + $0x50] sm:$0xff]  ;;  %v620_v60 = vmul.f32 %v2107_v55, %v2050_v35  ;;  %v438_v61 = vmul.f32 %v2107_v55, %v1929_v7 }
  0x1c   : > { %262 = vst.msk [vmem:[#allocation2 + $0xa8] sm:$0xff] %vm239_vm0, %v1837_v1  ;;  %v439_v62 = vmul.f32 %v2109_v56, %v1933_v8 }
  0x1d   : > { %v372_v13 = vpack.c.bf16 %v366_v12, %v365_v11  ;;  %263 = vst.msk [vmem:[#allocation2 + $0xb0] sm:$0xff] %vm239_vm0, %v1837_v1 }
  0x1e   : > { %265 = vst.msk [vmem:[#allocation2 + $0xc0] sm:$0xff] %vm239_vm0, %v1837_v1  ;;  %v445_v3 = vpack.c.bf16 %v439_v62, %v438_v61 }
  0x1f   : > { %1611 = vmatmul.msk.bf16.vlgmr.msra.gmra.mxu1 %vm239_vm0, %v372_v13  ;;  %266 = vst.msk [vmem:[#allocation2 + $0xc8] sm:$0xff] %vm239_vm0, %v1837_v1 }
  0x20   : > { %268 = vst.msk [vmem:[#allocation2 + $0xd8] sm:$0xff] %vm239_vm0, %v1837_v1  ;;  %710 = vmatpush.bf16.msra.mxu1 %v1874_v0 }
  0x21   : > { %269 = vst.msk [vmem:[#allocation2 + $0xe0] sm:$0xff] %vm239_vm0, %v1837_v1 }
  0x22   : > { %271 = vst.msk [vmem:[#allocation3] sm:$0xff] %vm239_vm0, %v1837_v1 }
  0x23   : > { %272 = vst.msk [vmem:[#allocation3 + $0x8] sm:$0xff] %vm239_vm0, %v1837_v1 }
  0x24   : > { %274 = vst.msk [vmem:[#allocation3 + $0x18] sm:$0xff] %vm239_vm0, %v1837_v1  ;;  %711 = vmatpush.bf16.msra.mxu1 %v1883_v2 }
  0x25   : > { %275 = vst.msk [vmem:[#allocation3 + $0x20] sm:$0xff] %vm239_vm0, %v1837_v1 }
  0x26   : > { %277 = vst.msk [vmem:[#allocation3 + $0x30] sm:$0xff] %vm239_vm0, %v1837_v1 }
  0x27   : > { %278 = vst.msk [vmem:[#allocation3 + $0x38] sm:$0xff] %vm239_vm0, %v1837_v1 }
  0x28   : > { %280 = vst.msk [vmem:[#allocation3 + $0x48] sm:$0xff] %vm239_vm0, %v1837_v1 }
  0x29   : > { %281 = vst.msk [vmem:[#allocation3 + $0x50] sm:$0xff] %vm239_vm0, %v1837_v1 }
  0x2a   : > { %283 = vst.msk [vmem:[#allocation3 + $0x60] sm:$0xff] %vm239_vm0, %v1837_v1 }
  0x2b   : > { %284 = vst.msk [vmem:[#allocation3 + $0x68] sm:$0xff] %vm239_vm0, %v1837_v1 }
  0x2c   : > { %286 = vst.msk [vmem:[#allocation3 + $0x78] sm:$0xff] %vm239_vm0, %v1837_v1 }
  0x2d   : > { %287 = vst.msk [vmem:[#allocation3 + $0x80] sm:$0xff] %vm239_vm0, %v1837_v1 }
  0x2e   : > { %289 = vst.msk [vmem:[#allocation3 + $0x90] sm:$0xff] %vm239_vm0, %v1837_v1 }
  0x2f   : > { %290 = vst.msk [vmem:[#allocation3 + $0x98] sm:$0xff] %vm239_vm0, %v1837_v1 }
  0x30   : > { %292 = vst.msk [vmem:[#allocation3 + $0xa8] sm:$0xff] %vm239_vm0, %v1837_v1 }
  0x31   : > { %293 = vst.msk [vmem:[#allocation3 + $0xb0] sm:$0xff] %vm239_vm0, %v1837_v1 }
  0x32   : > { %295 = vst.msk [vmem:[#allocation3 + $0xc0] sm:$0xff] %vm239_vm0, %v1837_v1 }
  0x33   : > { %296 = vst.msk [vmem:[#allocation3 + $0xc8] sm:$0xff] %vm239_vm0, %v1837_v1 }
  0x34   : > { %298 = vst.msk [vmem:[#allocation3 + $0xd8] sm:$0xff] %vm239_vm0, %v1837_v1 }
  0x35   : > { %299 = vst.msk [vmem:[#allocation3 + $0xe0] sm:$0xff] %vm239_vm0, %v1837_v1 }
  0x36   : > { %313 = vst.msk [vmem:[#allocation2 + $0x68] sm:$0xff] %vm239_vm0, %v304_v14  ;;  %v560_v14 = vmul.f32 %v1947_v10, %v1929_v7 }
  0x37   : > { %314 = vst.msk [vmem:[#allocation2 + $0x80] sm:$0xff] %vm239_vm0, %v305_v15 }
  0x38   : > { %315 = vst.msk [vmem:[#allocation2 + $0x98] sm:$0xff] %vm239_vm0, %v306_v16  ;;  %v621_v16 = vmul.f32 %v2109_v56, %v1929_v7 }
  0x39   : > { %316 = vst.msk [vmem:[#allocation2 + $0xb0] sm:$0xff] %vm239_vm0, %v307_v17 }
  0x3a   : > { %310 = vst.msk [vmem:[#allocation2 + $0x20] sm:$0xff] %vm239_vm0, %v301_v20 }
  0x3b   : > { %243 = vst.msk [vmem:[#allocation2 + $0x10] sm:$0x1] %vm242_vm1, %v1837_v1 }
  0x3c   : > { %246 = vst.msk [vmem:[#allocation2 + $0x28] sm:$0x1] %vm242_vm1, %v1837_v1 }
  0x3d   : > { %v2042_v30 = vld [vmem:[#allocation2 + $0x67] sm:$0xff]  ;;  %249 = vst.msk [vmem:[#allocation2 + $0x40] sm:$0x1] %vm242_vm1, %v1837_v1 }
  0x3e   : > { %v2046_v33 = vld [vmem:[#allocation2 + $0x7f] sm:$0xff]  ;;  %v367_v34 = vmul.f32 %v2042_v30, %v2026_v24  ;;  %252 = vst.msk [vmem:[#allocation2 + $0x58] sm:$0x1] %vm242_vm1, %v1837_v1  ;;  %v2143_v12 = vld [vmem:[#allocation2 + $0x68] sm:$0xff]  ;;  %v561_v15 = vmul.f32 %v2042_v30, %v1933_v8 }
  0x3f   : > { %v368_v36 = vmul.f32 %v2046_v33, %v2028_v25  ;;  %v2056_v37 = vld [vmem:[#allocation2 + $0x97] sm:$0xff]  ;;  %255 = vst.msk [vmem:[#allocation2 + $0x70] sm:$0x1] %vm242_vm1, %v1837_v1  ;;  %v2145_v13 = vld [vmem:[#allocation2 + $0x80] sm:$0xff]  ;;  %v622_v17 = vmul.f32 %v2143_v12, %v1933_v8  ;;  %v440_v18 = vmul.f32 %v2143_v12, %v2026_v24 }
  0x40   : > { %v2060_v38 = vld [vmem:[#allocation2 + $0xaf] sm:$0xff]  ;;  %v369_v39 = vmul.f32 %v2056_v37, %v2031_v26  ;;  %258 = vst.msk [vmem:[#allocation2 + $0x88] sm:$0x1] %vm242_vm1, %v1837_v1  ;;  %v441_v19 = vmul.f32 %v2145_v13, %v2028_v25  ;;  %v567_v21 = vpack.c.bf16 %v561_v15, %v560_v14  ;;  %v742_v14 = vmul.f32 %v1943_v9, %v2038_v29 }
  0x41   : > { %v373_v42 = vpack.c.bf16 %v368_v36, %v367_v34  ;;  %v370_v43 = vmul.f32 %v2060_v38, %v2036_v28  ;;  %v356_v44 = vld [vmem:[#allocation2 + $0x1f] sm:$0xff]  ;;  %261 = vst.msk [vmem:[#allocation2 + $0xa0] sm:$0x1] %vm242_vm1, %v1837_v1  ;;  %v628_v22 = vpack.c.bf16 %v622_v17, %v621_v16  ;;  %v564_v62 = vmul.f32 %v2060_v38, %v2031_v26 }
  0x42   : > { %v429_v45 = vld [vmem:[#allocation2 + $0x20] sm:$0xff]  ;;  %v364_v46 = vmul.f32 %v356_v44, %v2050_v35  ;;  %264 = vst.msk [vmem:[#allocation2 + $0xb8] sm:$0x1] %vm242_vm1, %v1837_v1  ;;  %v489_v51 = vld [vmem:[#allocation2 + $0x9] sm:$0xff]  ;;  %v558_v57 = vmul.f32 %v356_v44, %v2038_v29  ;;  %v446_v23 = vpack.c.bf16 %v441_v19, %v440_v18  ;;  %v2165_v36 = vld [vmem:[#allocation2 + $0x98] sm:$0xff]  ;;  %v803_v15 = vmul.f32 %v2107_v55, %v2038_v29 }
  0x43   : > { %v437_v47 = vmul.f32 %v429_v45, %v2050_v35  ;;  %1612 = vmatmul.msk.bf16.vlgmr.msra.gmra.mxu2 %vm239_vm0, %v373_v42  ;;  %v374_v48 = vpack.c.bf16 %v370_v43, %v369_v39  ;;  %267 = vst.msk [vmem:[#allocation2 + $0xd0] sm:$0x1] %vm242_vm1, %v1837_v1  ;;  %v2093_v52 = vld [vmem:[#allocation2 + $0x21] sm:$0xff]  ;;  %v497_v53 = vmul.f32 %v489_v51, %v2038_v29  ;;  %v2167_v39 = vld [vmem:[#allocation2 + $0xb0] sm:$0xff] }
  0x44   : > { %v371_v49 = vpack.c.bf16 %v364_v46, %v363_v40  ;;  %270 = vst.msk [vmem:[#allocation2 + $0xe8] sm:$0x1] %vm242_vm1, %v1837_v1  ;;  %772 = vmatpush.bf16.msra.mxu2 %v1874_v0  ;;  %v498_v54 = vmul.f32 %v2093_v52, %v2050_v35  ;;  %v619_v59 = vmul.f32 %v429_v45, %v2038_v29 }
  0x45   : > { %v444_v50 = vpack.c.bf16 %v437_v47, %v436_v41  ;;  %1613 = vmatmul.msk.bf16.vlgmr.msra.gmra.mxu3 %vm239_vm0, %v374_v48  ;;  %273 = vst.msk [vmem:[#allocation3 + $0x10] sm:$0x1] %vm242_vm1, %v1837_v1  ;;  %v2135_v4 = vld [vmem:[#allocation2 + $0x51] sm:$0xff]  ;;  %v562_v40 = vmul.f32 %v2046_v33, %v2026_v24  ;;  %v563_v41 = vmul.f32 %v2056_v37, %v2028_v25 }
  0x46   : > { %1610 = vmatmul.msk.bf16.vlgmr.msra.gmra.mxu0 %vm239_vm0, %v371_v49  ;;  %276 = vst.msk [vmem:[#allocation3 + $0x28] sm:$0x1] %vm242_vm1, %v1837_v1  ;;  %833 = vmatpush.bf16.msra.mxu3 %v1874_v0  ;;  %v505_v63 = vpack.c.bf16 %v498_v54, %v497_v53  ;;  %v500_v11 = vmul.f32 %v2135_v4, %v1933_v8  ;;  %v493_v27 = vld [vmem:[#allocation2 + $0x69] sm:$0xff] }
  0x47   : > { %1614 = vmatmul.msk.bf16.vlgmr.msrb.gmra.mxu1 %vm239_vm0, %v444_v50  ;;  %279 = vst.msk [vmem:[#allocation3 + $0x40] sm:$0x1] %vm242_vm1, %v1837_v1  ;;  %894 = vmatpush.bf16.msra.mxu0 %v1874_v0  ;;  %v566_v0 = vpack.c.bf16 %v559_v58, %v558_v57  ;;  %v494_v31 = vld [vmem:[#allocation2 + $0x81] sm:$0xff]  ;;  %v501_v32 = vmul.f32 %v493_v27, %v2026_v24 }
  0x48   : > { %282 = vst.msk [vmem:[#allocation3 + $0x58] sm:$0x1] %vm242_vm1, %v1837_v1  ;;  %773 = vmatpush.bf16.msra.mxu2 %v1883_v2  ;;  %v502_v34 = vmul.f32 %v494_v31, %v2028_v25  ;;  %v623_v42 = vmul.f32 %v2145_v13, %v2026_v24  ;;  %v624_v43 = vmul.f32 %v2165_v36, %v2028_v25  ;;  %v495_v53 = vld [vmem:[#allocation2 + $0x99] sm:$0xff] }
  0x49   : > { %285 = vst.msk [vmem:[#allocation3 + $0x70] sm:$0x1] %vm242_vm1, %v1837_v1  ;;  %v442_v44 = vmul.f32 %v2165_v36, %v2031_v26  ;;  %v443_v45 = vmul.f32 %v2167_v39, %v2036_v28  ;;  %v568_v47 = vpack.c.bf16 %v563_v41, %v562_v40  ;;  %v744_v50 = vmul.f32 %v2042_v30, %v1929_v7  ;;  %v496_v54 = vld [vmem:[#allocation2 + $0xb1] sm:$0xff] }
  0x4a   : > { %288 = vst.msk [vmem:[#allocation3 + $0x88] sm:$0x1] %vm242_vm1, %v1837_v1  ;;  %834 = vmatpush.bf16.msra.mxu3 %v1883_v2  ;;  %v507_v46 = vpack.c.bf16 %v502_v34, %v501_v32  ;;  %v629_v48 = vpack.c.bf16 %v624_v43, %v623_v42  ;;  %v745_v51 = vmul.f32 %v2046_v33, %v1933_v8 }
  0x4b   : > { %291 = vst.msk [vmem:[#allocation3 + $0xa0] sm:$0x1] %vm242_vm1, %v1837_v1  ;;  %895 = vmatpush.bf16.msra.mxu0 %v1883_v2  ;;  %v627_v2 = vpack.c.bf16 %v620_v60, %v619_v59  ;;  %v447_v49 = vpack.c.bf16 %v443_v45, %v442_v44  ;;  %v503_v59 = vmul.f32 %v495_v53, %v2031_v26 }
  0x4c   : > { %294 = vst.msk [vmem:[#allocation3 + $0xb8] sm:$0x1] %vm242_vm1, %v1837_v1  ;;  %v751_v57 = vpack.c.bf16 %v745_v51, %v744_v50  ;;  %v504_v60 = vmul.f32 %v496_v54, %v2036_v28  ;;  %v625_v33 = vmul.f32 %v2167_v39, %v2031_v26  ;;  %v804_v16 = vmul.f32 %v2109_v56, %v2050_v35 }
  0x4d   : > { %297 = vst.msk [vmem:[#allocation3 + $0xd0] sm:$0x1] %vm242_vm1, %v1837_v1  ;;  %v865_v18 = vmul.f32 %v2135_v4, %v2050_v35  ;;  %v682_v19 = vmul.f32 %v2135_v4, %v1929_v7  ;;  %v683_v9 = vmul.f32 %v493_v27, %v1933_v8  ;;  %v866_v55 = vmul.f32 %v493_v27, %v1929_v7 }
  0x4e   : > { %300 = vst.msk [vmem:[#allocation3 + $0xe8] sm:$0x1] %vm242_vm1, %v1837_v1  ;;  %v2133_v1 = vld [vmem:[#allocation2 + $0x39] sm:$0xff]  ;;  %v867_v56 = vmul.f32 %v494_v31, %v1933_v8  ;;  %v685_v4 = vmul.f32 %v495_v53, %v2028_v25  ;;  %v808_v27 = vmul.f32 %v2167_v39, %v2028_v25  ;;  %v869_v40 = vmul.f32 %v496_v54, %v2028_v25 }
  0x4f   : > { %317 = vst.msk [vmem:[#allocation2 + $0xc8] sm:$0xff] %vm239_vm0, %v308_v5  ;;  %v499_v6 = vmul.f32 %v2133_v1, %v1929_v7  ;;  %v864_v17 = vmul.f32 %v2133_v1, %v2038_v29  ;;  %v686_v41 = vmul.f32 %v496_v54, %v2031_v26 }
  0x50   : > { %v873_v32 = vpack.c.bf16 %v867_v56, %v866_v55 }
  0x51   : > { %v506_v20 = vpack.c.bf16 %v500_v11, %v499_v6 }
  0x53   : > { %1618 = vmatmul.msk.bf16.vlgmr.msrb.gmra.mxu2 %vm239_vm0, %v505_v63 }
  0x55   : > { %1622 = vmatmul.msk.bf16.vlgmr.msrb.gmra.mxu3 %vm239_vm0, %v566_v0  ;;  %v680_v0 = vmul.f32 %v2093_v52, %v2038_v29  ;;  %v743_v52 = vmul.f32 %v1947_v10, %v2050_v35  ;;  %v872_v10 = vpack.c.bf16 %v865_v18, %v864_v17  ;;  %v805_v29 = vmul.f32 %v2143_v12, %v1929_v7 }
  0x56   : > { %1626 = vmatmul.msk.bf16.vlgmr.msrb.gmra.mxu0 %vm239_vm0, %v627_v2  ;;  %v2189_v58 = vld [vmem:[#allocation2 + $0xc7] sm:$0xff]  ;;  %v681_v2 = vmul.f32 %v2133_v1, %v2050_v35  ;;  %v806_v35 = vmul.f32 %v2145_v13, %v1933_v8  ;;  %v684_v1 = vmul.f32 %v494_v31, %v2026_v24  ;;  %v746_v7 = vmul.f32 %v2056_v37, %v2026_v24 }
  0x57   : > { %1615 = vmatmul.msk.bf16.gmra.mxu1 %vm239_vm0, %v445_v3  ;;  %v2193_v61 = vld [vmem:[#allocation2 + $0xc8] sm:$0xff]  ;;  %v565_v30 = vmul.f32 %v2189_v58, %v2036_v28  ;;  %v508_v3 = vpack.c.bf16 %v504_v60, %v503_v59  ;;  %v747_v8 = vmul.f32 %v2060_v38, %v2028_v25  ;;  %v807_v13 = vmul.f32 %v2165_v36, %v2026_v24  ;;  %v802_v36 = vld [vmem:[#allocation2 + $0xe0] sm:$0xff] }
  0x58   : > { %v626_v63 = vmul.f32 %v2193_v61, %v2036_v28  ;;  %v688_v11 = vpack.c.bf16 %v681_v2, %v680_v0  ;;  %v690_v34 = vpack.c.bf16 %v685_v4, %v684_v1  ;;  %v679_v12 = vld [vmem:[#allocation2 + $0xc9] sm:$0xff]  ;;  %v868_v31 = vmul.f32 %v495_v53, %v2026_v24  ;;  %v741_v24 = vld [vmem:[#allocation2 + $0xdf] sm:$0xff] }
  0x59   : > { %v569_v5 = vpack.c.bf16 %v565_v30, %v564_v62  ;;  %v687_v42 = vmul.f32 %v679_v12, %v2036_v28  ;;  %v752_v43 = vpack.c.bf16 %v747_v8, %v746_v7  ;;  %v813_v44 = vpack.c.bf16 %v808_v27, %v807_v13 }
  0x5a   : > { %v630_v6 = vpack.c.bf16 %v626_v63, %v625_v33  ;;  %v874_v38 = vpack.c.bf16 %v869_v40, %v868_v31  ;;  %v748_v39 = vmul.f32 %v2189_v58, %v2031_v26  ;;  %v870_v50 = vmul.f32 %v679_v12, %v2031_v26 }
  0x5b   : > { %v691_v45 = vpack.c.bf16 %v687_v42, %v686_v41  ;;  %v320_v41 = vld [vmem:[%s2329_s30 + $0x10] sm:$0xff] }
  0x5c   : > { %329 = vst.msk [vmem:[#allocation3 + $0x50] sm:$0xff] %vm239_vm0, %v320_v41 }
  0x63   : > { %1619 = vmatmul.msk.bf16.gmra.mxu2 %vm239_vm0, %v506_v20  ;;  %v750_v20 = vpack.c.bf16 %v743_v52, %v742_v14 }
  0x65   : > { %1623 = vmatmul.msk.bf16.gmra.mxu3 %vm239_vm0, %v567_v21  ;;  %v811_v21 = vpack.c.bf16 %v804_v16, %v803_v15 }
  0x66   : > { %1627 = vmatmul.msk.bf16.gmra.mxu0 %vm239_vm0, %v628_v22  ;;  %v689_v22 = vpack.c.bf16 %v683_v9, %v682_v19 }
  0x67   : > { %1616 = vmatmul.msk.bf16.gmra.mxu1 %vm239_vm0, %v446_v23  ;;  %v812_v23 = vpack.c.bf16 %v806_v35, %v805_v29  ;;  %v319_v29 = vld [vmem:[%s2329_s30 + $0x8] sm:$0xff] }
  0x68   : > { %328 = vst.msk [vmem:[#allocation3 + $0x38] sm:$0xff] %vm239_vm0, %v319_v29 }
  0x73   : > { %1620 = vmatmul.msk.bf16.gmra.mxu2 %vm239_vm0, %v507_v46  ;;  %v749_v46 = vmul.f32 %v741_v24, %v2036_v28 }
  0x75   : > { %1624 = vmatmul.msk.bf16.gmra.mxu3 %vm239_vm0, %v568_v47  ;;  %v863_v47 = vld [vmem:[#allocation2 + $0xe1] sm:$0xff]  ;;  %v753_v53 = vpack.c.bf16 %v749_v46, %v748_v39 }
  0x76   : > { %1628 = vmatmul.msk.bf16.gmra.mxu0 %vm239_vm0, %v629_v48  ;;  %v809_v48 = vmul.f32 %v2193_v61, %v2031_v26  ;;  %v871_v51 = vmul.f32 %v863_v47, %v2036_v28 }
  0x77   : > { %1617 = vmatmul.msk.bf16.gmra.mxu1 %vm239_vm0, %v447_v49  ;;  %v810_v49 = vmul.f32 %v802_v36, %v2036_v28 }
  0x79   : > { %v814_v54 = vpack.c.bf16 %v810_v49, %v809_v48 }
  0x83   : > { %1621 = vmatmul.msk.bf16.gmra.mxu2 %vm239_vm0, %v508_v3 }
  0x85   : > { %1625 = vmatmul.msk.bf16.gmra.mxu3 %vm239_vm0, %v569_v5 }
  0x86   : > { %1629 = vmatmul.msk.bf16.gmra.mxu0 %vm239_vm0, %v630_v6 }
  0x87   : > { %1630 = vmatmul.msk.bf16.vlgmr.msra.gmra.mxu1 %vm239_vm0, %v688_v11 }
  0x93   : > { %1634 = vmatmul.msk.bf16.vlgmr.msra.gmra.mxu2 %vm239_vm0, %v750_v20 }
  0x95   : > { %1638 = vmatmul.msk.bf16.vlgmr.msra.gmra.mxu3 %vm239_vm0, %v811_v21 }
  0x96   : > { %1642 = vmatmul.msk.bf16.vlgmr.msra.gmra.mxu0 %vm239_vm0, %v872_v10 }
  0x97   : > { %1631 = vmatmul.msk.bf16.gmra.mxu1 %vm239_vm0, %v689_v22  ;;  %v318_v22 = vld [vmem:[%s2329_s30] sm:$0xff] }
  0x98   : > { %327 = vst.msk [vmem:[#allocation3 + $0x20] sm:$0xff] %vm239_vm0, %v318_v22 }
  0x9c   : > { %v2254_v37 = vpop.f32.mrf.mxu1 }
  0xa3   : > { %1635 = vmatmul.msk.bf16.gmra.mxu2 %vm239_vm0, %v751_v57  ;;  %v875_v57 = vpack.c.bf16 %v871_v51, %v870_v50 }
  0xa4   : > { %v2260_v25 = vpop.f32.mrf.mxu1 }
  0xa5   : > { %1639 = vmatmul.msk.bf16.gmra.mxu3 %vm239_vm0, %v812_v23 }
  0xa6   : > { %1643 = vmatmul.msk.bf16.gmra.mxu0 %vm239_vm0, %v873_v32 }
  0xa7   : > { %1632 = vmatmul.msk.bf16.gmra.mxu1 %vm239_vm0, %v690_v34 }
  0xb3   : > { %1636 = vmatmul.msk.bf16.gmra.mxu2 %vm239_vm0, %v752_v43 }
  0xb5   : > { %1640 = vmatmul.msk.bf16.gmra.mxu3 %vm239_vm0, %v813_v44 }
  0xb6   : > { %1644 = vmatmul.msk.bf16.gmra.mxu0 %vm239_vm0, %v874_v38 }
  0xb7   : > { %1633 = vmatmul.msk.bf16.gmra.mxu1 %vm239_vm0, %v691_v45 }
  0xc3   : > { %v2270_v59 = vpop.f32.mrf.mxu0  ;;  %1637 = vmatmul.msk.bf16.gmra.mxu2 %vm239_vm0, %v753_v53 }
  0xc4   : > { %v2273_v58 = vpop.f32.mrf.mxu1 }
  0xc5   : > { %1641 = vmatmul.msk.bf16.gmra.mxu3 %vm239_vm0, %v814_v54  ;;  %v917_v8 = vmax.f32 %v2270_v59, %v2273_v58 }
  0xc6   : > { %1645 = vmatmul.msk.bf16.gmra.mxu0 %vm239_vm0, %v875_v57  ;;  %v2277_v60 = vpop.f32.mrf.mxu2 }
  0xc8   : > { %v2279_v61 = vpop.f32.mrf.mxu3 }
  0xc9   : > { %2800 = vst [vmem:[#allocation4_spill] sm:$0xff] %v2279_v61 }
  0xcb   : > { %v2281_v26 = vpop.f32.mrf.mxu0 }
  0xcc   : > { %v2283_v28 = vpop.f32.mrf.mxu1 }
  0xcd   : > { %v918_v43 = vmax.f32 %v2281_v26, %v2283_v28 }
  0xce   : > { %v2285_v62 = vpop.f32.mrf.mxu2 }
  0xcf   : > { %2801 = vst [vmem:[#allocation5_spill] sm:$0xff] %v2285_v62 }
  0xd0   : > { %v2287_v30 = vpop.f32.mrf.mxu3 }
  0xd1   : > { %2802 = vst [vmem:[#allocation6_spill] sm:$0xff] %v2287_v30 }
  0xd3   : > { %v2289_v33 = vpop.f32.mrf.mxu0 }
  0xd4   : > { %v2291_v63 = vpop.f32.mrf.mxu1 }
  0xd5   : > { %v919_v44 = vmax.f32 %v2254_v37, %v2291_v63 }
  0xd6   : > { %v2293_v0 = vpop.f32.mrf.mxu2 }
  0xd7   : > { %v925_v12 = vmax.f32 %v917_v8, %v2293_v0 }
  0xd8   : > { %v2295_v2 = vpop.f32.mrf.mxu3 }
  0xd9   : > { %v933_v31 = vmax.f32 %v925_v12, %v2295_v2 }
  0xdb   : > { %v2297_v3 = vpop.f32.mrf.mxu0  ;;  %v941_v24 = vmax.f32 %v933_v31, %v2289_v33  ;;  %v321_v31 = vld [vmem:[%s2329_s30 + $0x18] sm:$0xff] }
  0xdc   : > { %v2299_v5 = vpop.f32.mrf.mxu1  ;;  %330 = vst.msk [vmem:[#allocation3 + $0x68] sm:$0xff] %vm239_vm0, %v321_v31 }
  0xdd   : > { %v920_v36 = vmax.f32 %v2260_v25, %v2299_v5 }
  0xde   : > { %v2301_v6 = vpop.f32.mrf.mxu2 }
  0xdf   : > { %v926_v38 = vmax.f32 %v918_v43, %v2301_v6 }
  0xe0   : > { %v2303_v11 = vpop.f32.mrf.mxu3 }
  0xe1   : > { %v934_v49 = vmax.f32 %v926_v38, %v2303_v11 }
  0xe3   : > { %v2305_v14 = vpop.f32.mrf.mxu0 }
  0xe4   : > { %v2307_v52 = vpop.f32.mrf.mxu1 }
  0xe5   : > { %v921_v46 = vmax.f32 %v2277_v60, %v2307_v52 }
  0xe6   : > { %v2309_v15 = vpop.f32.mrf.mxu2 }
  0xe7   : > { %v927_v45 = vmax.f32 %v919_v44, %v2309_v15  ;;  %v942_v44 = vmax.f32 %v934_v49, %v2297_v3 }
  0xe8   : > { %v2311_v16 = vpop.f32.mrf.mxu3 }
  0xe9   : > { %v935_v50 = vmax.f32 %v927_v45, %v2311_v16 }
  0xeb   : > { %v2313_v17 = vpop.f32.mrf.mxu0  ;;  %v2394_v38 = vmax.f32 %v935_v50, %v2305_v14 }
  0xec   : > { %v2315_v18 = vpop.f32.mrf.mxu1 }
  0xed   : > { %2803 = vst [vmem:[#allocation7_spill] sm:$0xff] %v2315_v18  ;;  %v922_v47 = vmax.f32 %v2285_v62, %v2315_v18 }
  0xee   : > { %v2317_v19 = vpop.f32.mrf.mxu2 }
  0xef   : > { %v928_v51 = vmax.f32 %v920_v36, %v2317_v19 }
  0xf0   : > { %v2319_v9 = vpop.f32.mrf.mxu3 }
  0xf1   : > { %v936_v41 = vmax.f32 %v928_v51, %v2319_v9 }
  0xf3   : > { %v2321_v20 = vpop.f32.mrf.mxu0 }
  0xf4   : > { %v2323_v21 = vpop.f32.mrf.mxu1 }
  0xf5   : > { %2804 = vst [vmem:[#allocation8_spill] sm:$0xff] %v2323_v21  ;;  %v923_v36 = vmax.f32 %v2279_v61, %v2323_v21 }
  0xf6   : > { %v2331_v10 = vpop.f32.mrf.mxu2 }
  0xf7   : > { %v929_v54 = vmax.f32 %v921_v46, %v2331_v10 }
  0xf8   : > { %v2335_v35 = vpop.f32.mrf.mxu3 }
  0xf9   : > { %v937_v45 = vmax.f32 %v929_v54, %v2335_v35 }
  0xfb   : > { %v2339_v55 = vpop.f32.mrf.mxu0 }
  0xfc   : > { %2805 = vst [vmem:[#allocation9_spill] sm:$0xff] %v2339_v55  ;;  %v2341_v56 = vpop.f32.mrf.mxu1 }
  0xfd   : > { %2806 = vst [vmem:[#allocation10_spill] sm:$0xff] %v2341_v56 }
  0xfe   : > { %v2343_v1 = vpop.f32.mrf.mxu2 }
  0xff   : > { %2807 = vst [vmem:[#allocation11_spill] sm:$0xff] %v2343_v1  ;;  %v930_v57 = vmax.f32 %v922_v47, %v2343_v1 }
 0x100   : > { %v2345_v4 = vpop.f32.mrf.mxu3 }
 0x101   : > { %2808 = vst [vmem:[#allocation12_spill] sm:$0xff] %v2345_v4 }
 0x103   : > { %v2349_v32 = vpop.f32.mrf.mxu0 }
 0x104   : > { %v2347_v23 = vpop.f32.mrf.mxu1 }
 0x105   : > { %v949_v39 = vmax.f32 %v941_v24, %v2347_v23  ;;  %v938_v24 = vmax.f32 %v930_v57, %v2345_v4 }
 0x106   : > { %v2351_v34 = vpop.f32.mrf.mxu2 }
 0x107   : > { %2809 = vst [vmem:[#allocation13_spill] sm:$0xff] %v2351_v34  ;;  %v2408_v51 = vmax.f32 %v923_v36, %v2351_v34 }
 0x108   : > { %v2353_v7 = vpop.f32.mrf.mxu3 }
 0x10b   : > { %v2363_v40 = vpop.f32.mrf.mxu0 }
 0x10c   : > { %v2360_v27 = vpop.f32.mrf.mxu1 }
 0x10d   : > { %v950_v57 = vmax.f32 %v942_v44, %v2360_v27 }
 0x10e   : > { %v2358_v13 = vpop.f32.mrf.mxu2 }
 0x10f   : > { %2810 = vst [vmem:[#allocation14_spill] sm:$0xff] %v2358_v13 }
 0x110   : > { %v2366_v42 = vpop.f32.mrf.mxu3 }
 0x113   : > { %v897_v8 = vpop.f32.mrf.mxu0 }
 0x114   : > { %v2388_v29 = vpop.f32.mrf.mxu1 }
 0x116   : > { %v775_v48 = vpop.f32.mrf.mxu2 }
 0x117   : > { %v957_v53 = vmax.f32 %v949_v39, %v775_v48  ;;  %v924_v39 = vmax.f32 %v2287_v30, %v2341_v56 }
 0x118   : > { %v836_v22 = vpop.f32.mrf.mxu3 }
 0x119   : > { %v965_v12 = vmax.f32 %v957_v53, %v836_v22 }
 0x11b   : > { %v973_v43 = vmax.f32 %v965_v12, %v897_v8 }
 0x11d   : > { %v981_v46 = vsub.f32 %v2270_v59, %v973_v43  ;;  %v1037_v47 = vsub.f32 %v2273_v58, %v973_v43  ;;  %v1093_v49 = vsub.f32 %v2293_v0, %v973_v43  ;;  %v1149_v50 = vsub.f32 %v2295_v2, %v973_v43 }
 0x11e   : > { %v1205_v53 = vsub.f32 %v2289_v33, %v973_v43  ;;  %v1261_v54 = vsub.f32 %v2347_v23, %v973_v43  ;;  %v2413_v12 = vpop.f32.mrf.mxu2  ;;  %v1317_v30 = vsub.f32 %v775_v48, %v973_v43  ;;  %v2416_v58 = vmax.f32 %v924_v39, %v2358_v13  ;;  %v2425_v48 = vpop.f32.mrf.mxu1  ;;  %v1293_v13 = vld [vmem:[#allocation3 + $0x21] sm:$0xff] }
 0x11f   : > { %v989_v31 = vmul.f32 1.442695, %v981_v46  ;;  %v1045_v56 = vmul.f32 1.442695, %v1037_v47  ;;  %v1101_v59 = vmul.f32 1.442695, %v1093_v49  ;;  %v1374_v2 = vsub.f32 %v836_v22, %v973_v43 }
 0x120   : > { %v1157_v0 = vmul.f32 1.442695, %v1149_v50  ;;  %v958_v36 = vmax.f32 %v950_v57, %v2413_v12  ;;  %v1213_v34 = vmul.f32 1.442695, %v1205_v53  ;;  %v1430_v33 = vsub.f32 %v897_v8, %v973_v43  ;;  %v2419_v21 = vpop.f32.mrf.mxu3  ;;  %v2432_v8 = vpop.f32.mrf.mxu0 }
 0x121   : > { %1669 = vpow2.f32 %v989_v31  ;;  %v2422_v23 = vmax.f32 %v936_v41, %v2313_v17  ;;  %v1269_v44 = vmul.f32 1.442695, %v1261_v54  ;;  %v2428_v39 = vmax.f32 %v937_v45, %v2321_v20  ;;  %v1013_v45 = vld [vmem:[#allocation3 + $0x7] sm:$0xff] }
 0x122   : > { %1671 = vpow2.f32 %v1045_v56  ;;  %v966_v46 = vmax.f32 %v958_v36, %v2419_v21  ;;  %v1325_v47 = vmul.f32 1.442695, %v1317_v30  ;;  %v2435_v43 = vmax.f32 %v938_v24, %v2339_v55  ;;  %v1069_v54 = vld [vmem:[#allocation3 + $0x8] sm:$0xff]  ;;  %v1237_v30 = vld [vmem:[#allocation3 + $0x20] sm:$0xff] }
 0x123   : > { %1673 = vpow2.f32 %v1101_v59  ;;  %v1382_v41 = vmul.f32 1.442695, %v1374_v2  ;;  %v1438_v50 = vmul.f32 1.442695, %v1430_v33 }
 0x124   : > { %1675 = vpow2.f32 %v1157_v0  ;;  %v2440_v49 = vmax.f32 %v966_v46, %v2432_v8 }
 0x125   : > { %1677 = vpow2.f32 %v1213_v34  ;;  %v1125_v34 = vld [vmem:[#allocation3 + $0x9] sm:$0xff] }
 0x126   : > { %1679 = vpow2.f32 %v1269_v44  ;;  %v982_v24 = vsub.f32 %v2281_v26, %v2440_v49  ;;  %v1038_v57 = vsub.f32 %v2283_v28, %v2440_v49  ;;  %v1094_v31 = vsub.f32 %v2301_v6, %v2440_v49  ;;  %v1181_v44 = vld [vmem:[#allocation3 + $0x1f] sm:$0xff] }
 0x127   : > { %v1670_v59 = vpop.eup %1669  ;;  %1681 = vpow2.f32 %v1325_v47  ;;  %v1150_v0 = vsub.f32 %v2303_v11, %v2440_v49  ;;  %v1206_v2 = vsub.f32 %v2297_v3, %v2440_v49  ;;  %v1262_v36 = vsub.f32 %v2360_v27, %v2440_v49  ;;  %v2458_v11 = vpop.f32.mrf.mxu2 }
 0x128   : > { %v1672_v33 = vpop.eup %1671  ;;  %v1021_v26 = vmul.f32 %v1670_v59, %v1013_v45  ;;  %1683 = vpow2.f32 %v1382_v41  ;;  %v991_v28 = vmul.f32 1.442695, %v982_v24  ;;  %v1047_v46 = vmul.f32 1.442695, %v1038_v57  ;;  %v2460_v57 = vld [vmem:[#allocation3 + $0x37] sm:$0xff]  ;;  %v2481_v18 = vpop.f32.mrf.mxu3 }
 0x129   : > { %v1674_v56 = vpop.eup %1673  ;;  %v1061_v6 = vadd.f32 %v1672_v33, %v1670_v59  ;;  %v1077_v22 = vmul.f32 %v1672_v33, %v1069_v54  ;;  %1685 = vpow2.f32 %v1438_v50  ;;  %v1103_v47 = vmul.f32 1.442695, %v1094_v31  ;;  %v322_v54 = vld [vmem:[%s2329_s30 + $0x20] sm:$0xff]  ;;  %v2463_v50 = vld [vmem:[#allocation3 + $0x38] sm:$0xff] }
 0x12a   : > { %v1676_v53 = vpop.eup %1675  ;;  %v1133_v3 = vmul.f32 %v1674_v56, %v1125_v34  ;;  %1687 = vpow2.f32 %v991_v28  ;;  %v1159_v27 = vmul.f32 1.442695, %v1150_v0  ;;  %v1215_v61 = vmul.f32 1.442695, %v1206_v2  ;;  %331 = vst.msk [vmem:[#allocation3 + $0x80] sm:$0xff] %vm239_vm0, %v322_v54 }
 0x12b   : > { %v1678_v45 = vpop.eup %1677  ;;  %v1085_v55 = vadd.f32 %v1077_v22, %v1021_v26  ;;  %v1117_v41 = vadd.f32 %v1674_v56, %v1061_v6  ;;  %v1189_v24 = vmul.f32 %v1676_v53, %v1181_v44  ;;  %1689 = vpow2.f32 %v1047_v46  ;;  %v2468_v26 = vld [vmem:[#allocation3 + $0x39] sm:$0xff] }
 0x12c   : > { %v1680_v59 = vpop.eup %1679  ;;  %v1245_v33 = vmul.f32 %v1678_v45, %v1237_v30  ;;  %1691 = vpow2.f32 %v1103_v47  ;;  %v1271_v31 = vmul.f32 1.442695, %v1262_v36  ;;  %v1318_v34 = vsub.f32 %v2413_v12, %v2440_v49 }
 0x12d   : > { %v1682_v0 = vpop.eup %1681  ;;  %v1141_v2 = vadd.f32 %v1133_v3, %v1085_v55  ;;  %v1173_v22 = vadd.f32 %v1676_v53, %v1117_v41  ;;  %v1301_v56 = vmul.f32 %v1680_v59, %v1293_v13  ;;  %1693 = vpow2.f32 %v1159_v27 }
 0x12e   : > { %v1684_v28 = vpop.eup %1683  ;;  %v1358_v46 = vmul.f32 %v1682_v0, %v2460_v57  ;;  %1695 = vpow2.f32 %v1215_v61  ;;  %v1327_v6 = vmul.f32 1.442695, %v1318_v34  ;;  %v1375_v36 = vsub.f32 %v2419_v21, %v2440_v49 }
 0x12f   : > { %v1686_v47 = vpop.eup %1685  ;;  %v1197_v4 = vadd.f32 %v1189_v24, %v1141_v2  ;;  %v1229_v12 = vadd.f32 %v1678_v45, %v1173_v22  ;;  %v1414_v54 = vmul.f32 %v1684_v28, %v2463_v50  ;;  %1697 = vpow2.f32 %v1271_v31 }
 0x130   : > { %v1688_v55 = vpop.eup %1687  ;;  %v1470_v53 = vmul.f32 %v1686_v47, %v2468_v26  ;;  %1699 = vpow2.f32 %v1327_v6  ;;  %v1384_v3 = vmul.f32 1.442695, %v1375_v36  ;;  %v1431_v27 = vsub.f32 %v2432_v8, %v2440_v49  ;;  %v2484_v49 = vpop.f32.mrf.mxu2 }
 0x131   : > { %v1690_v41 = vpop.eup %1689  ;;  %v1253_v61 = vadd.f32 %v1245_v33, %v1197_v4  ;;  %v1285_v34 = vadd.f32 %v1680_v59, %v1229_v12  ;;  %v1022_v1 = vmul.f32 %v1688_v55, %v1181_v44  ;;  %v2811_v21 = vmax.f32 %v2394_v38, %v2388_v29  ;;  %v2487_v12 = vld [vmem:[#allocation3 + $0x4f] sm:$0xff] }
 0x132   : > { %v1692_v24 = vpop.eup %1691  ;;  %v1062_v2 = vadd.f32 %v1690_v41, %v1688_v55  ;;  %v1078_v31 = vmul.f32 %v1690_v41, %v1237_v30  ;;  %1701 = vpow2.f32 %v1384_v3  ;;  %v1440_v22 = vmul.f32 1.442695, %v1431_v27  ;;  %v2489_v30 = vpop.f32.mrf.mxu0 }
 0x133   : > { %v959_v45 = vmax.f32 %v2811_v21, %v2458_v11  ;;  %v1694_v6 = vpop.eup %1693  ;;  %v1309_v36 = vadd.f32 %v1301_v56, %v1253_v61  ;;  %v1341_v62 = vadd.f32 %v1682_v0, %v1285_v34  ;;  %v1134_v8 = vmul.f32 %v1692_v24, %v1293_v13  ;;  %v2496_v34 = vld [vmem:[#allocation3 + $0x50] sm:$0xff] }
 0x134   : > { %v1696_v44 = vpop.eup %1695  ;;  %v1086_v59 = vadd.f32 %v1078_v31, %v1022_v1  ;;  %v1118_v33 = vadd.f32 %v1692_v24, %v1062_v2  ;;  %v1190_v38 = vmul.f32 %v1694_v6, %v2460_v57  ;;  %1703 = vpow2.f32 %v1440_v22 }
 0x135   : > { %v967_v4 = vmax.f32 %v959_v45, %v2481_v18  ;;  %v1698_v55 = vpop.eup %1697  ;;  %v1366_v3 = vadd.f32 %v1358_v46, %v1309_v36  ;;  %v1398_v27 = vadd.f32 %v1684_v28, %v1341_v62  ;;  %v1246_v0 = vmul.f32 %v1696_v44, %v2463_v50 }
 0x136   : > { %v1700_v56 = vpop.eup %1699  ;;  %v1142_v41 = vadd.f32 %v1134_v8, %v1086_v59  ;;  %v1174_v61 = vadd.f32 %v1694_v6, %v1118_v33  ;;  %v1302_v1 = vmul.f32 %v1698_v55, %v2468_v26  ;;  %v2812_v21 = vmax.f32 %v2422_v23, %v2425_v48  ;;  %v2505_v6 = vld [vmem:[#allocation3 + $0x51] sm:$0xff] }
 0x137   : > { %v2493_v13 = vmax.f32 %v967_v4, %v2489_v30  ;;  %v1422_v24 = vadd.f32 %v1414_v54, %v1366_v3  ;;  %v1454_v46 = vadd.f32 %v1686_v47, %v1398_v27  ;;  %v1359_v62 = vmul.f32 %v1700_v56, %v2487_v12 }
 0x138   : > { %v960_v45 = vmax.f32 %v2812_v21, %v2484_v49  ;;  %v1702_v2 = vpop.eup %1701  ;;  %v1198_v31 = vadd.f32 %v1190_v38, %v1142_v41  ;;  %v1230_v22 = vadd.f32 %v1696_v44, %v1174_v61  ;;  %v323_v38 = vld [vmem:[%s2329_s30 + $0x28] sm:$0xff] }
 0x139   : > { %v983_v28 = vsub.f32 %v2254_v37, %v2493_v13  ;;  %v1039_v36 = vsub.f32 %v2291_v63, %v2493_v13  ;;  %v1095_v23 = vsub.f32 %v2309_v15, %v2493_v13  ;;  %v1478_v8 = vadd.f32 %v1470_v53, %v1422_v24  ;;  %332 = vst.msk [vmem:[#allocation3 + $0x98] sm:$0xff] %vm239_vm0, %v323_v38 }
 0x13a   : > { %1705 = vrcp.f32 %v1454_v46  ;;  %v1415_v47 = vmul.f32 %v1702_v2, %v2496_v34  ;;  %v1704_v4 = vpop.eup %1703  ;;  %v1254_v59 = vadd.f32 %v1246_v0, %v1198_v31  ;;  %v1286_v37 = vadd.f32 %v1698_v55, %v1230_v22  ;;  %v2525_v46 = vpop.f32.mrf.mxu3 }
 0x13b   : > { %v993_v54 = vmul.f32 1.442695, %v983_v28  ;;  %v1049_v33 = vmul.f32 1.442695, %v1039_v36  ;;  %v1105_v3 = vmul.f32 1.442695, %v1095_v23  ;;  %v1471_v44 = vmul.f32 %v1704_v4, %v2505_v6  ;;  %v2541_v23 = vpop.f32.mrf.mxu1 }
 0x13c   : > { %v1151_v63 = vsub.f32 %v2311_v16, %v2493_v13  ;;  %v1207_v15 = vsub.f32 %v2305_v14, %v2493_v13  ;;  %v1310_v53 = vadd.f32 %v1302_v1, %v1254_v59  ;;  %v1342_v27 = vadd.f32 %v1700_v56, %v1286_v37 }
 0x13d   : > { %1707 = vpow2.f32 %v993_v54  ;;  %v1263_v55 = vsub.f32 %v2388_v29, %v2493_v13  ;;  %v1319_v61 = vsub.f32 %v2458_v11, %v2493_v13  ;;  %v1376_v14 = vsub.f32 %v2481_v18, %v2493_v13  ;;  %v2536_v18 = vpop.f32.mrf.mxu0 }
 0x13e   : > { %1709 = vpow2.f32 %v1049_v33  ;;  %v1161_v0 = vmul.f32 1.442695, %v1151_v63  ;;  %v1217_v41 = vmul.f32 1.442695, %v1207_v15  ;;  %v1367_v21 = vadd.f32 %v1359_v62, %v1310_v53 }
 0x13f   : > { %1711 = vpow2.f32 %v1105_v3  ;;  %v1399_v16 = vadd.f32 %v1702_v2, %v1342_v27  ;;  %v1273_v24 = vmul.f32 1.442695, %v1263_v55  ;;  %v1329_v29 = vmul.f32 1.442695, %v1319_v61 }
 0x140   : > { %v1706_v1 = vpop.eup %1705  ;;  %1713 = vpow2.f32 %v1161_v0  ;;  %v1432_v11 = vsub.f32 %v2489_v30, %v2493_v13  ;;  %v968_v56 = vmax.f32 %v960_v45, %v2525_v46  ;;  %v1423_v28 = vadd.f32 %v1415_v47, %v1367_v21 }
 0x141   : > { %v1494_v62 = vmul.f32 %v1706_v1, %v1478_v8  ;;  %v1455_v2 = vadd.f32 %v1704_v4, %v1399_v16  ;;  %1715 = vpow2.f32 %v1217_v41  ;;  %v1386_v22 = vmul.f32 1.442695, %v1376_v14  ;;  %v2567_v16 = vld [vmem:[#allocation3 + $0x67] sm:$0xff] }
 0x142   : > { %1717 = vpow2.f32 %v1273_v24  ;;  %v2539_v36 = vmax.f32 %v968_v56, %v2536_v18  ;;  %v2813_v30 = vmax.f32 %v2408_v51, %v2353_v7  ;;  %v1479_v8 = vadd.f32 %v1471_v44, %v1423_v28  ;;  %v2574_v56 = vpop.f32.mrf.mxu2 }
 0x143   : > { %v1708_v31 = vpop.eup %1707  ;;  %1502 = vst.msk [vmem:[%s2531_s7] sm:$0xff] %vm239_vm0, %v1494_v62  ;;  %1719 = vrcp.f32 %v1455_v2  ;;  %v1442_v54 = vmul.f32 1.442695, %v1432_v11  ;;  %v953_v38 = vmax.f32 %v2428_v39, %v2541_v23  ;;  %v324_v39 = vld [vmem:[%s2329_s30 + $0x30] sm:$0xff]  ;;  %v2572_v11 = vld [vmem:[#allocation3 + $0x68] sm:$0xff] }
 0x144   : > { %v2547_v13 = vmax.f32 %v2813_v30, %v2349_v32  ;;  %v1710_v45 = vpop.eup %1709  ;;  %v1023_v47 = vmul.f32 %v1708_v31, %v2460_v57  ;;  %1721 = vpow2.f32 %v1329_v29  ;;  %v984_v33 = vsub.f32 %v2260_v25, %v2539_v36  ;;  %333 = vst.msk [vmem:[#allocation3 + $0xb0] sm:$0xff] %vm239_vm0, %v324_v39 }
 0x145   : > { %v1712_v4 = vpop.eup %1711  ;;  %v1063_v59 = vadd.f32 %v1710_v45, %v1708_v31  ;;  %v1079_v37 = vmul.f32 %v1710_v45, %v2463_v50  ;;  %1723 = vpow2.f32 %v1386_v22  ;;  %v1040_v51 = vsub.f32 %v2299_v5, %v2539_v36  ;;  %v2600_v39 = vpop.f32.mrf.mxu0 }
 0x146   : > { %v1096_v3 = vsub.f32 %v2317_v19, %v2539_v36  ;;  %v1714_v57 = vpop.eup %1713  ;;  %v1135_v50 = vmul.f32 %v1712_v4, %v2468_v26  ;;  %v995_v15 = vmul.f32 1.442695, %v984_v33  ;;  %1725 = vpow2.f32 %v1442_v54 }
 0x147   : > { %v1087_v44 = vadd.f32 %v1079_v37, %v1023_v47  ;;  %v1119_v63 = vadd.f32 %v1712_v4, %v1063_v59  ;;  %v1716_v53 = vpop.eup %1715  ;;  %v1051_v25 = vmul.f32 1.442695, %v1040_v51  ;;  %v1152_v5 = vsub.f32 %v2319_v9, %v2539_v36 }
 0x148   : > { %v1107_v27 = vmul.f32 1.442695, %v1096_v3  ;;  %v1718_v55 = vpop.eup %1717  ;;  %v1191_v41 = vmul.f32 %v1714_v57, %v2487_v12  ;;  %1727 = vpow2.f32 %v995_v15  ;;  %v1247_v21 = vmul.f32 %v1716_v53, %v2496_v34 }
 0x149   : > { %v1143_v0 = vadd.f32 %v1135_v50, %v1087_v44  ;;  %v1175_v19 = vadd.f32 %v1714_v57, %v1119_v63  ;;  %v1720_v61 = vpop.eup %1719  ;;  %1729 = vpow2.f32 %v1051_v25  ;;  %v1163_v26 = vmul.f32 1.442695, %v1152_v5  ;;  %v2591_v63 = vpop.f32.mrf.mxu3 }
 0x14a   : > { %v1208_v24 = vsub.f32 %v2313_v17, %v2539_v36  ;;  %v1722_v9 = vpop.eup %1721  ;;  %v1495_v14 = vmul.f32 %v1720_v61, %v1479_v8  ;;  %1731 = vpow2.f32 %v1107_v27  ;;  %v1303_v28 = vmul.f32 %v1718_v55, %v2505_v6 }
 0x14b   : > { %v1199_v1 = vadd.f32 %v1191_v41, %v1143_v0  ;;  %v1231_v29 = vadd.f32 %v1716_v53, %v1175_v19  ;;  %v1724_v62 = vpop.eup %1723  ;;  %1733 = vpow2.f32 %v1163_v26  ;;  %v1264_v31 = vsub.f32 %v2425_v48, %v2539_v36 }
 0x14c   : > { %v1219_v2 = vmul.f32 1.442695, %v1208_v24  ;;  %1503 = vst.msk [vmem:[%s2531_s7 + $0x8] sm:$0xff] %vm239_vm0, %v1495_v14  ;;  %v1360_v30 = vmul.f32 %v1722_v9, %v2567_v16  ;;  %v1320_v45 = vsub.f32 %v2484_v49, %v2539_v36  ;;  %v1726_v8 = vpop.eup %1725  ;;  %v1416_v47 = vmul.f32 %v1724_v62, %v2572_v11  ;;  %v2609_v14 = vpop.f32.mrf.mxu2 }
 0x14d   : > { %v1255_v17 = vadd.f32 %v1247_v21, %v1199_v1  ;;  %v1287_v22 = vadd.f32 %v1718_v55, %v1231_v29  ;;  %v1275_v54 = vmul.f32 1.442695, %v1264_v31  ;;  %v1377_v4 = vsub.f32 %v2525_v46, %v2539_v36  ;;  %v2593_v46 = vld [vmem:[#allocation3 + $0x69] sm:$0xff]  ;;  %v2598_v55 = vpop.f32.mrf.mxu1 }
 0x14e   : > { %1735 = vpow2.f32 %v1219_v2  ;;  %v1728_v59 = vpop.eup %1727  ;;  %v1331_v33 = vmul.f32 1.442695, %v1320_v45  ;;  %v1433_v51 = vsub.f32 %v2536_v18, %v2539_v36  ;;  %v961_v44 = vmax.f32 %v953_v38, %v2574_v56  ;;  %v2619_v45 = vld [vmem:[#allocation3 + $0x7f] sm:$0xff] }
 0x14f   : > { %v1311_v37 = vadd.f32 %v1303_v28, %v1255_v17  ;;  %v1343_v48 = vadd.f32 %v1722_v9, %v1287_v22  ;;  %v1730_v3 = vpop.eup %1729  ;;  %v1024_v57 = vmul.f32 %v1728_v59, %v2487_v12  ;;  %1737 = vpow2.f32 %v1275_v54 }
 0x150   : > { %v1388_v49 = vmul.f32 1.442695, %v1377_v4  ;;  %v1732_v50 = vpop.eup %1731  ;;  %v1064_v25 = vadd.f32 %v1730_v3, %v1728_v59  ;;  %v1080_v27 = vmul.f32 %v1730_v3, %v2496_v34  ;;  %1739 = vpow2.f32 %v1331_v33 }
 0x151   : > { %v1368_v15 = vadd.f32 %v1360_v30, %v1311_v37  ;;  %v1400_v53 = vadd.f32 %v1724_v62, %v1343_v48  ;;  %v1734_v5 = vpop.eup %1733  ;;  %v1136_v18 = vmul.f32 %v1732_v50, %v2505_v6  ;;  %v1444_v36 = vmul.f32 1.442695, %v1433_v51  ;;  %v325_v30 = vld [vmem:[%s2329_s30 + $0x38] sm:$0xff]  ;;  %v2627_v48 = vld [vmem:[#allocation3 + $0x80] sm:$0xff] }
 0x152   : > { %v969_v12 = vmax.f32 %v961_v44, %v2591_v63  ;;  %v1088_v19 = vadd.f32 %v1080_v27, %v1024_v57  ;;  %v1120_v41 = vadd.f32 %v1732_v50, %v1064_v25  ;;  %v1472_v21 = vmul.f32 %v1726_v8, %v2593_v46  ;;  %334 = vst.msk [vmem:[#allocation3 + $0xc8] sm:$0xff] %vm239_vm0, %v325_v30 }
 0x153   : > { %v1424_v38 = vadd.f32 %v1416_v47, %v1368_v15  ;;  %v1456_v0 = vadd.f32 %v1726_v8, %v1400_v53  ;;  %v1192_v34 = vmul.f32 %v1734_v5, %v2567_v16  ;;  %1741 = vpow2.f32 %v1388_v49 }
 0x154   : > { %v1736_v61 = vpop.eup %1735  ;;  %v2605_v6 = vmax.f32 %v969_v12, %v2600_v39  ;;  %v1144_v26 = vadd.f32 %v1136_v18, %v1088_v19  ;;  %v1176_v24 = vadd.f32 %v1734_v5, %v1120_v41  ;;  %v954_v9 = vmax.f32 %v2435_v43, %v2598_v55 }
 0x155   : > { %1743 = vrcp.f32 %v1456_v0  ;;  %v1738_v1 = vpop.eup %1737  ;;  %v1480_v29 = vadd.f32 %v1472_v21, %v1424_v38  ;;  %v1248_v62 = vmul.f32 %v1736_v61, %v2572_v11  ;;  %v2637_v18 = vpop.f32.mrf.mxu1 }
 0x156   : > { %v985_v28 = vsub.f32 %v2277_v60, %v2605_v6  ;;  %v1041_v2 = vsub.f32 %v2307_v52, %v2605_v6  ;;  %v1200_v31 = vadd.f32 %v1192_v34, %v1144_v26  ;;  %v1232_v17 = vadd.f32 %v1736_v61, %v1176_v24  ;;  %v1740_v43 = vpop.eup %1739  ;;  %v2648_v61 = vpop.f32.mrf.mxu2 }
 0x157   : > { %1745 = vpow2.f32 %v1444_v36  ;;  %v1097_v22 = vsub.f32 %v2331_v10, %v2605_v6  ;;  %v1153_v54 = vsub.f32 %v2335_v35, %v2605_v6  ;;  %v1209_v60 = vsub.f32 %v2321_v20, %v2605_v6  ;;  %v2631_v35 = vpop.f32.mrf.mxu3  ;;  %v2641_v36 = vld [vmem:[#allocation3 + $0x81] sm:$0xff] }
 0x158   : > { %v997_v8 = vmul.f32 1.442695, %v985_v28  ;;  %v1053_v47 = vmul.f32 1.442695, %v1041_v2  ;;  %v1256_v52 = vadd.f32 %v1248_v62, %v1200_v31  ;;  %v1288_v4 = vadd.f32 %v1738_v1, %v1232_v17  ;;  %v2656_v28 = vpop.f32.mrf.mxu0 }
 0x159   : > { %v1304_v59 = vmul.f32 %v1738_v1, %v2593_v46  ;;  %v1109_v37 = vmul.f32 1.442695, %v1097_v22  ;;  %v1742_v10 = vpop.eup %1741  ;;  %v1165_v33 = vmul.f32 1.442695, %v1153_v54  ;;  %v1221_v51 = vmul.f32 1.442695, %v1209_v60 }
 0x15a   : > { %1747 = vpow2.f32 %v997_v8  ;;  %v1265_v3 = vsub.f32 %v2541_v23, %v2605_v6  ;;  %v1344_v49 = vadd.f32 %v1740_v43, %v1288_v4  ;;  %v1361_v44 = vmul.f32 %v1740_v43, %v2619_v45 }
 0x15b   : > { %v1744_v20 = vpop.eup %1743  ;;  %v1312_v57 = vadd.f32 %v1304_v59, %v1256_v52  ;;  %1749 = vpow2.f32 %v1053_v47  ;;  %v1321_v53 = vsub.f32 %v2574_v56, %v2605_v6  ;;  %v1417_v23 = vmul.f32 %v1742_v10, %v2627_v48  ;;  %v2815_v52 = vld [vmem:[#allocation5_spill] sm:$0xff] }
 0x15c   : > { %v1496_v50 = vmul.f32 %v1744_v20, %v1480_v29  ;;  %1751 = vpow2.f32 %v1109_v37  ;;  %v1277_v15 = vmul.f32 1.442695, %v1265_v3  ;;  %v1401_v5 = vadd.f32 %v1742_v10, %v1344_v49  ;;  %v2817_v37 = vld [vmem:[#allocation11_spill] sm:$0xff]  ;;  %v2677_v49 = vld [vmem:[#allocation3 + $0x98] sm:$0xff] }
 0x15d   : > { %v1746_v25 = vpop.eup %1745  ;;  %v1369_v27 = vadd.f32 %v1361_v44, %v1312_v57  ;;  %1753 = vpow2.f32 %v1165_v33  ;;  %v1333_v12 = vmul.f32 1.442695, %v1321_v53  ;;  %v1378_v38 = vsub.f32 %v2591_v63, %v2605_v6  ;;  %v2675_v57 = vld [vmem:[#allocation3 + $0x97] sm:$0xff] }
 0x15e   : > { %1504 = vst.msk [vmem:[%s2531_s7 + $0x10] sm:$0xff] %vm239_vm0, %v1496_v50  ;;  %1755 = vpow2.f32 %v1221_v51  ;;  %v1434_v56 = vsub.f32 %v2600_v39, %v2605_v6  ;;  %v1457_v19 = vadd.f32 %v1746_v25, %v1401_v5  ;;  %v962_v41 = vmax.f32 %v954_v9, %v2609_v14  ;;  %v2818_v44 = vld [vmem:[#allocation12_spill] sm:$0xff] }
 0x15f   : > { %v1425_v0 = vadd.f32 %v1417_v23, %v1369_v27  ;;  %1757 = vpow2.f32 %v1277_v15  ;;  %v1390_v34 = vmul.f32 1.442695, %v1378_v38  ;;  %v955_v24 = vmax.f32 %v2547_v13, %v2637_v18  ;;  %v2668_v54 = vpop.f32.mrf.mxu3 }
 0x160   : > { %v1748_v21 = vpop.eup %1747  ;;  %1759 = vpow2.f32 %v1333_v12  ;;  %v1446_v26 = vmul.f32 1.442695, %v1434_v56  ;;  %v1473_v63 = vmul.f32 %v1746_v25, %v2641_v36  ;;  %v970_v6 = vmax.f32 %v962_v41, %v2631_v35  ;;  %v2819_v41 = vld [vmem:[#allocation9_spill] sm:$0xff] }
 0x161   : > { %v1750_v1 = vpop.eup %1749  ;;  %1761 = vrcp.f32 %v1457_v19  ;;  %v1025_v39 = vmul.f32 %v1748_v21, %v2567_v16  ;;  %v963_v2 = vmax.f32 %v955_v24, %v2648_v61  ;;  %v2814_v16 = vmax.f32 %v2416_v58, %v2366_v42 }
 0x162   : > { %v1752_v29 = vpop.eup %1751  ;;  %v1065_v62 = vadd.f32 %v1750_v1, %v1748_v21  ;;  %v1081_v9 = vmul.f32 %v1750_v1, %v2572_v11  ;;  %1763 = vpow2.f32 %v1390_v34  ;;  %v1481_v17 = vadd.f32 %v1473_v63, %v1425_v0 }
 0x163   : > { %v1754_v31 = vpop.eup %1753  ;;  %v1137_v13 = vmul.f32 %v1752_v29, %v2593_v46  ;;  %v978_v22 = vmax.f32 %v970_v6, %v2656_v28  ;;  %v2665_v30 = vmax.f32 %v2814_v16, %v2363_v40  ;;  %1765 = vpow2.f32 %v1446_v26  ;;  %v2816_v46 = vld [vmem:[#allocation7_spill] sm:$0xff] }
 0x164   : > { %v1756_v43 = vpop.eup %1755  ;;  %v1089_v8 = vadd.f32 %v1081_v9, %v1025_v39  ;;  %v1121_v11 = vadd.f32 %v1752_v29, %v1065_v62  ;;  %v1193_v47 = vmul.f32 %v1754_v31, %v2619_v45  ;;  %v971_v33 = vmax.f32 %v963_v2, %v2668_v54 }
 0x165   : > { %v1758_v60 = vpop.eup %1757  ;;  %v986_v4 = vsub.f32 %v2815_v52, %v978_v22  ;;  %v1042_v59 = vsub.f32 %v2816_v46, %v978_v22  ;;  %v1098_v10 = vsub.f32 %v2817_v37, %v978_v22  ;;  %v1249_v20 = vmul.f32 %v1756_v43, %v2627_v48  ;;  %v2821_v52 = vld [vmem:[#allocation8_spill] sm:$0xff]  ;;  %v2701_v46 = vpop.f32.mrf.mxu1 }
 0x166   : > { %v1760_v58 = vpop.eup %1759  ;;  %v1145_v51 = vadd.f32 %v1137_v13, %v1089_v8  ;;  %v1177_v3 = vadd.f32 %v1754_v31, %v1121_v11  ;;  %v1154_v50 = vsub.f32 %v2818_v44, %v978_v22  ;;  %v1305_v53 = vmul.f32 %v1758_v60, %v2641_v36  ;;  %v2689_v31 = vpop.f32.mrf.mxu0 }
 0x167   : > { %v1762_v15 = vpop.eup %1761  ;;  %v999_v25 = vmul.f32 1.442695, %v986_v4  ;;  %v1055_v27 = vmul.f32 1.442695, %v1042_v59  ;;  %v1111_v5 = vmul.f32 1.442695, %v1098_v10  ;;  %v1362_v19 = vmul.f32 %v1760_v58, %v2675_v57 }
 0x168   : > { %v1764_v23 = vpop.eup %1763  ;;  %v1497_v12 = vmul.f32 %v1762_v15, %v1481_v17  ;;  %v1201_v38 = vadd.f32 %v1193_v47, %v1145_v51  ;;  %v1233_v56 = vadd.f32 %v1756_v43, %v1177_v3  ;;  %v1167_v0 = vmul.f32 1.442695, %v1154_v50 }
 0x169   : > { %1767 = vpow2.f32 %v999_v25  ;;  %v1210_v21 = vsub.f32 %v2819_v41, %v978_v22  ;;  %v1266_v34 = vsub.f32 %v2598_v55, %v978_v22  ;;  %v1766_v26 = vpop.eup %1765  ;;  %v1418_v63 = vmul.f32 %v1764_v23, %v2677_v49 }
 0x16a   : > { %1505 = vst.msk [vmem:[%s2531_s7 + $0x18] sm:$0xff] %vm239_vm0, %v1497_v12  ;;  %v1257_v24 = vadd.f32 %v1249_v20, %v1201_v38  ;;  %v1289_v1 = vadd.f32 %v1758_v60, %v1233_v56  ;;  %1769 = vpow2.f32 %v1055_v27  ;;  %v1322_v29 = vsub.f32 %v2609_v14, %v978_v22  ;;  %v2695_v14 = vld [vmem:[#allocation3 + $0x99] sm:$0xff] }
 0x16b   : > { %1771 = vpow2.f32 %v1111_v5  ;;  %v1223_v39 = vmul.f32 1.442695, %v1210_v21  ;;  %v1279_v6 = vmul.f32 1.442695, %v1266_v34  ;;  %v1379_v2 = vsub.f32 %v2631_v35, %v978_v22  ;;  %v2820_v35 = vld [vmem:[#allocation4_spill] sm:$0xff] }
 0x16c   : > { %v1313_v62 = vadd.f32 %v1305_v53, %v1257_v24  ;;  %v1345_v9 = vadd.f32 %v1760_v58, %v1289_v1  ;;  %1773 = vpow2.f32 %v1167_v0  ;;  %v1335_v55 = vmul.f32 1.442695, %v1322_v29 }
 0x16d   : > { %1775 = vpow2.f32 %v1223_v39  ;;  %v1435_v17 = vsub.f32 %v2656_v28, %v978_v22  ;;  %v2693_v13 = vmax.f32 %v971_v33, %v2689_v31  ;;  %v1392_v8 = vmul.f32 1.442695, %v1379_v2 }
 0x16e   : > { %v1370_v16 = vadd.f32 %v1362_v19, %v1313_v62  ;;  %v1402_v43 = vadd.f32 %v1764_v23, %v1345_v9  ;;  %1777 = vpow2.f32 %v1279_v6  ;;  %v1474_v20 = vmul.f32 %v1766_v26, %v2695_v14  ;;  %v2714_v19 = vld [vmem:[#allocation3 + $0xaf] sm:$0xff] }
 0x16f   : > { %v1768_v11 = vpop.eup %1767  ;;  %1779 = vpow2.f32 %v1335_v55  ;;  %v1448_v47 = vmul.f32 1.442695, %v1435_v17  ;;  %v987_v60 = vsub.f32 %v2820_v35, %v2693_v13  ;;  %v1043_v4 = vsub.f32 %v2821_v52, %v2693_v13 }
 0x170   : > { %v1770_v28 = vpop.eup %1769  ;;  %v1426_v22 = vadd.f32 %v1418_v63, %v1370_v16  ;;  %v1458_v59 = vadd.f32 %v1766_v26, %v1402_v43  ;;  %v1026_v37 = vmul.f32 %v1768_v11, %v2619_v45  ;;  %1781 = vpow2.f32 %v1392_v8 }
 0x171   : > { %v1772_v10 = vpop.eup %1771  ;;  %v1066_v33 = vadd.f32 %v1770_v28, %v1768_v11  ;;  %v1082_v58 = vmul.f32 %v1770_v28, %v2627_v48  ;;  %1783 = vpow2.f32 %v1448_v47  ;;  %v1001_v51 = vmul.f32 1.442695, %v987_v60  ;;  %v2822_v48 = vld [vmem:[#allocation13_spill] sm:$0xff] }
 0x172   : > { %v1774_v3 = vpop.eup %1773  ;;  %1785 = vrcp.f32 %v1458_v59  ;;  %v1057_v44 = vmul.f32 1.442695, %v1043_v4  ;;  %v956_v50 = vmax.f32 %v2665_v30, %v2701_v46  ;;  %v1138_v45 = vmul.f32 %v1772_v10, %v2641_v36 }
 0x173   : > { %v1776_v15 = vpop.eup %1775  ;;  %v1090_v53 = vadd.f32 %v1082_v58, %v1026_v37  ;;  %v1122_v25 = vadd.f32 %v1772_v10, %v1066_v33  ;;  %1787 = vpow2.f32 %v1001_v51  ;;  %v1482_v5 = vadd.f32 %v1474_v20, %v1426_v22  ;;  %v2738_v10 = vld [vmem:[#allocation3 + $0xb1] sm:$0xff]  ;;  %v2740_v33 = vpop.f32.mrf.mxu3 }
 0x174   : > { %v1778_v27 = vpop.eup %1777  ;;  %1789 = vpow2.f32 %v1057_v44  ;;  %v1099_v23 = vsub.f32 %v2822_v48, %v2693_v13  ;;  %v1155_v12 = vsub.f32 %v2353_v7, %v2693_v13  ;;  %v1194_v30 = vmul.f32 %v1774_v3, %v2675_v57 }
 0x175   : > { %v1780_v38 = vpop.eup %1779  ;;  %v1146_v56 = vadd.f32 %v1138_v45, %v1090_v53  ;;  %v1178_v0 = vadd.f32 %v1774_v3, %v1122_v25  ;;  %v1211_v36 = vsub.f32 %v2349_v32, %v2693_v13  ;;  %v1250_v21 = vmul.f32 %v1776_v15, %v2677_v49 }
 0x176   : > { %v1782_v41 = vpop.eup %1781  ;;  %v1113_v34 = vmul.f32 1.442695, %v1099_v23  ;;  %v1169_v26 = vmul.f32 1.442695, %v1155_v12  ;;  %v1267_v24 = vsub.f32 %v2637_v18, %v2693_v13  ;;  %v1306_v39 = vmul.f32 %v1778_v27, %v2695_v14  ;;  %v2725_v18 = vpop.f32.mrf.mxu2  ;;  %v2823_v12 = vld [vmem:[#allocation6_spill] sm:$0xff] }
 0x177   : > { %v1784_v1 = vpop.eup %1783  ;;  %v1202_v7 = vadd.f32 %v1194_v30, %v1146_v56  ;;  %v1234_v63 = vadd.f32 %v1776_v15, %v1178_v0  ;;  %v1225_v6 = vmul.f32 1.442695, %v1211_v36  ;;  %v1363_v62 = vmul.f32 %v1780_v38, %v2714_v19  ;;  %v2825_v0 = vld [vmem:[#allocation14_spill] sm:$0xff] }
 0x178   : > { %v1786_v29 = vpop.eup %1785  ;;  %1791 = vpow2.f32 %v1113_v34  ;;  %v1281_v32 = vmul.f32 1.442695, %v1267_v24  ;;  %v1323_v9 = vsub.f32 %v2648_v61, %v2693_v13  ;;  %v1380_v47 = vsub.f32 %v2668_v54, %v2693_v13  ;;  %v2732_v61 = vld [vmem:[#allocation3 + $0xb0] sm:$0xff] }
 0x179   : > { %v1788_v2 = vpop.eup %1787  ;;  %v1498_v55 = vmul.f32 %v1786_v29, %v1482_v5  ;;  %v1258_v17 = vadd.f32 %v1250_v21, %v1202_v7  ;;  %v1290_v16 = vadd.f32 %v1778_v27, %v1234_v63  ;;  %1793 = vpow2.f32 %v1169_v26  ;;  %v1356_v26 = vld [vmem:[#allocation3 + $0xc7] sm:$0xff] }
 0x17a   : > { %v1790_v43 = vpop.eup %1789  ;;  %v1027_v8 = vmul.f32 %v1788_v2, %v2675_v57  ;;  %1795 = vpow2.f32 %v1225_v6  ;;  %v1337_v11 = vmul.f32 1.442695, %v1323_v9  ;;  %v1394_v28 = vmul.f32 1.442695, %v1380_v47 }
 0x17b   : > { %1506 = vst.msk [vmem:[%s2531_s7 + $0x20] sm:$0xff] %vm239_vm0, %v1498_v55  ;;  %v1314_v35 = vadd.f32 %v1306_v39, %v1258_v17  ;;  %v1346_v60 = vadd.f32 %v1780_v38, %v1290_v16  ;;  %v1067_v52 = vadd.f32 %v1790_v43, %v1788_v2  ;;  %v1083_v4 = vmul.f32 %v1790_v43, %v2677_v49  ;;  %v2824_v38 = vld [vmem:[#allocation10_spill] sm:$0xff] }
 0x17c   : > { %1797 = vpow2.f32 %v1281_v32  ;;  %v1436_v22 = vsub.f32 %v2689_v31, %v2693_v13  ;;  %v964_v57 = vmax.f32 %v956_v50, %v2725_v18  ;;  %v1419_v51 = vmul.f32 %v1782_v41, %v2732_v61  ;;  %v2745_v13 = vpop.f32.mrf.mxu0 }
 0x17d   : > { %v1371_v59 = vadd.f32 %v1363_v62, %v1314_v35  ;;  %v1403_v37 = vadd.f32 %v1782_v41, %v1346_v60  ;;  %v1091_v54 = vadd.f32 %v1083_v4, %v1027_v8  ;;  %1799 = vpow2.f32 %v1337_v11  ;;  %v1412_v4 = vld [vmem:[#allocation3 + $0xc8] sm:$0xff] }
 0x17e   : > { %v1792_v58 = vpop.eup %1791  ;;  %v1450_v3 = vmul.f32 1.442695, %v1436_v22  ;;  %v972_v49 = vmax.f32 %v964_v57, %v2740_v33  ;;  %v1475_v25 = vmul.f32 %v1784_v1, %v2738_v10  ;;  %1801 = vpow2.f32 %v1394_v28 }
 0x17f   : > { %v1794_v20 = vpop.eup %1793  ;;  %v1459_v44 = vadd.f32 %v1784_v1, %v1403_v37  ;;  %v1123_v15 = vadd.f32 %v1792_v58, %v1067_v52  ;;  %v1139_v31 = vmul.f32 %v1792_v58, %v2695_v14  ;;  %v1427_v53 = vadd.f32 %v1419_v51, %v1371_v59  ;;  %v1468_v59 = vld [vmem:[#allocation3 + $0xc9] sm:$0xff] }
 0x180   : > { %v1796_v50 = vpop.eup %1795  ;;  %v2749_v45 = vmax.f32 %v972_v49, %v2745_v13  ;;  %v1195_v48 = vmul.f32 %v1794_v20, %v2714_v19 }
 0x181   : > { %1803 = vrcp.f32 %v1459_v44  ;;  %v1147_v27 = vadd.f32 %v1139_v31, %v1091_v54  ;;  %v1179_v5 = vadd.f32 %v1794_v20, %v1123_v15  ;;  %v1251_v34 = vmul.f32 %v1796_v50, %v2732_v61 }
 0x182   : > { %v1798_v23 = vpop.eup %1797  ;;  %1805 = vpow2.f32 %v1450_v3  ;;  %v988_v14 = vsub.f32 %v2823_v12, %v2749_v45  ;;  %v1044_v56 = vsub.f32 %v2824_v38, %v2749_v45  ;;  %v1100_v30 = vsub.f32 %v2825_v0, %v2749_v45 }
 0x183   : > { %v1800_v36 = vpop.eup %1799  ;;  %v1203_v41 = vadd.f32 %v1195_v48, %v1147_v27  ;;  %v1235_v21 = vadd.f32 %v1796_v50, %v1179_v5  ;;  %v1156_v24 = vsub.f32 %v2366_v42, %v2749_v45  ;;  %v1483_v1 = vadd.f32 %v1475_v25, %v1427_v53 }
 0x184   : > { %v1003_v7 = vmul.f32 1.442695, %v988_v14  ;;  %v1059_v63 = vmul.f32 1.442695, %v1044_v56  ;;  %v1115_v39 = vmul.f32 1.442695, %v1100_v30  ;;  %v1307_v62 = vmul.f32 %v1798_v23, %v2738_v10  ;;  %v1802_v9 = vpop.eup %1801 }
 0x185   : > { %v1259_v6 = vadd.f32 %v1251_v34, %v1203_v41  ;;  %v1291_v29 = vadd.f32 %v1798_v23, %v1235_v21  ;;  %v1171_v32 = vmul.f32 1.442695, %v1156_v24  ;;  %v1364_v2 = vmul.f32 %v1800_v36, %v1356_v26 }
 0x186   : > { %1807 = vpow2.f32 %v1003_v7  ;;  %v1212_v55 = vsub.f32 %v2363_v40, %v2749_v45  ;;  %v1268_v17 = vsub.f32 %v2701_v46, %v2749_v45  ;;  %v1324_v8 = vsub.f32 %v2725_v18, %v2749_v45 }
 0x187   : > { %v1804_v42 = vpop.eup %1803  ;;  %v1315_v16 = vadd.f32 %v1307_v62, %v1259_v6  ;;  %v1347_v43 = vadd.f32 %v1800_v36, %v1291_v29  ;;  %1809 = vpow2.f32 %v1059_v63  ;;  %v1381_v46 = vsub.f32 %v2740_v33, %v2749_v45  ;;  %v1357_v36 = vld [vmem:[#allocation3 + $0xdf] sm:$0xff] }
 0x188   : > { %v1806_v11 = vpop.eup %1805  ;;  %v1499_v47 = vmul.f32 %v1804_v42, %v1483_v1  ;;  %1811 = vpow2.f32 %v1115_v39  ;;  %v1227_v35 = vmul.f32 1.442695, %v1212_v55  ;;  %v1283_v60 = vmul.f32 1.442695, %v1268_v17  ;;  %v1413_v1 = vld [vmem:[#allocation3 + $0xe0] sm:$0xff] }
 0x189   : > { %v1404_v52 = vadd.f32 %v1802_v9, %v1347_v43  ;;  %1813 = vpow2.f32 %v1171_v32  ;;  %v1372_v40 = vadd.f32 %v1364_v2, %v1315_v16  ;;  %v1420_v57 = vmul.f32 %v1802_v9, %v1412_v4  ;;  %v1469_v29 = vld [vmem:[#allocation3 + $0xe1] sm:$0xff] }
 0x18a   : > { %1507 = vst.msk [vmem:[%s2531_s7 + $0x28] sm:$0xff] %vm239_vm0, %v1499_v47  ;;  %1815 = vpow2.f32 %v1227_v35  ;;  %v1339_v18 = vmul.f32 1.442695, %v1324_v8  ;;  %v1437_v58 = vsub.f32 %v2745_v13, %v2749_v45  ;;  %v1476_v15 = vmul.f32 %v1806_v11, %v1468_v59 }
 0x18b   : > { %v1460_v28 = vadd.f32 %v1806_v11, %v1404_v52  ;;  %1817 = vpow2.f32 %v1283_v60  ;;  %v1428_v3 = vadd.f32 %v1420_v57, %v1372_v40  ;;  %v1396_v33 = vmul.f32 1.442695, %v1381_v46 }
 0x18c   : > { %v1808_v22 = vpop.eup %1807  ;;  %v1452_v27 = vmul.f32 1.442695, %v1437_v58 }
 0x18d   : > { %v1810_v37 = vpop.eup %1809  ;;  %1819 = vrcp.f32 %v1460_v28  ;;  %v1028_v54 = vmul.f32 %v1808_v22, %v2714_v19  ;;  %v1484_v5 = vadd.f32 %v1476_v15, %v1428_v3 }
 0x18e   : > { %v1812_v51 = vpop.eup %1811  ;;  %v1068_v49 = vadd.f32 %v1810_v37, %v1808_v22  ;;  %v1084_v20 = vmul.f32 %v1810_v37, %v2732_v61  ;;  %1821 = vpow2.f32 %v1339_v18 }
 0x18f   : > { %v1814_v44 = vpop.eup %1813  ;;  %v1140_v53 = vmul.f32 %v1812_v51, %v2738_v10  ;;  %1823 = vpow2.f32 %v1396_v33 }
 0x190   : > { %v1092_v31 = vadd.f32 %v1084_v20, %v1028_v54  ;;  %v1124_v50 = vadd.f32 %v1812_v51, %v1068_v49  ;;  %v1816_v25 = vpop.eup %1815  ;;  %v1196_v45 = vmul.f32 %v1814_v44, %v1356_v26  ;;  %1825 = vpow2.f32 %v1452_v27 }
 0x191   : > { %v1818_v19 = vpop.eup %1817  ;;  %v1252_v38 = vmul.f32 %v1816_v25, %v1412_v4 }
 0x192   : > { %v1148_v48 = vadd.f32 %v1140_v53, %v1092_v31  ;;  %v1180_v13 = vadd.f32 %v1814_v44, %v1124_v50  ;;  %v1308_v30 = vmul.f32 %v1818_v19, %v1468_v59 }
 0x193   : > { %v1820_v23 = vpop.eup %1819 }
 0x194   : > { %v1500_v12 = vmul.f32 %v1820_v23, %v1484_v5  ;;  %v1204_v61 = vadd.f32 %v1196_v45, %v1148_v48  ;;  %v1236_v14 = vadd.f32 %v1816_v25, %v1180_v13  ;;  %v1822_v56 = vpop.eup %1821 }
 0x195   : > { %v1824_v34 = vpop.eup %1823  ;;  %v1365_v24 = vmul.f32 %v1822_v56, %v1357_v36 }
 0x196   : > { %1508 = vst.msk [vmem:[%s2531_s7 + $0x30] sm:$0xff] %vm239_vm0, %v1500_v12  ;;  %v1260_v10 = vadd.f32 %v1252_v38, %v1204_v61  ;;  %v1292_v0 = vadd.f32 %v1818_v19, %v1236_v14  ;;  %v1826_v7 = vpop.eup %1825  ;;  %v1421_v6 = vmul.f32 %v1824_v34, %v1413_v1 }
 0x197   : > { %v1477_v32 = vmul.f32 %v1826_v7, %v1469_v29 }
 0x198   : > { %v1316_v41 = vadd.f32 %v1308_v30, %v1260_v10  ;;  %v1348_v21 = vadd.f32 %v1822_v56, %v1292_v0 }
 0x19a   : > { %v1405_v26 = vadd.f32 %v1824_v34, %v1348_v21  ;;  %v1373_v63 = vadd.f32 %v1365_v24, %v1316_v41 }
 0x19c   : > { %v1461_v39 = vadd.f32 %v1826_v7, %v1405_v26  ;;  %v1429_v62 = vadd.f32 %v1421_v6, %v1373_v63 }
 0x19e   : > { %1827 = vrcp.f32 %v1461_v39  ;;  %v1485_v9 = vadd.f32 %v1477_v32, %v1429_v62 }
 0x1a4   : > { %v1828_v2 = vpop.eup %1827 }
 0x1a5   : > { %v1501_v55 = vmul.f32 %v1828_v2, %v1485_v9 }
 0x1a7   : > { %1509 = vst.msk [vmem:[%s2531_s7 + $0x38] sm:$0xff] %vm239_vm0, %v1501_v55 }
 0x1a8 PF: > { %s14_s15 = sadd.s32 1, %s1835_s15  }
 0x1a9   : > { %p11_p4 = scmp.ge.s32.totalorder %s14_s15, 4  }
 0x1ab   :  { %13 = sbr.rel (!%p11_p4) target bundleno = 1 (0x1), region = 76 }

</bundles_post_ra>
